<compile_context>
chip_gen: v5e
topology: v5e:2x2
jax: 0.10.0
libtpu: 0.0.40
codegen_flags: <defaults>
</compile_context>

<pallas_src>
import jax
import jax.numpy as jnp
from jax.experimental import pallas as pl
from jax.experimental.pallas import tpu as pltpu

INPUT_SIZE = 3072
HIDDEN_SIZE = 500
NUM_CLASSES = 10

HIDDEN_PAD = 512   # 500 -> 512: multiple of 128 -> clean MXU/VPU/EUP lanes
OUT_PAD = 128      # 10  -> 128: lane-dense output (unmasked vst), sliced outside


def _round_up(n, m):
    return -(-n // m) * m


def mlp_kernel(x_ref, w1_ref, b1_ref, w2_ref, b2_ref, o_ref):
    # fc1: [tb, 3072] @ [3072, 512] + [1, 512]   (f32 accumulation on the MXU)
    h = jnp.dot(x_ref[...], w1_ref[...], preferred_element_type=jnp.float32)
    # tanh on the EUP
    h = jnp.tanh(h + b1_ref[...])
    # fc2: [tb, 512] @ [512, 128] + [1, 128]
    out = jnp.dot(h.astype(w2_ref.dtype), w2_ref[...],
                  preferred_element_type=jnp.float32)
    o_ref[...] = (out + b2_ref[...]).astype(o_ref.dtype)


def neural_net_forward(x, w1, b1, w2, b2, *, tile_b=256, use_bf16=False):
    """Pallas equivalent of NeuralNet.forward: fc2(tanh(fc1(x))).

    x:  [B, 3072] f32
    w1: [3072, 500], b1: [1, 500], w2: [500, 10], b2: [1, 10]  (all f32)

    tile_b: batch tile per grid step (use multiples of 256 on v6e/v7x,
            128 on v5e; shrunk automatically for tiny batches).
    use_bf16: cast x / w1 / w2 to bfloat16 (halves the dominant weight DMA on
              v6e/v7x); accumulation stays float32.
    """
    B, F = x.shape
    assert F == INPUT_SIZE

    # --- zero-pad parameters to TPU-friendly shapes (exact math preserved) ---
    w1p = jnp.zeros((INPUT_SIZE, HIDDEN_PAD), jnp.float32).at[:, :HIDDEN_SIZE].set(w1)
    b1p = jnp.zeros((1, HIDDEN_PAD), jnp.float32).at[:, :HIDDEN_SIZE].set(b1)
    w2p = jnp.zeros((HIDDEN_PAD, OUT_PAD), jnp.float32).at[:HIDDEN_SIZE, :NUM_CLASSES].set(w2)
    b2p = jnp.zeros((1, OUT_PAD), jnp.float32).at[:, :NUM_CLASSES].set(b2)

    # --- batch tiling: pad B up to a multiple of the tile ---
    tb = min(tile_b, _round_up(B, 8))
    b_pad = _round_up(B, tb)
    xp = x
    if b_pad != B:
        xp = jnp.zeros((b_pad, INPUT_SIZE), x.dtype).at[:B].set(x)

    if use_bf16:
        xp = xp.astype(jnp.bfloat16)
        w1p = w1p.astype(jnp.bfloat16)
        w2p = w2p.astype(jnp.bfloat16)

    grid = (b_pad // tb,)
    out = pl.pallas_call(
        mlp_kernel,
        out_shape=jax.ShapeDtypeStruct((b_pad, OUT_PAD), jnp.float32),
        grid_spec=pltpu.PrefetchScalarGridSpec(
            num_scalar_prefetch=0,
            grid=grid,
            in_specs=[
                # x tiles stream with the grid (pipelined under MXU compute)
                pl.BlockSpec((tb, INPUT_SIZE), lambda i: (i, 0)),
                # weights/biases: constant index_map -> VMEM-resident across steps
                pl.BlockSpec((INPUT_SIZE, HIDDEN_PAD), lambda i: (0, 0)),
                pl.BlockSpec((1, HIDDEN_PAD), lambda i: (0, 0)),
                pl.BlockSpec((HIDDEN_PAD, OUT_PAD), lambda i: (0, 0)),
                pl.BlockSpec((1, OUT_PAD), lambda i: (0, 0)),
            ],
            out_specs=pl.BlockSpec((tb, OUT_PAD), lambda i: (i, 0)),
        ),
        compiler_params=pltpu.CompilerParams(
            # parallel batch axis: shards across the 2 TensorCores on v7x
            dimension_semantics=("parallel",),
            # ~20 MiB worst case (f32, tb=256, double-buffered x/out) + headroom
            vmem_limit_bytes=32 << 20,
        ),
    )(xp, w1p, b1p, w2p, b2p)

    # slice off batch padding and the lane-dense class padding
    return out[:B, :NUM_CLASSES]
    # TODO(synk): for repeated small-batch inference with static weights, keep
    # weights VMEM-resident across pallas_calls (P10 cross-call future) instead
    # of re-DMAing them every forward.


def init_params(key):
    """Deterministic init matching nn.Linear default (uniform ±1/sqrt(fan_in))."""
    k1, k2, k3, k4 = jax.random.split(key, 4)
    bound1 = 1.0 / jnp.sqrt(jnp.float32(INPUT_SIZE))
    bound2 = 1.0 / jnp.sqrt(jnp.float32(HIDDEN_SIZE))
    w1 = jax.random.uniform(k1, (INPUT_SIZE, HIDDEN_SIZE), jnp.float32, -bound1, bound1)
    b1 = jax.random.uniform(k2, (1, HIDDEN_SIZE), jnp.float32, -bound1, bound1)
    w2 = jax.random.uniform(k3, (HIDDEN_SIZE, NUM_CLASSES), jnp.float32, -bound2, bound2)
    b2 = jax.random.uniform(k4, (1, NUM_CLASSES), jnp.float32, -bound2, bound2)
    return w1, b1, w2, b2


if __name__ == "__main__":
    key = jax.random.PRNGKey(0)
    kx, kp = jax.random.split(key)
    w1, b1, w2, b2 = init_params(kp)

    # --- small-shape check (single tile, f32) ---
    batch = 8
    x = jax.random.normal(kx, (batch, INPUT_SIZE), jnp.float32)
    ref = jnp.tanh(x @ w1 + b1) @ w2 + b2

    out = jax.block_until_ready(neural_net_forward(x, w1, b1, w2, b2))
    assert out.shape == (batch, NUM_CLASSES)
    assert jnp.allclose(out, ref, atol=1e-3, rtol=1e-3)

    # --- multi-tile grid path (exercises batch tiling + resident weights) ---
    big = 512
    xb = jax.random.normal(jax.random.PRNGKey(1), (big, INPUT_SIZE), jnp.float32)
    refb = jnp.tanh(xb @ w1 + b1) @ w2 + b2
    outb = jax.block_until_ready(
        neural_net_forward(xb, w1, b1, w2, b2, tile_b=256))
    assert outb.shape == (big, NUM_CLASSES)
    assert jnp.allclose(outb, refb, atol=1e-3, rtol=1e-3)

    # --- bf16 weight path (halves the dominant w1 DMA); looser tolerance ---
    outbf = jax.block_until_ready(
        neural_net_forward(xb, w1, b1, w2, b2, tile_b=256, use_bf16=True))
    assert jnp.allclose(outbf, refb, atol=5e-2, rtol=5e-2)

    print("KERNEL_OK")
</pallas_src>

<mosaic_0001>
module attributes {stable_mosaic.version = 11 : i64} {
  func.func @mlp_kernel(%arg0: i32, %arg1: memref<8x3072xf32, #tpu.memory_space<vmem>>, %arg2: memref<3072x512xf32, #tpu.memory_space<vmem>>, %arg3: memref<1x512xf32, #tpu.memory_space<vmem>>, %arg4: memref<512x128xf32, #tpu.memory_space<vmem>>, %arg5: memref<1x128xf32, #tpu.memory_space<vmem>>, %arg6: memref<8x128xf32, #tpu.memory_space<vmem>>) attributes {dimension_semantics = [#tpu.dimension_semantics<parallel>], iteration_bounds = array<i64: 1>, scalar_prefetch = 0 : i64, scratch_operands = 0 : i64, tpu.core_type = #tpu.core_type<tc>, window_params = [{transform_indices = @transform_0, window_bounds = array<i64: 8, 3072>}, {pipeline_mode = #tpu.pipeline_mode<synchronous>, transform_indices = @transform_1, window_bounds = array<i64: 3072, 512>}, {pipeline_mode = #tpu.pipeline_mode<synchronous>, transform_indices = @transform_2, window_bounds = array<i64: 1, 512>}, {pipeline_mode = #tpu.pipeline_mode<synchronous>, transform_indices = @transform_3, window_bounds = array<i64: 512, 128>}, {pipeline_mode = #tpu.pipeline_mode<synchronous>, transform_indices = @transform_4, window_bounds = array<i64: 1, 128>}, {transform_indices = @transform_5, window_bounds = array<i64: 8, 128>}]} {
    %c0 = arith.constant 0 : index
    %c0_0 = arith.constant 0 : index
    %0 = vector.load %arg1[%c0, %c0_0] : memref<8x3072xf32, #tpu.memory_space<vmem>>, vector<8x3072xf32>
    %c0_1 = arith.constant 0 : index
    %c0_2 = arith.constant 0 : index
    %1 = vector.load %arg2[%c0_1, %c0_2] : memref<3072x512xf32, #tpu.memory_space<vmem>>, vector<3072x512xf32>
    %cst = arith.constant dense<0.000000e+00> : vector<8x512xf32>
    %2 = tpu.matmul %0, %1, %cst {dimension_numbers = #tpu.dot_dimension_numbers<[1], [0], [0], [1], [0, 0, 1, 1], [], []>} : vector<8x3072xf32>, vector<3072x512xf32>, vector<8x512xf32> -> vector<8x512xf32>
    %c0_3 = arith.constant 0 : index
    %c0_4 = arith.constant 0 : index
    %3 = vector.load %arg3[%c0_3, %c0_4] : memref<1x512xf32, #tpu.memory_space<vmem>>, vector<1x512xf32>
    %4 = vector.broadcast %3 : vector<1x512xf32> to vector<8x512xf32>
    %5 = arith.addf %2, %4 : vector<8x512xf32>
    %6 = math.tanh %5 : vector<8x512xf32>
    %c0_5 = arith.constant 0 : index
    %c0_6 = arith.constant 0 : index
    %7 = vector.load %arg4[%c0_5, %c0_6] : memref<512x128xf32, #tpu.memory_space<vmem>>, vector<512x128xf32>
    %cst_7 = arith.constant dense<0.000000e+00> : vector<8x128xf32>
    %8 = tpu.matmul %6, %7, %cst_7 {dimension_numbers = #tpu.dot_dimension_numbers<[1], [0], [0], [1], [0, 0, 1, 1], [], []>} : vector<8x512xf32>, vector<512x128xf32>, vector<8x128xf32> -> vector<8x128xf32>
    %c0_8 = arith.constant 0 : index
    %c0_9 = arith.constant 0 : index
    %9 = vector.load %arg5[%c0_8, %c0_9] : memref<1x128xf32, #tpu.memory_space<vmem>>, vector<1x128xf32>
    %10 = vector.broadcast %9 : vector<1x128xf32> to vector<8x128xf32>
    %11 = arith.addf %8, %10 : vector<8x128xf32>
    %c0_10 = arith.constant 0 : index
    %c0_11 = arith.constant 0 : index
    %12 = vector.load %arg6[%c0_10, %c0_11] : memref<8x128xf32, #tpu.memory_space<vmem>>, vector<8x128xf32>
    tpu.vector_store %arg6[%c0_10, %c0_11], %11 {strides = array<i32>} : memref<8x128xf32, #tpu.memory_space<vmem>>, vector<8x128xf32>,
    return
  }
  func.func @transform_0(%arg0: i32) -> (i32, i32) {
    %c0_i32 = arith.constant 0 : i32
    %c0_i32_0 = arith.constant 0 : i32
    return %arg0, %c0_i32 : i32, i32
  }
  func.func @transform_1(%arg0: i32) -> (i32, i32) {
    %c0_i32 = arith.constant 0 : i32
    %c0_i32_0 = arith.constant 0 : i32
    %c0_i32_1 = arith.constant 0 : i32
    return %c0_i32, %c0_i32_0 : i32, i32
  }
  func.func @transform_2(%arg0: i32) -> (i32, i32) {
    %c0_i32 = arith.constant 0 : i32
    %c0_i32_0 = arith.constant 0 : i32
    %c0_i32_1 = arith.constant 0 : i32
    return %c0_i32, %c0_i32_0 : i32, i32
  }
  func.func @transform_3(%arg0: i32) -> (i32, i32) {
    %c0_i32 = arith.constant 0 : i32
    %c0_i32_0 = arith.constant 0 : i32
    %c0_i32_1 = arith.constant 0 : i32
    return %c0_i32, %c0_i32_0 : i32, i32
  }
  func.func @transform_4(%arg0: i32) -> (i32, i32) {
    %c0_i32 = arith.constant 0 : i32
    %c0_i32_0 = arith.constant 0 : i32
    %c0_i32_1 = arith.constant 0 : i32
    return %c0_i32, %c0_i32_0 : i32, i32
  }
  func.func @transform_5(%arg0: i32) -> (i32, i32) {
    %c0_i32 = arith.constant 0 : i32
    %c0_i32_0 = arith.constant 0 : i32
    return %arg0, %c0_i32 : i32, i32
  }
}

</mosaic_0001>

<bundles_post_ra>
// kernel: tpu_custom_call.1
= control target key start
LH: loop header
LB: loop body
LE: loop exit
PB: predicated region body
PF: predicated region fallthrough
CT: control target
= control target key end

     0   :  { %10 = vsyncpa [#allocation3], 0  ;;  %s4155_s0 = inlined_call_operand.hbm [shape: f32[8,3072], index: 0, kind: input, shape index: {}]   ;;  %s4156_s1 = inlined_call_operand.hbm [shape: f32[3072,512], index: 1, kind: input, shape index: {}]   ;;  %s4157_s2 = inlined_call_operand.hbm [shape: f32[1,512], index: 2, kind: input, shape index: {}]   ;;  %s4158_s3 = inlined_call_operand.hbm [shape: f32[512,128], index: 3, kind: input, shape index: {}]   ;;  %s4159_s4 = inlined_call_operand.hbm [shape: f32[1,128], index: 4, kind: input, shape index: {}]   ;;  %s4160_s5 = inlined_call_operand.hbm [shape: f32[8,128], index: 5, kind: output, shape index: {}]  }
   0x1   :  { %11 = vsyncpa [#allocation6], 0 }
   0x2   :  { %12 = vsyncpa [#allocation9], 0  ;;  %s29_s20 = sshll.u32 %s4156_s1, 4  ;;  %s30_s20 = int_to_ptr.hbm [resolvable:$true] %s29_s20 }
   0x3   :  { %13 = vsyncpa [#allocation4], 0  ;;  %s3999_s21 = smov [#allocation5]   ;;  %s53_s25 = sshll.u32 %s4158_s3, 4  ;;  %s54_s25 = int_to_ptr.hbm [resolvable:$true] %s53_s25 }
   0x4   :  { %s31_s22 = sshll.u32 %s3999_s21, 4  ;;  %s4000_s26 = smov 512   ;;  %s32_s22 = int_to_ptr.vmem [resolvable:$true] %s31_s22 }
   0x5   :  { %s4001_s27 = smov 32   ;;  %s4002_s28 = smov [#allocation8]  }
   0x6   :  { %37 = dma.hbm_to_vmem [thread:$0]  %s30_s20, 196608, %s32_s22, [#allocation6], %s4000_s26, %s4000_s26, %s4001_s27  }
   0x7   :  { %s55_s29 = sshll.u32 %s4002_s28, 4  ;;  %s4003_s30 = smov 128   ;;  %s56_s29 = int_to_ptr.vmem [resolvable:$true] %s55_s29 }
   0x8   :  { %s4004_s6 = smov 8   ;;  %s19_s8 = sshll.u32 %s4155_s0, 4  ;;  %s20_s8 = int_to_ptr.hbm [resolvable:$true] %s19_s8 }
   0x9   :  { %61 = dma.hbm_to_vmem [thread:$0]  %s54_s25, 8192, %s56_s29, [#allocation9], %s4003_s30, %s4003_s30, %s4004_s6  }
   0xa   :  { %s4005_s9 = smov [#allocation2]   ;;  %s43_s12 = sshll.u32 %s4157_s2, 4  ;;  %s44_s12 = int_to_ptr.hbm [resolvable:$true] %s43_s12 }
   0xb   :  { %s21_s10 = sshll.u32 %s4005_s9, 4  ;;  %s4006_s13 = smov [#allocation7]   ;;  %s22_s10 = int_to_ptr.vmem [resolvable:$true] %s21_s10 }
   0xc   :  { %24 = dma.hbm_to_vmem [thread:$0]  %s20_s8, 3072, %s22_s10, [#allocation3]  }
   0xd   :  { %s45_s14 = sshll.u32 %s4006_s13, 4  ;;  %s67_s17 = sshll.u32 %s4159_s4, 4  ;;  %s46_s14 = int_to_ptr.vmem [resolvable:$true] %s45_s14  ;;  %s68_s17 = int_to_ptr.hbm [resolvable:$true] %s67_s17 }
   0xe   :  { %48 = dma.hbm_to_vmem [thread:$0]  %s44_s12, 64, %s46_s14, [#allocation6]  }
   0xf   :  { %s4007_s0 = smov [#allocation10]  }
  0x10   :  { %s69_s18 = sshll.u32 %s4007_s0, 4  ;;  %s70_s18 = int_to_ptr.vmem [resolvable:$true] %s69_s18 }
  0x11   :  { %72 = dma.hbm_to_vmem [thread:$0]  %s68_s17, 16, %s70_s18, [#allocation9]  }
  0x12   :  { %3991 = dma.done.wait [#allocation3], 3072  }
  0x13   :  { %3992 = vsyncadd [#allocation3], 4294964224 }
  0x14   :  { %3993 = dma.done.wait [#allocation6], 196672  }
  0x15   :  { %3994 = vsyncadd [#allocation6], 4294770624 }
  0x16   :  { %3995 = dma.done.wait [#allocation9], 8208  }
  0x17   :  { %3996 = vsyncadd [#allocation9], 4294959088  ;;  %v177_v0 = vld [vmem:[#allocation5 + $0x1e0] sm:$0xff]  ;;  %s4008_s2 = smov [#allocation11]   ;;  %s3743_s21 = sshll.u32 %s4160_s5, 4  ;;  %s3744_s21 = int_to_ptr.hbm [resolvable:$true] %s3743_s21 }
  0x18   :  { %v241_v1 = vld [vmem:[#allocation5 + $0x3e0] sm:$0xff]  ;;  %1663 = vmatpush.msra.mxu0 %v177_v0  ;;  %s3741_s4 = sshll.u32 %s4008_s2, 4  ;;  %s3742_s4 = int_to_ptr.vmem [resolvable:$true] %s3741_s4 }
  0x19   :  { %v305_v2 = vld [vmem:[#allocation5 + $0x5e0] sm:$0xff]  ;;  %1683 = vmatpush.msra.mxu1 %v241_v1 }
  0x1a   :  { %v173_v3 = vld [vmem:[#allocation5 + $0x1c0] sm:$0xff]  ;;  %1703 = vmatpush.msra.mxu2 %v305_v2 }
  0x1b   :  { %v237_v4 = vld [vmem:[#allocation5 + $0x3c0] sm:$0xff]  ;;  %1664 = vmatpush.msra.mxu0 %v173_v3 }
  0x1c   :  { %v301_v5 = vld [vmem:[#allocation5 + $0x5c0] sm:$0xff]  ;;  %1684 = vmatpush.msra.mxu1 %v237_v4 }
  0x1d   :  { %v369_v6 = vld [vmem:[#allocation5 + $0x7e0] sm:$0xff]  ;;  %1704 = vmatpush.msra.mxu2 %v301_v5 }
  0x1e   :  { %v169_v7 = vld [vmem:[#allocation5 + $0x1a0] sm:$0xff]  ;;  %1723 = vmatpush.msra.mxu3 %v369_v6 }
  0x1f   :  { %v233_v8 = vld [vmem:[#allocation5 + $0x3a0] sm:$0xff]  ;;  %1665 = vmatpush.msra.mxu0 %v169_v7 }
  0x20   :  { %v297_v9 = vld [vmem:[#allocation5 + $0x5a0] sm:$0xff]  ;;  %1685 = vmatpush.msra.mxu1 %v233_v8 }
  0x21   :  { %v365_v10 = vld [vmem:[#allocation5 + $0x7c0] sm:$0xff]  ;;  %1705 = vmatpush.msra.mxu2 %v297_v9 }
  0x22   :  { %v165_v11 = vld [vmem:[#allocation5 + $0x180] sm:$0xff]  ;;  %1724 = vmatpush.msra.mxu3 %v365_v10 }
  0x23   :  { %v229_v12 = vld [vmem:[#allocation5 + $0x380] sm:$0xff]  ;;  %1666 = vmatpush.msra.mxu0 %v165_v11 }
  0x24   :  { %v293_v13 = vld [vmem:[#allocation5 + $0x580] sm:$0xff]  ;;  %1686 = vmatpush.msra.mxu1 %v229_v12 }
  0x25   :  { %v361_v14 = vld [vmem:[#allocation5 + $0x7a0] sm:$0xff]  ;;  %1706 = vmatpush.msra.mxu2 %v293_v13 }
  0x26   :  { %v161_v15 = vld [vmem:[#allocation5 + $0x160] sm:$0xff]  ;;  %1725 = vmatpush.msra.mxu3 %v361_v14 }
  0x27   :  { %v225_v16 = vld [vmem:[#allocation5 + $0x360] sm:$0xff]  ;;  %1667 = vmatpush.msra.mxu0 %v161_v15 }
  0x28   :  { %v289_v17 = vld [vmem:[#allocation5 + $0x560] sm:$0xff]  ;;  %1687 = vmatpush.msra.mxu1 %v225_v16 }
  0x29   :  { %v357_v18 = vld [vmem:[#allocation5 + $0x780] sm:$0xff]  ;;  %1707 = vmatpush.msra.mxu2 %v289_v17 }
  0x2a   :  { %v157_v19 = vld [vmem:[#allocation5 + $0x140] sm:$0xff]  ;;  %1726 = vmatpush.msra.mxu3 %v357_v18 }
  0x2b   :  { %v221_v20 = vld [vmem:[#allocation5 + $0x340] sm:$0xff]  ;;  %1668 = vmatpush.msra.mxu0 %v157_v19 }
  0x2c   :  { %v285_v21 = vld [vmem:[#allocation5 + $0x540] sm:$0xff]  ;;  %1688 = vmatpush.msra.mxu1 %v221_v20 }
  0x2d   :  { %v353_v22 = vld [vmem:[#allocation5 + $0x760] sm:$0xff]  ;;  %1708 = vmatpush.msra.mxu2 %v285_v21 }
  0x2e   :  { %v153_v23 = vld [vmem:[#allocation5 + $0x120] sm:$0xff]  ;;  %1727 = vmatpush.msra.mxu3 %v353_v22 }
  0x2f   :  { %v217_v24 = vld [vmem:[#allocation5 + $0x320] sm:$0xff]  ;;  %1669 = vmatpush.msra.mxu0 %v153_v23 }
  0x30   :  { %v281_v25 = vld [vmem:[#allocation5 + $0x520] sm:$0xff]  ;;  %1689 = vmatpush.msra.mxu1 %v217_v24 }
  0x31   :  { %v349_v26 = vld [vmem:[#allocation5 + $0x740] sm:$0xff]  ;;  %1709 = vmatpush.msra.mxu2 %v281_v25 }
  0x32   :  { %v149_v27 = vld [vmem:[#allocation5 + $0x100] sm:$0xff]  ;;  %1728 = vmatpush.msra.mxu3 %v349_v26 }
  0x33   :  { %v213_v28 = vld [vmem:[#allocation5 + $0x300] sm:$0xff]  ;;  %1670 = vmatpush.msra.mxu0 %v149_v27 }
  0x34   :  { %v277_v29 = vld [vmem:[#allocation5 + $0x500] sm:$0xff]  ;;  %1690 = vmatpush.msra.mxu1 %v213_v28 }
  0x35   :  { %v345_v30 = vld [vmem:[#allocation5 + $0x720] sm:$0xff]  ;;  %1710 = vmatpush.msra.mxu2 %v277_v29 }
  0x36   :  { %v145_v31 = vld [vmem:[#allocation5 + $0xe0] sm:$0xff]  ;;  %1729 = vmatpush.msra.mxu3 %v345_v30 }
  0x37   :  { %v209_v32 = vld [vmem:[#allocation5 + $0x2e0] sm:$0xff]  ;;  %1671 = vmatpush.msra.mxu0 %v145_v31 }
  0x38   :  { %v273_v33 = vld [vmem:[#allocation5 + $0x4e0] sm:$0xff]  ;;  %1691 = vmatpush.msra.mxu1 %v209_v32 }
  0x39   :  { %v341_v34 = vld [vmem:[#allocation5 + $0x700] sm:$0xff]  ;;  %1711 = vmatpush.msra.mxu2 %v273_v33 }
  0x3a   :  { %v141_v35 = vld [vmem:[#allocation5 + $0xc0] sm:$0xff]  ;;  %1730 = vmatpush.msra.mxu3 %v341_v34 }
  0x3b   :  { %v205_v36 = vld [vmem:[#allocation5 + $0x2c0] sm:$0xff]  ;;  %1672 = vmatpush.msra.mxu0 %v141_v35 }
  0x3c   :  { %v269_v37 = vld [vmem:[#allocation5 + $0x4c0] sm:$0xff]  ;;  %1692 = vmatpush.msra.mxu1 %v205_v36 }
  0x3d   :  { %v337_v38 = vld [vmem:[#allocation5 + $0x6e0] sm:$0xff]  ;;  %1712 = vmatpush.msra.mxu2 %v269_v37 }
  0x3e   :  { %v137_v39 = vld [vmem:[#allocation5 + $0xa0] sm:$0xff]  ;;  %1731 = vmatpush.msra.mxu3 %v337_v38 }
  0x3f   :  { %v201_v40 = vld [vmem:[#allocation5 + $0x2a0] sm:$0xff]  ;;  %1673 = vmatpush.msra.mxu0 %v137_v39 }
  0x40   :  { %v265_v41 = vld [vmem:[#allocation5 + $0x4a0] sm:$0xff]  ;;  %1693 = vmatpush.msra.mxu1 %v201_v40 }
  0x41   :  { %v333_v42 = vld [vmem:[#allocation5 + $0x6c0] sm:$0xff]  ;;  %1713 = vmatpush.msra.mxu2 %v265_v41 }
  0x42   :  { %v133_v43 = vld [vmem:[#allocation5 + $0x80] sm:$0xff]  ;;  %1732 = vmatpush.msra.mxu3 %v333_v42 }
  0x43   :  { %v197_v44 = vld [vmem:[#allocation5 + $0x280] sm:$0xff]  ;;  %1674 = vmatpush.msra.mxu0 %v133_v43 }
  0x44   :  { %v261_v45 = vld [vmem:[#allocation5 + $0x480] sm:$0xff]  ;;  %1694 = vmatpush.msra.mxu1 %v197_v44 }
  0x45   :  { %v329_v46 = vld [vmem:[#allocation5 + $0x6a0] sm:$0xff]  ;;  %1714 = vmatpush.msra.mxu2 %v261_v45 }
  0x46   :  { %v129_v47 = vld [vmem:[#allocation5 + $0x60] sm:$0xff]  ;;  %1733 = vmatpush.msra.mxu3 %v329_v46 }
  0x47   :  { %v193_v48 = vld [vmem:[#allocation5 + $0x260] sm:$0xff]  ;;  %1675 = vmatpush.msra.mxu0 %v129_v47 }
  0x48   :  { %v257_v49 = vld [vmem:[#allocation5 + $0x460] sm:$0xff]  ;;  %1695 = vmatpush.msra.mxu1 %v193_v48 }
  0x49   :  { %v325_v50 = vld [vmem:[#allocation5 + $0x680] sm:$0xff]  ;;  %1715 = vmatpush.msra.mxu2 %v257_v49 }
  0x4a   :  { %v125_v51 = vld [vmem:[#allocation5 + $0x40] sm:$0xff]  ;;  %1734 = vmatpush.msra.mxu3 %v325_v50 }
  0x4b   :  { %v189_v52 = vld [vmem:[#allocation5 + $0x240] sm:$0xff]  ;;  %1676 = vmatpush.msra.mxu0 %v125_v51 }
  0x4c   :  { %v253_v53 = vld [vmem:[#allocation5 + $0x440] sm:$0xff]  ;;  %1696 = vmatpush.msra.mxu1 %v189_v52 }
  0x4d   :  { %v321_v54 = vld [vmem:[#allocation5 + $0x660] sm:$0xff]  ;;  %1716 = vmatpush.msra.mxu2 %v253_v53 }
  0x4e   :  { %v121_v55 = vld [vmem:[#allocation5 + $0x20] sm:$0xff]  ;;  %1735 = vmatpush.msra.mxu3 %v321_v54 }
  0x4f   :  { %v185_v56 = vld [vmem:[#allocation5 + $0x220] sm:$0xff]  ;;  %1677 = vmatpush.msra.mxu0 %v121_v55 }
  0x50   :  { %v249_v57 = vld [vmem:[#allocation5 + $0x420] sm:$0xff]  ;;  %1697 = vmatpush.msra.mxu1 %v185_v56 }
  0x51   :  { %v317_v58 = vld [vmem:[#allocation5 + $0x640] sm:$0xff]  ;;  %1717 = vmatpush.msra.mxu2 %v249_v57 }
  0x52   :  { %v117_v59 = vld [vmem:[#allocation5] sm:$0xff]  ;;  %1736 = vmatpush.msra.mxu3 %v317_v58 }
  0x53   :  { %v181_v60 = vld [vmem:[#allocation5 + $0x200] sm:$0xff]  ;;  %1678 = vmatpush.msra.mxu0 %v117_v59 }
  0x54   :  { %v245_v61 = vld [vmem:[#allocation5 + $0x400] sm:$0xff]  ;;  %1698 = vmatpush.msra.mxu1 %v181_v60 }
  0x55   :  { %v313_v62 = vld [vmem:[#allocation5 + $0x620] sm:$0xff]  ;;  %1718 = vmatpush.msra.mxu2 %v245_v61 }
  0x56   :  { %v433_v63 = vld [vmem:[#allocation5 + $0x9e0] sm:$0xff]  ;;  %1737 = vmatpush.msra.mxu3 %v313_v62 }
  0x57   :  { %v497_v0 = vld [vmem:[#allocation5 + $0xbe0] sm:$0xff]  ;;  %1743 = vmatpush.msrb.mxu0 %v433_v63 }
  0x58   :  { %v561_v1 = vld [vmem:[#allocation5 + $0xde0] sm:$0xff]  ;;  %1763 = vmatpush.msrb.mxu1 %v497_v0  ;;  %v94_v0 = vld [vmem:[#allocation2 + $0x8] sm:$0xff] }
  0x59   :  { %v309_v2 = vld [vmem:[#allocation5 + $0x600] sm:$0xff]  ;;  %1783 = vmatpush.msrb.mxu2 %v561_v1  ;;  %v95_v1 = vld [vmem:[#allocation2 + $0x10] sm:$0xff]  ;;  %1699 = vmatmul.f32.vlgmr.msra.gmra.mxu1 %v94_v0 }
  0x5a   :  { %v429_v3 = vld [vmem:[#allocation5 + $0x9c0] sm:$0xff]  ;;  %1738 = vmatpush.msra.mxu3 %v309_v2  ;;  %1719 = vmatmul.f32.vlgmr.msra.gmra.mxu2 %v95_v1 }
  0x5b   :  { %v493_v4 = vld [vmem:[#allocation5 + $0xbc0] sm:$0xff]  ;;  %1744 = vmatpush.msrb.mxu0 %v429_v3 }
  0x5c   :  { %v557_v5 = vld [vmem:[#allocation5 + $0xdc0] sm:$0xff]  ;;  %1764 = vmatpush.msrb.mxu1 %v493_v4 }
  0x5d   :  { %v625_v6 = vld [vmem:[#allocation5 + $0xfe0] sm:$0xff]  ;;  %1784 = vmatpush.msrb.mxu2 %v557_v5 }
  0x5e   :  { %v425_v7 = vld [vmem:[#allocation5 + $0x9a0] sm:$0xff]  ;;  %1803 = vmatpush.msrb.mxu3 %v625_v6 }
  0x5f   :  { %v489_v8 = vld [vmem:[#allocation5 + $0xba0] sm:$0xff]  ;;  %1745 = vmatpush.msrb.mxu0 %v425_v7  ;;  %v96_v7 = vld [vmem:[#allocation2 + $0x18] sm:$0xff] }
  0x60   :  { %v553_v9 = vld [vmem:[#allocation5 + $0xda0] sm:$0xff]  ;;  %1765 = vmatpush.msrb.mxu1 %v489_v8  ;;  %1739 = vmatmul.f32.vlgmr.msra.gmra.mxu3 %v96_v7 }
  0x61   :  { %v621_v10 = vld [vmem:[#allocation5 + $0xfc0] sm:$0xff]  ;;  %1785 = vmatpush.msrb.mxu2 %v553_v9 }
  0x62   :  { %v421_v11 = vld [vmem:[#allocation5 + $0x980] sm:$0xff]  ;;  %1804 = vmatpush.msrb.mxu3 %v621_v10 }
  0x63   :  { %v485_v12 = vld [vmem:[#allocation5 + $0xb80] sm:$0xff]  ;;  %1746 = vmatpush.msrb.mxu0 %v421_v11 }
  0x64   :  { %v549_v13 = vld [vmem:[#allocation5 + $0xd80] sm:$0xff]  ;;  %1766 = vmatpush.msrb.mxu1 %v485_v12 }
  0x65   :  { %v617_v14 = vld [vmem:[#allocation5 + $0xfa0] sm:$0xff]  ;;  %1786 = vmatpush.msrb.mxu2 %v549_v13 }
  0x66   :  { %v417_v15 = vld [vmem:[#allocation5 + $0x960] sm:$0xff]  ;;  %1805 = vmatpush.msrb.mxu3 %v617_v14 }
  0x67   :  { %v481_v16 = vld [vmem:[#allocation5 + $0xb60] sm:$0xff]  ;;  %1747 = vmatpush.msrb.mxu0 %v417_v15 }
  0x68   :  { %v545_v17 = vld [vmem:[#allocation5 + $0xd60] sm:$0xff]  ;;  %1767 = vmatpush.msrb.mxu1 %v481_v16 }
  0x69   :  { %v613_v18 = vld [vmem:[#allocation5 + $0xf80] sm:$0xff]  ;;  %1787 = vmatpush.msrb.mxu2 %v545_v17 }
  0x6a   :  { %v413_v19 = vld [vmem:[#allocation5 + $0x940] sm:$0xff]  ;;  %1806 = vmatpush.msrb.mxu3 %v613_v18 }
  0x6b   :  { %v477_v20 = vld [vmem:[#allocation5 + $0xb40] sm:$0xff]  ;;  %1748 = vmatpush.msrb.mxu0 %v413_v19  ;;  %v99_v19 = vld [vmem:[#allocation2 + $0x30] sm:$0xff] }
  0x6c   :  { %v541_v21 = vld [vmem:[#allocation5 + $0xd40] sm:$0xff]  ;;  %1768 = vmatpush.msrb.mxu1 %v477_v20 }
  0x6d   :  { %v609_v22 = vld [vmem:[#allocation5 + $0xf60] sm:$0xff]  ;;  %1788 = vmatpush.msrb.mxu2 %v541_v21 }
  0x6e   :  { %v409_v23 = vld [vmem:[#allocation5 + $0x920] sm:$0xff]  ;;  %1807 = vmatpush.msrb.mxu3 %v609_v22 }
  0x6f   :  { %v473_v24 = vld [vmem:[#allocation5 + $0xb20] sm:$0xff]  ;;  %1749 = vmatpush.msrb.mxu0 %v409_v23 }
  0x70   :  { %v537_v25 = vld [vmem:[#allocation5 + $0xd20] sm:$0xff]  ;;  %1769 = vmatpush.msrb.mxu1 %v473_v24 }
  0x71   :  { %v605_v26 = vld [vmem:[#allocation5 + $0xf40] sm:$0xff]  ;;  %1789 = vmatpush.msrb.mxu2 %v537_v25  ;;  %v100_v25 = vld [vmem:[#allocation2 + $0x38] sm:$0xff] }
  0x72   :  { %v405_v27 = vld [vmem:[#allocation5 + $0x900] sm:$0xff]  ;;  %1808 = vmatpush.msrb.mxu3 %v605_v26 }
  0x73   :  { %v469_v28 = vld [vmem:[#allocation5 + $0xb00] sm:$0xff]  ;;  %1750 = vmatpush.msrb.mxu0 %v405_v27 }
  0x74   :  { %v533_v29 = vld [vmem:[#allocation5 + $0xd00] sm:$0xff]  ;;  %1770 = vmatpush.msrb.mxu1 %v469_v28 }
  0x75   :  { %v601_v30 = vld [vmem:[#allocation5 + $0xf20] sm:$0xff]  ;;  %1790 = vmatpush.msrb.mxu2 %v533_v29 }
  0x76   :  { %v401_v31 = vld [vmem:[#allocation5 + $0x8e0] sm:$0xff]  ;;  %1809 = vmatpush.msrb.mxu3 %v601_v30  ;;  %v98_v30 = vld [vmem:[#allocation2 + $0x28] sm:$0xff] }
  0x77   :  { %v465_v32 = vld [vmem:[#allocation5 + $0xae0] sm:$0xff]  ;;  %1751 = vmatpush.msrb.mxu0 %v401_v31 }
  0x78   :  { %v529_v33 = vld [vmem:[#allocation5 + $0xce0] sm:$0xff]  ;;  %1771 = vmatpush.msrb.mxu1 %v465_v32 }
  0x79   :  { %v597_v34 = vld [vmem:[#allocation5 + $0xf00] sm:$0xff]  ;;  %1791 = vmatpush.msrb.mxu2 %v529_v33 }
  0x7a   :  { %v397_v35 = vld [vmem:[#allocation5 + $0x8c0] sm:$0xff]  ;;  %1810 = vmatpush.msrb.mxu3 %v597_v34 }
  0x7b   :  { %v461_v36 = vld [vmem:[#allocation5 + $0xac0] sm:$0xff]  ;;  %1752 = vmatpush.msrb.mxu0 %v397_v35 }
  0x7c   :  { %v525_v37 = vld [vmem:[#allocation5 + $0xcc0] sm:$0xff]  ;;  %1772 = vmatpush.msrb.mxu1 %v461_v36 }
  0x7d   :  { %v593_v38 = vld [vmem:[#allocation5 + $0xee0] sm:$0xff]  ;;  %1792 = vmatpush.msrb.mxu2 %v525_v37 }
  0x7e   :  { %v393_v39 = vld [vmem:[#allocation5 + $0x8a0] sm:$0xff]  ;;  %1811 = vmatpush.msrb.mxu3 %v593_v38 }
  0x7f   :  { %v457_v40 = vld [vmem:[#allocation5 + $0xaa0] sm:$0xff]  ;;  %1753 = vmatpush.msrb.mxu0 %v393_v39 }
  0x80   :  { %v521_v41 = vld [vmem:[#allocation5 + $0xca0] sm:$0xff]  ;;  %1773 = vmatpush.msrb.mxu1 %v457_v40 }
  0x81   :  { %v589_v42 = vld [vmem:[#allocation5 + $0xec0] sm:$0xff]  ;;  %1793 = vmatpush.msrb.mxu2 %v521_v41 }
  0x82   :  { %v389_v43 = vld [vmem:[#allocation5 + $0x880] sm:$0xff]  ;;  %1812 = vmatpush.msrb.mxu3 %v589_v42 }
  0x83   :  { %v453_v44 = vld [vmem:[#allocation5 + $0xa80] sm:$0xff]  ;;  %1754 = vmatpush.msrb.mxu0 %v389_v43 }
  0x84   :  { %v517_v45 = vld [vmem:[#allocation5 + $0xc80] sm:$0xff]  ;;  %1774 = vmatpush.msrb.mxu1 %v453_v44 }
  0x85   :  { %v585_v46 = vld [vmem:[#allocation5 + $0xea0] sm:$0xff]  ;;  %1794 = vmatpush.msrb.mxu2 %v517_v45 }
  0x86   :  { %v385_v47 = vld [vmem:[#allocation5 + $0x860] sm:$0xff]  ;;  %1813 = vmatpush.msrb.mxu3 %v585_v46 }
  0x87   :  { %v449_v48 = vld [vmem:[#allocation5 + $0xa60] sm:$0xff]  ;;  %1755 = vmatpush.msrb.mxu0 %v385_v47 }
  0x88   :  { %v513_v49 = vld [vmem:[#allocation5 + $0xc60] sm:$0xff]  ;;  %1775 = vmatpush.msrb.mxu1 %v449_v48 }
  0x89   :  { %v581_v50 = vld [vmem:[#allocation5 + $0xe80] sm:$0xff]  ;;  %1795 = vmatpush.msrb.mxu2 %v513_v49 }
  0x8a   :  { %v381_v51 = vld [vmem:[#allocation5 + $0x840] sm:$0xff]  ;;  %1814 = vmatpush.msrb.mxu3 %v581_v50 }
  0x8b   :  { %v445_v52 = vld [vmem:[#allocation5 + $0xa40] sm:$0xff]  ;;  %1756 = vmatpush.msrb.mxu0 %v381_v51 }
  0x8c   :  { %v509_v53 = vld [vmem:[#allocation5 + $0xc40] sm:$0xff]  ;;  %1776 = vmatpush.msrb.mxu1 %v445_v52 }
  0x8d   :  { %v577_v54 = vld [vmem:[#allocation5 + $0xe60] sm:$0xff]  ;;  %1796 = vmatpush.msrb.mxu2 %v509_v53 }
  0x8e   :  { %v377_v55 = vld [vmem:[#allocation5 + $0x820] sm:$0xff]  ;;  %1815 = vmatpush.msrb.mxu3 %v577_v54 }
  0x8f   :  { %v441_v56 = vld [vmem:[#allocation5 + $0xa20] sm:$0xff]  ;;  %1757 = vmatpush.msrb.mxu0 %v377_v55 }
  0x90   :  { %v505_v57 = vld [vmem:[#allocation5 + $0xc20] sm:$0xff]  ;;  %1777 = vmatpush.msrb.mxu1 %v441_v56 }
  0x91   :  { %v573_v58 = vld [vmem:[#allocation5 + $0xe40] sm:$0xff]  ;;  %1797 = vmatpush.msrb.mxu2 %v505_v57 }
  0x92   :  { %v373_v59 = vld [vmem:[#allocation5 + $0x800] sm:$0xff]  ;;  %1816 = vmatpush.msrb.mxu3 %v573_v58 }
  0x93   :  { %v437_v60 = vld [vmem:[#allocation5 + $0xa00] sm:$0xff]  ;;  %1758 = vmatpush.msrb.mxu0 %v373_v59 }
  0x94   :  { %v501_v61 = vld [vmem:[#allocation5 + $0xc00] sm:$0xff]  ;;  %1778 = vmatpush.msrb.mxu1 %v437_v60 }
  0x95   :  { %v569_v62 = vld [vmem:[#allocation5 + $0xe20] sm:$0xff]  ;;  %1798 = vmatpush.msrb.mxu2 %v501_v61  ;;  %1779 = vmatmul.f32.vlgmr.msrb.gmra.mxu1 %v98_v30 }
  0x96   :  { %v93_v63 = vld [vmem:[#allocation2] sm:$0xff]  ;;  %1817 = vmatpush.msrb.mxu3 %v569_v62  ;;  %1799 = vmatmul.f32.vlgmr.msrb.gmra.mxu2 %v99_v19 }
  0x97   :  { %v689_v2 = vld [vmem:[#allocation5 + $0x11e0] sm:$0xff]  ;;  %1679 = vmatmul.f32.vlgmr.msra.gmra.mxu0 %v93_v63 }
  0x98   :  { %v753_v3 = vld [vmem:[#allocation5 + $0x13e0] sm:$0xff]  ;;  %1823 = vmatpush.msra.mxu0 %v689_v2 }
  0x99   :  { %v817_v4 = vld [vmem:[#allocation5 + $0x15e0] sm:$0xff]  ;;  %1843 = vmatpush.msra.mxu1 %v753_v3 }
  0x9a   :  { %v565_v5 = vld [vmem:[#allocation5 + $0xe00] sm:$0xff]  ;;  %1863 = vmatpush.msra.mxu2 %v817_v4 }
  0x9b   :  { %v685_v6 = vld [vmem:[#allocation5 + $0x11c0] sm:$0xff]  ;;  %1818 = vmatpush.msrb.mxu3 %v565_v5 }
  0x9c   :  { %v749_v8 = vld [vmem:[#allocation5 + $0x13c0] sm:$0xff]  ;;  %1824 = vmatpush.msra.mxu0 %v685_v6  ;;  %1819 = vmatmul.f32.vlgmr.msrb.gmra.mxu3 %v100_v25 }
  0x9d   :  { %v813_v9 = vld [vmem:[#allocation5 + $0x15c0] sm:$0xff]  ;;  %1844 = vmatpush.msra.mxu1 %v749_v8  ;;  %v103_v8 = vld [vmem:[#allocation2 + $0x50] sm:$0xff] }
  0x9e   :  { %v881_v10 = vld [vmem:[#allocation5 + $0x17e0] sm:$0xff]  ;;  %1864 = vmatpush.msra.mxu2 %v813_v9 }
  0x9f   :  { %v681_v11 = vld [vmem:[#allocation5 + $0x11a0] sm:$0xff]  ;;  %1883 = vmatpush.msra.mxu3 %v881_v10 }
  0xa0   :  { %v745_v12 = vld [vmem:[#allocation5 + $0x13a0] sm:$0xff]  ;;  %1825 = vmatpush.msra.mxu0 %v681_v11 }
  0xa1   :  { %v809_v13 = vld [vmem:[#allocation5 + $0x15a0] sm:$0xff]  ;;  %1845 = vmatpush.msra.mxu1 %v745_v12 }
  0xa2   :  { %v877_v14 = vld [vmem:[#allocation5 + $0x17c0] sm:$0xff]  ;;  %1865 = vmatpush.msra.mxu2 %v809_v13  ;;  %v102_v13 = vld [vmem:[#allocation2 + $0x48] sm:$0xff] }
  0xa3   :  { %v677_v15 = vld [vmem:[#allocation5 + $0x1180] sm:$0xff]  ;;  %1884 = vmatpush.msra.mxu3 %v877_v14  ;;  %v104_v14 = vld [vmem:[#allocation2 + $0x58] sm:$0xff] }
  0xa4   :  { %v741_v16 = vld [vmem:[#allocation5 + $0x1380] sm:$0xff]  ;;  %1826 = vmatpush.msra.mxu0 %v677_v15 }
  0xa5   :  { %v805_v17 = vld [vmem:[#allocation5 + $0x1580] sm:$0xff]  ;;  %1846 = vmatpush.msra.mxu1 %v741_v16 }
  0xa6   :  { %v873_v18 = vld [vmem:[#allocation5 + $0x17a0] sm:$0xff]  ;;  %1866 = vmatpush.msra.mxu2 %v805_v17 }
  0xa7   :  { %v673_v20 = vld [vmem:[#allocation5 + $0x1160] sm:$0xff]  ;;  %1885 = vmatpush.msra.mxu3 %v873_v18 }
  0xa8   :  { %v737_v21 = vld [vmem:[#allocation5 + $0x1360] sm:$0xff]  ;;  %1827 = vmatpush.msra.mxu0 %v673_v20 }
  0xa9   :  { %v801_v22 = vld [vmem:[#allocation5 + $0x1560] sm:$0xff]  ;;  %1847 = vmatpush.msra.mxu1 %v737_v21 }
  0xaa   :  { %v869_v23 = vld [vmem:[#allocation5 + $0x1780] sm:$0xff]  ;;  %1867 = vmatpush.msra.mxu2 %v801_v22 }
  0xab   :  { %v97_v24 = vld [vmem:[#allocation2 + $0x20] sm:$0xff]  ;;  %1886 = vmatpush.msra.mxu3 %v869_v23 }
  0xac   :  { %v669_v26 = vld [vmem:[#allocation5 + $0x1140] sm:$0xff]  ;;  %1759 = vmatmul.f32.vlgmr.msrb.gmra.mxu0 %v97_v24 }
  0xad   :  { %v733_v27 = vld [vmem:[#allocation5 + $0x1340] sm:$0xff]  ;;  %1828 = vmatpush.msra.mxu0 %v669_v26 }
  0xae   :  { %v797_v28 = vld [vmem:[#allocation5 + $0x1540] sm:$0xff]  ;;  %1848 = vmatpush.msra.mxu1 %v733_v27 }
  0xaf   :  { %v865_v29 = vld [vmem:[#allocation5 + $0x1760] sm:$0xff]  ;;  %1868 = vmatpush.msra.mxu2 %v797_v28 }
  0xb0   :  { %v665_v31 = vld [vmem:[#allocation5 + $0x1120] sm:$0xff]  ;;  %1887 = vmatpush.msra.mxu3 %v865_v29 }
  0xb1   :  { %v729_v32 = vld [vmem:[#allocation5 + $0x1320] sm:$0xff]  ;;  %1829 = vmatpush.msra.mxu0 %v665_v31 }
  0xb2   :  { %v793_v33 = vld [vmem:[#allocation5 + $0x1520] sm:$0xff]  ;;  %1849 = vmatpush.msra.mxu1 %v729_v32 }
  0xb3   :  { %v861_v34 = vld [vmem:[#allocation5 + $0x1740] sm:$0xff]  ;;  %1869 = vmatpush.msra.mxu2 %v793_v33 }
  0xb4   :  { %v661_v35 = vld [vmem:[#allocation5 + $0x1100] sm:$0xff]  ;;  %1888 = vmatpush.msra.mxu3 %v861_v34 }
  0xb5   :  { %v725_v36 = vld [vmem:[#allocation5 + $0x1300] sm:$0xff]  ;;  %1830 = vmatpush.msra.mxu0 %v661_v35 }
  0xb6   :  { %v789_v37 = vld [vmem:[#allocation5 + $0x1500] sm:$0xff]  ;;  %1850 = vmatpush.msra.mxu1 %v725_v36 }
  0xb7   :  { %v857_v38 = vld [vmem:[#allocation5 + $0x1720] sm:$0xff]  ;;  %1870 = vmatpush.msra.mxu2 %v789_v37 }
  0xb8   :  { %v657_v39 = vld [vmem:[#allocation5 + $0x10e0] sm:$0xff]  ;;  %1889 = vmatpush.msra.mxu3 %v857_v38 }
  0xb9   :  { %v721_v40 = vld [vmem:[#allocation5 + $0x12e0] sm:$0xff]  ;;  %1831 = vmatpush.msra.mxu0 %v657_v39 }
  0xba   :  { %v785_v41 = vld [vmem:[#allocation5 + $0x14e0] sm:$0xff]  ;;  %1851 = vmatpush.msra.mxu1 %v721_v40 }
  0xbb   :  { %v853_v42 = vld [vmem:[#allocation5 + $0x1700] sm:$0xff]  ;;  %1871 = vmatpush.msra.mxu2 %v785_v41 }
  0xbc   :  { %v653_v43 = vld [vmem:[#allocation5 + $0x10c0] sm:$0xff]  ;;  %1890 = vmatpush.msra.mxu3 %v853_v42 }
  0xbd   :  { %v717_v44 = vld [vmem:[#allocation5 + $0x12c0] sm:$0xff]  ;;  %1832 = vmatpush.msra.mxu0 %v653_v43 }
  0xbe   :  { %v781_v45 = vld [vmem:[#allocation5 + $0x14c0] sm:$0xff]  ;;  %1852 = vmatpush.msra.mxu1 %v717_v44 }
  0xbf   :  { %v849_v46 = vld [vmem:[#allocation5 + $0x16e0] sm:$0xff]  ;;  %1872 = vmatpush.msra.mxu2 %v781_v45 }
  0xc0   :  { %v649_v47 = vld [vmem:[#allocation5 + $0x10a0] sm:$0xff]  ;;  %1891 = vmatpush.msra.mxu3 %v849_v46 }
  0xc1   :  { %v713_v48 = vld [vmem:[#allocation5 + $0x12a0] sm:$0xff]  ;;  %1833 = vmatpush.msra.mxu0 %v649_v47 }
  0xc2   :  { %v777_v49 = vld [vmem:[#allocation5 + $0x14a0] sm:$0xff]  ;;  %1853 = vmatpush.msra.mxu1 %v713_v48 }
  0xc3   :  { %v845_v50 = vld [vmem:[#allocation5 + $0x16c0] sm:$0xff]  ;;  %1873 = vmatpush.msra.mxu2 %v777_v49 }
  0xc4   :  { %v645_v51 = vld [vmem:[#allocation5 + $0x1080] sm:$0xff]  ;;  %1892 = vmatpush.msra.mxu3 %v845_v50 }
  0xc5   :  { %v709_v52 = vld [vmem:[#allocation5 + $0x1280] sm:$0xff]  ;;  %1834 = vmatpush.msra.mxu0 %v645_v51 }
  0xc6   :  { %v773_v53 = vld [vmem:[#allocation5 + $0x1480] sm:$0xff]  ;;  %1854 = vmatpush.msra.mxu1 %v709_v52 }
  0xc7   :  { %v841_v54 = vld [vmem:[#allocation5 + $0x16a0] sm:$0xff]  ;;  %1874 = vmatpush.msra.mxu2 %v773_v53 }
  0xc8   :  { %v641_v55 = vld [vmem:[#allocation5 + $0x1060] sm:$0xff]  ;;  %1893 = vmatpush.msra.mxu3 %v841_v54 }
  0xc9   :  { %v705_v56 = vld [vmem:[#allocation5 + $0x1260] sm:$0xff]  ;;  %1835 = vmatpush.msra.mxu0 %v641_v55 }
  0xca   :  { %v769_v57 = vld [vmem:[#allocation5 + $0x1460] sm:$0xff]  ;;  %1855 = vmatpush.msra.mxu1 %v705_v56 }
  0xcb   :  { %v837_v58 = vld [vmem:[#allocation5 + $0x1680] sm:$0xff]  ;;  %1875 = vmatpush.msra.mxu2 %v769_v57 }
  0xcc   :  { %v637_v59 = vld [vmem:[#allocation5 + $0x1040] sm:$0xff]  ;;  %1894 = vmatpush.msra.mxu3 %v837_v58 }
  0xcd   :  { %v701_v60 = vld [vmem:[#allocation5 + $0x1240] sm:$0xff]  ;;  %1836 = vmatpush.msra.mxu0 %v637_v59 }
  0xce   :  { %v765_v61 = vld [vmem:[#allocation5 + $0x1440] sm:$0xff]  ;;  %1856 = vmatpush.msra.mxu1 %v701_v60 }
  0xcf   :  { %v833_v62 = vld [vmem:[#allocation5 + $0x1660] sm:$0xff]  ;;  %1876 = vmatpush.msra.mxu2 %v765_v61 }
  0xd0   :  { %v633_v63 = vld [vmem:[#allocation5 + $0x1020] sm:$0xff]  ;;  %1895 = vmatpush.msra.mxu3 %v833_v62 }
  0xd1   :  { %v697_v0 = vld [vmem:[#allocation5 + $0x1220] sm:$0xff]  ;;  %1837 = vmatpush.msra.mxu0 %v633_v63 }
  0xd2   :  { %v761_v1 = vld [vmem:[#allocation5 + $0x1420] sm:$0xff]  ;;  %1857 = vmatpush.msra.mxu1 %v697_v0 }
  0xd3   :  { %v829_v2 = vld [vmem:[#allocation5 + $0x1640] sm:$0xff]  ;;  %1877 = vmatpush.msra.mxu2 %v761_v1 }
  0xd4   :  { %v629_v3 = vld [vmem:[#allocation5 + $0x1000] sm:$0xff]  ;;  %1896 = vmatpush.msra.mxu3 %v829_v2 }
  0xd5   :  { %v693_v4 = vld [vmem:[#allocation5 + $0x1200] sm:$0xff]  ;;  %1838 = vmatpush.msra.mxu0 %v629_v3 }
  0xd6   :  { %v757_v5 = vld [vmem:[#allocation5 + $0x1400] sm:$0xff]  ;;  %1858 = vmatpush.msra.mxu1 %v693_v4 }
  0xd7   :  { %v825_v6 = vld [vmem:[#allocation5 + $0x1620] sm:$0xff]  ;;  %1878 = vmatpush.msra.mxu2 %v757_v5  ;;  %1859 = vmatmul.f32.vlgmr.msra.gmra.mxu1 %v102_v13 }
  0xd8   :  { %v101_v7 = vld [vmem:[#allocation2 + $0x40] sm:$0xff]  ;;  %1897 = vmatpush.msra.mxu3 %v825_v6  ;;  %1879 = vmatmul.f32.vlgmr.msra.gmra.mxu2 %v103_v8 }
  0xd9   :  { %v945_v9 = vld [vmem:[#allocation5 + $0x19e0] sm:$0xff]  ;;  %1839 = vmatmul.f32.vlgmr.msra.gmra.mxu0 %v101_v7 }
  0xda   :  { %v1009_v10 = vld [vmem:[#allocation5 + $0x1be0] sm:$0xff]  ;;  %1903 = vmatpush.msrb.mxu0 %v945_v9 }
  0xdb   :  { %v1073_v11 = vld [vmem:[#allocation5 + $0x1de0] sm:$0xff]  ;;  %1923 = vmatpush.msrb.mxu1 %v1009_v10 }
  0xdc   :  { %v821_v12 = vld [vmem:[#allocation5 + $0x1600] sm:$0xff]  ;;  %1943 = vmatpush.msrb.mxu2 %v1073_v11 }
  0xdd   :  { %v941_v15 = vld [vmem:[#allocation5 + $0x19c0] sm:$0xff]  ;;  %1898 = vmatpush.msra.mxu3 %v821_v12  ;;  %v107_v12 = vld [vmem:[#allocation2 + $0x70] sm:$0xff] }
  0xde   :  { %v1005_v16 = vld [vmem:[#allocation5 + $0x1bc0] sm:$0xff]  ;;  %1899 = vmatmul.f32.vlgmr.msra.gmra.mxu3 %v104_v14  ;;  %1904 = vmatpush.msrb.mxu0 %v941_v15 }
  0xdf   :  { %v1069_v17 = vld [vmem:[#allocation5 + $0x1dc0] sm:$0xff]  ;;  %1924 = vmatpush.msrb.mxu1 %v1005_v16 }
  0xe0   :  { %v1137_v18 = vld [vmem:[#allocation5 + $0x1fe0] sm:$0xff]  ;;  %1944 = vmatpush.msrb.mxu2 %v1069_v17  ;;  %v106_v17 = vld [vmem:[#allocation2 + $0x68] sm:$0xff] }
  0xe1   :  { %v937_v19 = vld [vmem:[#allocation5 + $0x19a0] sm:$0xff]  ;;  %1963 = vmatpush.msrb.mxu3 %v1137_v18  ;;  %v108_v18 = vld [vmem:[#allocation2 + $0x78] sm:$0xff] }
  0xe2   :  { %v1001_v20 = vld [vmem:[#allocation5 + $0x1ba0] sm:$0xff]  ;;  %1905 = vmatpush.msrb.mxu0 %v937_v19 }
  0xe3   :  { %v1065_v21 = vld [vmem:[#allocation5 + $0x1da0] sm:$0xff]  ;;  %1925 = vmatpush.msrb.mxu1 %v1001_v20 }
  0xe4   :  { %v1133_v22 = vld [vmem:[#allocation5 + $0x1fc0] sm:$0xff]  ;;  %1945 = vmatpush.msrb.mxu2 %v1065_v21 }
  0xe5   :  { %v933_v23 = vld [vmem:[#allocation5 + $0x1980] sm:$0xff]  ;;  %1964 = vmatpush.msrb.mxu3 %v1133_v22 }
  0xe6   :  { %v997_v24 = vld [vmem:[#allocation5 + $0x1b80] sm:$0xff]  ;;  %1906 = vmatpush.msrb.mxu0 %v933_v23 }
  0xe7   :  { %v1061_v25 = vld [vmem:[#allocation5 + $0x1d80] sm:$0xff]  ;;  %1926 = vmatpush.msrb.mxu1 %v997_v24 }
  0xe8   :  { %v1129_v26 = vld [vmem:[#allocation5 + $0x1fa0] sm:$0xff]  ;;  %1946 = vmatpush.msrb.mxu2 %v1061_v25 }
  0xe9   :  { %v929_v27 = vld [vmem:[#allocation5 + $0x1960] sm:$0xff]  ;;  %1965 = vmatpush.msrb.mxu3 %v1129_v26 }
  0xea   :  { %v993_v28 = vld [vmem:[#allocation5 + $0x1b60] sm:$0xff]  ;;  %1907 = vmatpush.msrb.mxu0 %v929_v27 }
  0xeb   :  { %v1057_v29 = vld [vmem:[#allocation5 + $0x1d60] sm:$0xff]  ;;  %1927 = vmatpush.msrb.mxu1 %v993_v28 }
  0xec   :  { %v1125_v30 = vld [vmem:[#allocation5 + $0x1f80] sm:$0xff]  ;;  %1947 = vmatpush.msrb.mxu2 %v1057_v29 }
  0xed   :  { %v925_v31 = vld [vmem:[#allocation5 + $0x1940] sm:$0xff]  ;;  %1966 = vmatpush.msrb.mxu3 %v1125_v30 }
  0xee   :  { %v989_v32 = vld [vmem:[#allocation5 + $0x1b40] sm:$0xff]  ;;  %1908 = vmatpush.msrb.mxu0 %v925_v31 }
  0xef   :  { %v1053_v33 = vld [vmem:[#allocation5 + $0x1d40] sm:$0xff]  ;;  %1928 = vmatpush.msrb.mxu1 %v989_v32 }
  0xf0   :  { %v1121_v34 = vld [vmem:[#allocation5 + $0x1f60] sm:$0xff]  ;;  %1948 = vmatpush.msrb.mxu2 %v1053_v33 }
  0xf1   :  { %v921_v35 = vld [vmem:[#allocation5 + $0x1920] sm:$0xff]  ;;  %1967 = vmatpush.msrb.mxu3 %v1121_v34 }
  0xf2   :  { %v985_v36 = vld [vmem:[#allocation5 + $0x1b20] sm:$0xff]  ;;  %1909 = vmatpush.msrb.mxu0 %v921_v35 }
  0xf3   :  { %v1049_v37 = vld [vmem:[#allocation5 + $0x1d20] sm:$0xff]  ;;  %1929 = vmatpush.msrb.mxu1 %v985_v36 }
  0xf4   :  { %v1117_v38 = vld [vmem:[#allocation5 + $0x1f40] sm:$0xff]  ;;  %1949 = vmatpush.msrb.mxu2 %v1049_v37 }
  0xf5   :  { %v917_v39 = vld [vmem:[#allocation5 + $0x1900] sm:$0xff]  ;;  %1968 = vmatpush.msrb.mxu3 %v1117_v38 }
  0xf6   :  { %v981_v40 = vld [vmem:[#allocation5 + $0x1b00] sm:$0xff]  ;;  %1910 = vmatpush.msrb.mxu0 %v917_v39 }
  0xf7   :  { %v1045_v41 = vld [vmem:[#allocation5 + $0x1d00] sm:$0xff]  ;;  %1930 = vmatpush.msrb.mxu1 %v981_v40 }
  0xf8   :  { %v1113_v42 = vld [vmem:[#allocation5 + $0x1f20] sm:$0xff]  ;;  %1950 = vmatpush.msrb.mxu2 %v1045_v41 }
  0xf9   :  { %v913_v43 = vld [vmem:[#allocation5 + $0x18e0] sm:$0xff]  ;;  %1969 = vmatpush.msrb.mxu3 %v1113_v42 }
  0xfa   :  { %v977_v44 = vld [vmem:[#allocation5 + $0x1ae0] sm:$0xff]  ;;  %1911 = vmatpush.msrb.mxu0 %v913_v43 }
  0xfb   :  { %v1041_v45 = vld [vmem:[#allocation5 + $0x1ce0] sm:$0xff]  ;;  %1931 = vmatpush.msrb.mxu1 %v977_v44 }
  0xfc   :  { %v1109_v46 = vld [vmem:[#allocation5 + $0x1f00] sm:$0xff]  ;;  %1951 = vmatpush.msrb.mxu2 %v1041_v45 }
  0xfd   :  { %v909_v47 = vld [vmem:[#allocation5 + $0x18c0] sm:$0xff]  ;;  %1970 = vmatpush.msrb.mxu3 %v1109_v46 }
  0xfe   :  { %v973_v48 = vld [vmem:[#allocation5 + $0x1ac0] sm:$0xff]  ;;  %1912 = vmatpush.msrb.mxu0 %v909_v47 }
  0xff   :  { %v1037_v49 = vld [vmem:[#allocation5 + $0x1cc0] sm:$0xff]  ;;  %1932 = vmatpush.msrb.mxu1 %v973_v48 }
 0x100   :  { %v1105_v50 = vld [vmem:[#allocation5 + $0x1ee0] sm:$0xff]  ;;  %1952 = vmatpush.msrb.mxu2 %v1037_v49 }
 0x101   :  { %v905_v51 = vld [vmem:[#allocation5 + $0x18a0] sm:$0xff]  ;;  %1971 = vmatpush.msrb.mxu3 %v1105_v50 }
 0x102   :  { %v969_v52 = vld [vmem:[#allocation5 + $0x1aa0] sm:$0xff]  ;;  %1913 = vmatpush.msrb.mxu0 %v905_v51 }
 0x103   :  { %v1033_v53 = vld [vmem:[#allocation5 + $0x1ca0] sm:$0xff]  ;;  %1933 = vmatpush.msrb.mxu1 %v969_v52 }
 0x104   :  { %v1101_v54 = vld [vmem:[#allocation5 + $0x1ec0] sm:$0xff]  ;;  %1953 = vmatpush.msrb.mxu2 %v1033_v53 }
 0x105   :  { %v901_v55 = vld [vmem:[#allocation5 + $0x1880] sm:$0xff]  ;;  %1972 = vmatpush.msrb.mxu3 %v1101_v54 }
 0x106   :  { %v965_v56 = vld [vmem:[#allocation5 + $0x1a80] sm:$0xff]  ;;  %1914 = vmatpush.msrb.mxu0 %v901_v55 }
 0x107   :  { %v1029_v57 = vld [vmem:[#allocation5 + $0x1c80] sm:$0xff]  ;;  %1934 = vmatpush.msrb.mxu1 %v965_v56 }
 0x108   :  { %v1097_v58 = vld [vmem:[#allocation5 + $0x1ea0] sm:$0xff]  ;;  %1954 = vmatpush.msrb.mxu2 %v1029_v57 }
 0x109   :  { %v897_v59 = vld [vmem:[#allocation5 + $0x1860] sm:$0xff]  ;;  %1973 = vmatpush.msrb.mxu3 %v1097_v58 }
 0x10a   :  { %v961_v60 = vld [vmem:[#allocation5 + $0x1a60] sm:$0xff]  ;;  %1915 = vmatpush.msrb.mxu0 %v897_v59 }
 0x10b   :  { %v1025_v61 = vld [vmem:[#allocation5 + $0x1c60] sm:$0xff]  ;;  %1935 = vmatpush.msrb.mxu1 %v961_v60 }
 0x10c   :  { %v1093_v62 = vld [vmem:[#allocation5 + $0x1e80] sm:$0xff]  ;;  %1955 = vmatpush.msrb.mxu2 %v1025_v61 }
 0x10d   :  { %v893_v63 = vld [vmem:[#allocation5 + $0x1840] sm:$0xff]  ;;  %1974 = vmatpush.msrb.mxu3 %v1093_v62 }
 0x10e   :  { %v957_v0 = vld [vmem:[#allocation5 + $0x1a40] sm:$0xff]  ;;  %1916 = vmatpush.msrb.mxu0 %v893_v63 }
 0x10f   :  { %v1021_v1 = vld [vmem:[#allocation5 + $0x1c40] sm:$0xff]  ;;  %1936 = vmatpush.msrb.mxu1 %v957_v0 }
 0x110   :  { %v1089_v2 = vld [vmem:[#allocation5 + $0x1e60] sm:$0xff]  ;;  %1956 = vmatpush.msrb.mxu2 %v1021_v1 }
 0x111   :  { %v889_v3 = vld [vmem:[#allocation5 + $0x1820] sm:$0xff]  ;;  %1975 = vmatpush.msrb.mxu3 %v1089_v2 }
 0x112   :  { %v953_v4 = vld [vmem:[#allocation5 + $0x1a20] sm:$0xff]  ;;  %1917 = vmatpush.msrb.mxu0 %v889_v3 }
 0x113   :  { %v1017_v5 = vld [vmem:[#allocation5 + $0x1c20] sm:$0xff]  ;;  %1937 = vmatpush.msrb.mxu1 %v953_v4 }
 0x114   :  { %v1085_v6 = vld [vmem:[#allocation5 + $0x1e40] sm:$0xff]  ;;  %1957 = vmatpush.msrb.mxu2 %v1017_v5 }
 0x115   :  { %v885_v7 = vld [vmem:[#allocation5 + $0x1800] sm:$0xff]  ;;  %1976 = vmatpush.msrb.mxu3 %v1085_v6 }
 0x116   :  { %v949_v8 = vld [vmem:[#allocation5 + $0x1a00] sm:$0xff]  ;;  %1918 = vmatpush.msrb.mxu0 %v885_v7 }
 0x117   :  { %v1013_v9 = vld [vmem:[#allocation5 + $0x1c00] sm:$0xff]  ;;  %1938 = vmatpush.msrb.mxu1 %v949_v8 }
 0x118   :  { %v1081_v10 = vld [vmem:[#allocation5 + $0x1e20] sm:$0xff]  ;;  %1958 = vmatpush.msrb.mxu2 %v1013_v9  ;;  %1939 = vmatmul.f32.vlgmr.msrb.gmra.mxu1 %v106_v17 }
 0x119   :  { %v105_v11 = vld [vmem:[#allocation2 + $0x60] sm:$0xff]  ;;  %1977 = vmatpush.msrb.mxu3 %v1081_v10  ;;  %1959 = vmatmul.f32.vlgmr.msrb.gmra.mxu2 %v107_v12 }
 0x11a   :  { %v1201_v13 = vld [vmem:[#allocation5 + $0x21e0] sm:$0xff]  ;;  %1919 = vmatmul.f32.vlgmr.msrb.gmra.mxu0 %v105_v11 }
 0x11b   :  { %v1265_v14 = vld [vmem:[#allocation5 + $0x23e0] sm:$0xff]  ;;  %1983 = vmatpush.msra.mxu0 %v1201_v13 }
 0x11c   :  { %v1329_v15 = vld [vmem:[#allocation5 + $0x25e0] sm:$0xff]  ;;  %2003 = vmatpush.msra.mxu1 %v1265_v14 }
 0x11d   :  { %v1077_v16 = vld [vmem:[#allocation5 + $0x1e00] sm:$0xff]  ;;  %2023 = vmatpush.msra.mxu2 %v1329_v15 }
 0x11e   :  { %v1197_v19 = vld [vmem:[#allocation5 + $0x21c0] sm:$0xff]  ;;  %1978 = vmatpush.msrb.mxu3 %v1077_v16  ;;  %v111_v16 = vld [vmem:[#allocation2 + $0x90] sm:$0xff] }
 0x11f   :  { %v1261_v20 = vld [vmem:[#allocation5 + $0x23c0] sm:$0xff]  ;;  %1979 = vmatmul.f32.vlgmr.msrb.gmra.mxu3 %v108_v18  ;;  %1984 = vmatpush.msra.mxu0 %v1197_v19 }
 0x120   :  { %v1325_v21 = vld [vmem:[#allocation5 + $0x25c0] sm:$0xff]  ;;  %2004 = vmatpush.msra.mxu1 %v1261_v20 }
 0x121   :  { %v1393_v22 = vld [vmem:[#allocation5 + $0x27e0] sm:$0xff]  ;;  %2024 = vmatpush.msra.mxu2 %v1325_v21  ;;  %v110_v21 = vld [vmem:[#allocation2 + $0x88] sm:$0xff] }
 0x122   :  { %v1193_v23 = vld [vmem:[#allocation5 + $0x21a0] sm:$0xff]  ;;  %2043 = vmatpush.msra.mxu3 %v1393_v22  ;;  %v112_v22 = vld [vmem:[#allocation2 + $0x98] sm:$0xff] }
 0x123   :  { %v1257_v24 = vld [vmem:[#allocation5 + $0x23a0] sm:$0xff]  ;;  %1985 = vmatpush.msra.mxu0 %v1193_v23 }
 0x124   :  { %v1321_v25 = vld [vmem:[#allocation5 + $0x25a0] sm:$0xff]  ;;  %2005 = vmatpush.msra.mxu1 %v1257_v24 }
 0x125   :  { %v1389_v26 = vld [vmem:[#allocation5 + $0x27c0] sm:$0xff]  ;;  %2025 = vmatpush.msra.mxu2 %v1321_v25 }
 0x126   :  { %v1189_v27 = vld [vmem:[#allocation5 + $0x2180] sm:$0xff]  ;;  %2044 = vmatpush.msra.mxu3 %v1389_v26 }
 0x127   :  { %v1253_v28 = vld [vmem:[#allocation5 + $0x2380] sm:$0xff]  ;;  %1986 = vmatpush.msra.mxu0 %v1189_v27 }
 0x128   :  { %v1317_v29 = vld [vmem:[#allocation5 + $0x2580] sm:$0xff]  ;;  %2006 = vmatpush.msra.mxu1 %v1253_v28 }
 0x129   :  { %v1385_v30 = vld [vmem:[#allocation5 + $0x27a0] sm:$0xff]  ;;  %2026 = vmatpush.msra.mxu2 %v1317_v29 }
 0x12a   :  { %v1185_v31 = vld [vmem:[#allocation5 + $0x2160] sm:$0xff]  ;;  %2045 = vmatpush.msra.mxu3 %v1385_v30 }
 0x12b   :  { %v1249_v32 = vld [vmem:[#allocation5 + $0x2360] sm:$0xff]  ;;  %1987 = vmatpush.msra.mxu0 %v1185_v31 }
 0x12c   :  { %v1313_v33 = vld [vmem:[#allocation5 + $0x2560] sm:$0xff]  ;;  %2007 = vmatpush.msra.mxu1 %v1249_v32 }
 0x12d   :  { %v1381_v34 = vld [vmem:[#allocation5 + $0x2780] sm:$0xff]  ;;  %2027 = vmatpush.msra.mxu2 %v1313_v33 }
 0x12e   :  { %v1181_v35 = vld [vmem:[#allocation5 + $0x2140] sm:$0xff]  ;;  %2046 = vmatpush.msra.mxu3 %v1381_v34 }
 0x12f   :  { %v1245_v36 = vld [vmem:[#allocation5 + $0x2340] sm:$0xff]  ;;  %1988 = vmatpush.msra.mxu0 %v1181_v35 }
 0x130   :  { %v1309_v37 = vld [vmem:[#allocation5 + $0x2540] sm:$0xff]  ;;  %2008 = vmatpush.msra.mxu1 %v1245_v36 }
 0x131   :  { %v1377_v38 = vld [vmem:[#allocation5 + $0x2760] sm:$0xff]  ;;  %2028 = vmatpush.msra.mxu2 %v1309_v37 }
 0x132   :  { %v1177_v39 = vld [vmem:[#allocation5 + $0x2120] sm:$0xff]  ;;  %2047 = vmatpush.msra.mxu3 %v1377_v38 }
 0x133   :  { %v1241_v40 = vld [vmem:[#allocation5 + $0x2320] sm:$0xff]  ;;  %1989 = vmatpush.msra.mxu0 %v1177_v39 }
 0x134   :  { %v1305_v41 = vld [vmem:[#allocation5 + $0x2520] sm:$0xff]  ;;  %2009 = vmatpush.msra.mxu1 %v1241_v40 }
 0x135   :  { %v1373_v42 = vld [vmem:[#allocation5 + $0x2740] sm:$0xff]  ;;  %2029 = vmatpush.msra.mxu2 %v1305_v41 }
 0x136   :  { %v1173_v43 = vld [vmem:[#allocation5 + $0x2100] sm:$0xff]  ;;  %2048 = vmatpush.msra.mxu3 %v1373_v42 }
 0x137   :  { %v1237_v44 = vld [vmem:[#allocation5 + $0x2300] sm:$0xff]  ;;  %1990 = vmatpush.msra.mxu0 %v1173_v43 }
 0x138   :  { %v1301_v45 = vld [vmem:[#allocation5 + $0x2500] sm:$0xff]  ;;  %2010 = vmatpush.msra.mxu1 %v1237_v44 }
 0x139   :  { %v1369_v46 = vld [vmem:[#allocation5 + $0x2720] sm:$0xff]  ;;  %2030 = vmatpush.msra.mxu2 %v1301_v45 }
 0x13a   :  { %v1169_v47 = vld [vmem:[#allocation5 + $0x20e0] sm:$0xff]  ;;  %2049 = vmatpush.msra.mxu3 %v1369_v46 }
 0x13b   :  { %v1233_v48 = vld [vmem:[#allocation5 + $0x22e0] sm:$0xff]  ;;  %1991 = vmatpush.msra.mxu0 %v1169_v47 }
 0x13c   :  { %v1297_v49 = vld [vmem:[#allocation5 + $0x24e0] sm:$0xff]  ;;  %2011 = vmatpush.msra.mxu1 %v1233_v48 }
 0x13d   :  { %v1365_v50 = vld [vmem:[#allocation5 + $0x2700] sm:$0xff]  ;;  %2031 = vmatpush.msra.mxu2 %v1297_v49 }
 0x13e   :  { %v1165_v51 = vld [vmem:[#allocation5 + $0x20c0] sm:$0xff]  ;;  %2050 = vmatpush.msra.mxu3 %v1365_v50 }
 0x13f   :  { %v1229_v52 = vld [vmem:[#allocation5 + $0x22c0] sm:$0xff]  ;;  %1992 = vmatpush.msra.mxu0 %v1165_v51 }
 0x140   :  { %v1293_v53 = vld [vmem:[#allocation5 + $0x24c0] sm:$0xff]  ;;  %2012 = vmatpush.msra.mxu1 %v1229_v52 }
 0x141   :  { %v1361_v54 = vld [vmem:[#allocation5 + $0x26e0] sm:$0xff]  ;;  %2032 = vmatpush.msra.mxu2 %v1293_v53 }
 0x142   :  { %v1161_v55 = vld [vmem:[#allocation5 + $0x20a0] sm:$0xff]  ;;  %2051 = vmatpush.msra.mxu3 %v1361_v54 }
 0x143   :  { %v1225_v56 = vld [vmem:[#allocation5 + $0x22a0] sm:$0xff]  ;;  %1993 = vmatpush.msra.mxu0 %v1161_v55 }
 0x144   :  { %v1289_v57 = vld [vmem:[#allocation5 + $0x24a0] sm:$0xff]  ;;  %2013 = vmatpush.msra.mxu1 %v1225_v56 }
 0x145   :  { %v1357_v58 = vld [vmem:[#allocation5 + $0x26c0] sm:$0xff]  ;;  %2033 = vmatpush.msra.mxu2 %v1289_v57 }
 0x146   :  { %v1157_v59 = vld [vmem:[#allocation5 + $0x2080] sm:$0xff]  ;;  %2052 = vmatpush.msra.mxu3 %v1357_v58 }
 0x147   :  { %v1221_v60 = vld [vmem:[#allocation5 + $0x2280] sm:$0xff]  ;;  %1994 = vmatpush.msra.mxu0 %v1157_v59 }
 0x148   :  { %v1285_v61 = vld [vmem:[#allocation5 + $0x2480] sm:$0xff]  ;;  %2014 = vmatpush.msra.mxu1 %v1221_v60 }
 0x149   :  { %v1353_v62 = vld [vmem:[#allocation5 + $0x26a0] sm:$0xff]  ;;  %2034 = vmatpush.msra.mxu2 %v1285_v61 }
 0x14a   :  { %v1153_v63 = vld [vmem:[#allocation5 + $0x2060] sm:$0xff]  ;;  %2053 = vmatpush.msra.mxu3 %v1353_v62 }
 0x14b   :  { %v1217_v0 = vld [vmem:[#allocation5 + $0x2260] sm:$0xff]  ;;  %1995 = vmatpush.msra.mxu0 %v1153_v63 }
 0x14c   :  { %v1281_v1 = vld [vmem:[#allocation5 + $0x2460] sm:$0xff]  ;;  %2015 = vmatpush.msra.mxu1 %v1217_v0 }
 0x14d   :  { %v1349_v2 = vld [vmem:[#allocation5 + $0x2680] sm:$0xff]  ;;  %2035 = vmatpush.msra.mxu2 %v1281_v1 }
 0x14e   :  { %v1149_v3 = vld [vmem:[#allocation5 + $0x2040] sm:$0xff]  ;;  %2054 = vmatpush.msra.mxu3 %v1349_v2 }
 0x14f   :  { %v1213_v4 = vld [vmem:[#allocation5 + $0x2240] sm:$0xff]  ;;  %1996 = vmatpush.msra.mxu0 %v1149_v3  ;;  %v1680_v3 = vpop.f32.mrf.mxu0 }
 0x150   :  { %v1277_v5 = vld [vmem:[#allocation5 + $0x2440] sm:$0xff]  ;;  %2016 = vmatpush.msra.mxu1 %v1213_v4 }
 0x151   :  { %v1345_v6 = vld [vmem:[#allocation5 + $0x2660] sm:$0xff]  ;;  %2036 = vmatpush.msra.mxu2 %v1277_v5 }
 0x152   :  { %v1145_v7 = vld [vmem:[#allocation5 + $0x2020] sm:$0xff]  ;;  %2055 = vmatpush.msra.mxu3 %v1345_v6 }
 0x153   :  { %v1209_v8 = vld [vmem:[#allocation5 + $0x2220] sm:$0xff]  ;;  %1997 = vmatpush.msra.mxu0 %v1145_v7  ;;  %v1700_v7 = vpop.f32.mrf.mxu1 }
 0x154   :  { %v1273_v9 = vld [vmem:[#allocation5 + $0x2420] sm:$0xff]  ;;  %2017 = vmatpush.msra.mxu1 %v1209_v8 }
 0x155   :  { %v1341_v10 = vld [vmem:[#allocation5 + $0x2640] sm:$0xff]  ;;  %2037 = vmatpush.msra.mxu2 %v1273_v9 }
 0x156   :  { %v1141_v11 = vld [vmem:[#allocation5 + $0x2000] sm:$0xff]  ;;  %2056 = vmatpush.msra.mxu3 %v1341_v10 }
 0x157   :  { %v1205_v12 = vld [vmem:[#allocation5 + $0x2200] sm:$0xff]  ;;  %1998 = vmatpush.msra.mxu0 %v1141_v11 }
 0x158   :  { %v1269_v13 = vld [vmem:[#allocation5 + $0x2400] sm:$0xff]  ;;  %2018 = vmatpush.msra.mxu1 %v1205_v12 }
 0x159   :  { %v1337_v14 = vld [vmem:[#allocation5 + $0x2620] sm:$0xff]  ;;  %2038 = vmatpush.msra.mxu2 %v1269_v13  ;;  %2019 = vmatmul.f32.vlgmr.msra.gmra.mxu1 %v110_v21  ;;  %v1720_v21 = vpop.f32.mrf.mxu2 }
 0x15a   :  { %v109_v15 = vld [vmem:[#allocation2 + $0x80] sm:$0xff]  ;;  %2057 = vmatpush.msra.mxu3 %v1337_v14  ;;  %2039 = vmatmul.f32.vlgmr.msra.gmra.mxu2 %v111_v16 }
 0x15b   :  { %v1457_v17 = vld [vmem:[#allocation5 + $0x29e0] sm:$0xff]  ;;  %1999 = vmatmul.f32.vlgmr.msra.gmra.mxu0 %v109_v15 }
 0x15c   :  { %v1521_v18 = vld [vmem:[#allocation5 + $0x2be0] sm:$0xff]  ;;  %2063 = vmatpush.msrb.mxu0 %v1457_v17 }
 0x15d   :  { %v1585_v19 = vld [vmem:[#allocation5 + $0x2de0] sm:$0xff]  ;;  %2083 = vmatpush.msrb.mxu1 %v1521_v18 }
 0x15e   :  { %v1333_v20 = vld [vmem:[#allocation5 + $0x2600] sm:$0xff]  ;;  %2103 = vmatpush.msrb.mxu2 %v1585_v19 }
 0x15f   :  { %v1453_v23 = vld [vmem:[#allocation5 + $0x29c0] sm:$0xff]  ;;  %2058 = vmatpush.msra.mxu3 %v1333_v20 }
 0x160   :  { %v1517_v24 = vld [vmem:[#allocation5 + $0x2bc0] sm:$0xff]  ;;  %2059 = vmatmul.f32.vlgmr.msra.gmra.mxu3 %v112_v22  ;;  %2064 = vmatpush.msrb.mxu0 %v1453_v23 }
 0x161   :  { %v1581_v25 = vld [vmem:[#allocation5 + $0x2dc0] sm:$0xff]  ;;  %2084 = vmatpush.msrb.mxu1 %v1517_v24 }
 0x162   :  { %v1649_v26 = vld [vmem:[#allocation5 + $0x2fe0] sm:$0xff]  ;;  %2104 = vmatpush.msrb.mxu2 %v1581_v25 }
 0x163   :  { %v1449_v27 = vld [vmem:[#allocation5 + $0x29a0] sm:$0xff]  ;;  %2123 = vmatpush.msrb.mxu3 %v1649_v26 }
 0x164   :  { %v1513_v28 = vld [vmem:[#allocation5 + $0x2ba0] sm:$0xff]  ;;  %2065 = vmatpush.msrb.mxu0 %v1449_v27 }
 0x165   :  { %v1577_v29 = vld [vmem:[#allocation5 + $0x2da0] sm:$0xff]  ;;  %2085 = vmatpush.msrb.mxu1 %v1513_v28  ;;  %v115_v28 = vld [vmem:[#allocation2 + $0xb0] sm:$0xff] }
 0x166   :  { %v1645_v30 = vld [vmem:[#allocation5 + $0x2fc0] sm:$0xff]  ;;  %2105 = vmatpush.msrb.mxu2 %v1577_v29  ;;  %v1740_v29 = vpop.f32.mrf.mxu3 }
 0x167   :  { %v1445_v31 = vld [vmem:[#allocation5 + $0x2980] sm:$0xff]  ;;  %2124 = vmatpush.msrb.mxu3 %v1645_v30  ;;  %v178_v30 = vld [vmem:[#allocation5 + $0x1e8] sm:$0xff] }
 0x168   :  { %v1509_v32 = vld [vmem:[#allocation5 + $0x2b80] sm:$0xff]  ;;  %2066 = vmatpush.msrb.mxu0 %v1445_v31  ;;  %v242_v31 = vld [vmem:[#allocation5 + $0x3e8] sm:$0xff] }
 0x169   :  { %v1573_v33 = vld [vmem:[#allocation5 + $0x2d80] sm:$0xff]  ;;  %2086 = vmatpush.msrb.mxu1 %v1509_v32 }
 0x16a   :  { %v1641_v34 = vld [vmem:[#allocation5 + $0x2fa0] sm:$0xff]  ;;  %2106 = vmatpush.msrb.mxu2 %v1573_v33  ;;  %v306_v33 = vld [vmem:[#allocation5 + $0x5e8] sm:$0xff] }
 0x16b   :  { %v1441_v35 = vld [vmem:[#allocation5 + $0x2960] sm:$0xff]  ;;  %2125 = vmatpush.msrb.mxu3 %v1641_v34 }
 0x16c   :  { %v1505_v36 = vld [vmem:[#allocation5 + $0x2b60] sm:$0xff]  ;;  %2067 = vmatpush.msrb.mxu0 %v1441_v35  ;;  %v1760_v35 = vpop.f32.mrf.mxu0 }
 0x16d   :  { %v1569_v37 = vld [vmem:[#allocation5 + $0x2d60] sm:$0xff]  ;;  %2087 = vmatpush.msrb.mxu1 %v1505_v36  ;;  %v114_v36 = vld [vmem:[#allocation2 + $0xa8] sm:$0xff] }
 0x16e   :  { %v1637_v38 = vld [vmem:[#allocation5 + $0x2f80] sm:$0xff]  ;;  %2107 = vmatpush.msrb.mxu2 %v1569_v37  ;;  %v116_v37 = vld [vmem:[#allocation2 + $0xb8] sm:$0xff] }
 0x16f   :  { %v1437_v39 = vld [vmem:[#allocation5 + $0x2940] sm:$0xff]  ;;  %2126 = vmatpush.msrb.mxu3 %v1637_v38 }
 0x170   :  { %v1501_v40 = vld [vmem:[#allocation5 + $0x2b40] sm:$0xff]  ;;  %2068 = vmatpush.msrb.mxu0 %v1437_v39  ;;  %v174_v39 = vld [vmem:[#allocation5 + $0x1c8] sm:$0xff] }
 0x171   :  { %v1565_v41 = vld [vmem:[#allocation5 + $0x2d40] sm:$0xff]  ;;  %2088 = vmatpush.msrb.mxu1 %v1501_v40  ;;  %v238_v40 = vld [vmem:[#allocation5 + $0x3c8] sm:$0xff] }
 0x172   :  { %v1633_v42 = vld [vmem:[#allocation5 + $0x2f60] sm:$0xff]  ;;  %2108 = vmatpush.msrb.mxu2 %v1565_v41  ;;  %v302_v41 = vld [vmem:[#allocation5 + $0x5c8] sm:$0xff] }
 0x173   :  { %v1433_v43 = vld [vmem:[#allocation5 + $0x2920] sm:$0xff]  ;;  %2127 = vmatpush.msrb.mxu3 %v1633_v42  ;;  %v370_v42 = vld [vmem:[#allocation5 + $0x7e8] sm:$0xff] }
 0x174   :  { %v1497_v44 = vld [vmem:[#allocation5 + $0x2b20] sm:$0xff]  ;;  %2069 = vmatpush.msrb.mxu0 %v1433_v43  ;;  %v1780_v43 = vpop.f32.mrf.mxu1 }
 0x175   :  { %v1561_v45 = vld [vmem:[#allocation5 + $0x2d20] sm:$0xff]  ;;  %2089 = vmatpush.msrb.mxu1 %v1497_v44  ;;  %v170_v44 = vld [vmem:[#allocation5 + $0x1a8] sm:$0xff] }
 0x176   :  { %v1629_v46 = vld [vmem:[#allocation5 + $0x2f40] sm:$0xff]  ;;  %2109 = vmatpush.msrb.mxu2 %v1561_v45  ;;  %v234_v45 = vld [vmem:[#allocation5 + $0x3a8] sm:$0xff] }
 0x177   :  { %v1429_v47 = vld [vmem:[#allocation5 + $0x2900] sm:$0xff]  ;;  %2128 = vmatpush.msrb.mxu3 %v1629_v46 }
 0x178   :  { %v1493_v48 = vld [vmem:[#allocation5 + $0x2b00] sm:$0xff]  ;;  %2070 = vmatpush.msrb.mxu0 %v1429_v47  ;;  %v1800_v47 = vpop.f32.mrf.mxu2 }
 0x179   :  { %v1557_v49 = vld [vmem:[#allocation5 + $0x2d00] sm:$0xff]  ;;  %2090 = vmatpush.msrb.mxu1 %v1493_v48  ;;  %v298_v48 = vld [vmem:[#allocation5 + $0x5a8] sm:$0xff] }
 0x17a   :  { %v1625_v50 = vld [vmem:[#allocation5 + $0x2f20] sm:$0xff]  ;;  %2110 = vmatpush.msrb.mxu2 %v1557_v49  ;;  %v366_v49 = vld [vmem:[#allocation5 + $0x7c8] sm:$0xff] }
 0x17b   :  { %v1425_v51 = vld [vmem:[#allocation5 + $0x28e0] sm:$0xff]  ;;  %2129 = vmatpush.msrb.mxu3 %v1625_v50  ;;  %v166_v50 = vld [vmem:[#allocation5 + $0x188] sm:$0xff] }
 0x17c   :  { %v1489_v52 = vld [vmem:[#allocation5 + $0x2ae0] sm:$0xff]  ;;  %2071 = vmatpush.msrb.mxu0 %v1425_v51  ;;  %v230_v51 = vld [vmem:[#allocation5 + $0x388] sm:$0xff] }
 0x17d   :  { %v1653_v53 = vld [vmem:[#allocation7] sm:$0xf]  ;;  %2091 = vmatpush.msrb.mxu1 %v1489_v52 }
 0x17e   :  { %v1553_v54 = vld [vmem:[#allocation5 + $0x2ce0] sm:$0xff]  ;;  %v1655_v60 = vperm.slane %v1653_v53, 0  ;;  %v294_v53 = vld [vmem:[#allocation5 + $0x588] sm:$0xff] }
 0x17f   :  { %v1621_v55 = vld [vmem:[#allocation5 + $0x2f00] sm:$0xff]  ;;  %2111 = vmatpush.msrb.mxu2 %v1553_v54  ;;  %v362_v54 = vld [vmem:[#allocation5 + $0x7a8] sm:$0xff] }
 0x180   :  { %v1421_v56 = vld [vmem:[#allocation5 + $0x28c0] sm:$0xff]  ;;  %2130 = vmatpush.msrb.mxu3 %v1621_v55  ;;  %v1681_v6 = vadd.f32 %v1680_v3, %v1655_v60  ;;  %v1820_v55 = vpop.f32.mrf.mxu3  ;;  %v358_v60 = vld [vmem:[#allocation5 + $0x788] sm:$0xff] }
 0x181   :  { %v1485_v57 = vld [vmem:[#allocation5 + $0x2ac0] sm:$0xff]  ;;  %2072 = vmatpush.msrb.mxu0 %v1421_v56  ;;  %v162_v56 = vld [vmem:[#allocation5 + $0x168] sm:$0xff] }
 0x182   :  { %v1549_v58 = vld [vmem:[#allocation5 + $0x2cc0] sm:$0xff]  ;;  %2092 = vmatpush.msrb.mxu1 %v1485_v57  ;;  %v1701_v14 = vadd.f32 %v1700_v7, %v1681_v6  ;;  %v226_v57 = vld [vmem:[#allocation5 + $0x368] sm:$0xff] }
 0x183   :  { %v1617_v59 = vld [vmem:[#allocation5 + $0x2ee0] sm:$0xff]  ;;  %2112 = vmatpush.msrb.mxu2 %v1549_v58  ;;  %v282_v3 = vld [vmem:[#allocation5 + $0x528] sm:$0xff] }
 0x184   :  { %v1417_v61 = vld [vmem:[#allocation5 + $0x28a0] sm:$0xff]  ;;  %2131 = vmatpush.msrb.mxu3 %v1617_v59  ;;  %v1721_v24 = vadd.f32 %v1720_v21, %v1701_v14  ;;  %v290_v59 = vld [vmem:[#allocation5 + $0x568] sm:$0xff] }
 0x185   :  { %v1481_v62 = vld [vmem:[#allocation5 + $0x2aa0] sm:$0xff]  ;;  %2073 = vmatpush.msrb.mxu0 %v1417_v61  ;;  %v158_v61 = vld [vmem:[#allocation5 + $0x148] sm:$0xff] }
 0x186   :  { %v1545_v63 = vld [vmem:[#allocation5 + $0x2ca0] sm:$0xff]  ;;  %2093 = vmatpush.msrb.mxu1 %v1481_v62  ;;  %v1741_v32 = vadd.f32 %v1740_v29, %v1721_v24  ;;  %v222_v62 = vld [vmem:[#allocation5 + $0x348] sm:$0xff] }
 0x187   :  { %v1613_v0 = vld [vmem:[#allocation5 + $0x2ec0] sm:$0xff]  ;;  %2113 = vmatpush.msrb.mxu2 %v1545_v63  ;;  %v286_v63 = vld [vmem:[#allocation5 + $0x548] sm:$0xff] }
 0x188   :  { %v1413_v1 = vld [vmem:[#allocation5 + $0x2880] sm:$0xff]  ;;  %2132 = vmatpush.msrb.mxu3 %v1613_v0  ;;  %v1761_v38 = vadd.f32 %v1760_v35, %v1741_v32  ;;  %v354_v0 = vld [vmem:[#allocation5 + $0x768] sm:$0xff]  ;;  %v1860_v35 = vpop.f32.mrf.mxu1 }
 0x189   :  { %v1477_v2 = vld [vmem:[#allocation5 + $0x2a80] sm:$0xff]  ;;  %2074 = vmatpush.msrb.mxu0 %v1413_v1  ;;  %v154_v1 = vld [vmem:[#allocation5 + $0x128] sm:$0xff] }
 0x18a   :  { %v1541_v4 = vld [vmem:[#allocation5 + $0x2c80] sm:$0xff]  ;;  %2094 = vmatpush.msrb.mxu1 %v1477_v2  ;;  %v1781_v46 = vadd.f32 %v1780_v43, %v1761_v38  ;;  %v218_v2 = vld [vmem:[#allocation5 + $0x328] sm:$0xff]  ;;  %v1880_v43 = vpop.f32.mrf.mxu2 }
 0x18b   :  { %v1609_v5 = vld [vmem:[#allocation5 + $0x2ea0] sm:$0xff]  ;;  %2114 = vmatpush.msrb.mxu2 %v1541_v4  ;;  %v350_v4 = vld [vmem:[#allocation5 + $0x748] sm:$0xff] }
 0x18c   :  { %v1409_v8 = vld [vmem:[#allocation5 + $0x2860] sm:$0xff]  ;;  %2133 = vmatpush.msrb.mxu3 %v1609_v5  ;;  %v1801_v52 = vadd.f32 %v1800_v47, %v1781_v46  ;;  %v150_v5 = vld [vmem:[#allocation5 + $0x108] sm:$0xff] }
 0x18d   :  { %v1473_v9 = vld [vmem:[#allocation5 + $0x2a60] sm:$0xff]  ;;  %2075 = vmatpush.msrb.mxu0 %v1409_v8  ;;  %v214_v6 = vld [vmem:[#allocation5 + $0x308] sm:$0xff] }
 0x18e   :  { %v1537_v10 = vld [vmem:[#allocation5 + $0x2c60] sm:$0xff]  ;;  %2095 = vmatpush.msrb.mxu1 %v1473_v9  ;;  %v4054_v58 = vadd.f32 %v1820_v55, %v1801_v52  ;;  %v278_v7 = vld [vmem:[#allocation5 + $0x508] sm:$0xff] }
 0x18f   :  { %v1605_v11 = vld [vmem:[#allocation5 + $0x2e80] sm:$0xff]  ;;  %2115 = vmatpush.msrb.mxu2 %v1537_v10  ;;  %v346_v8 = vld [vmem:[#allocation5 + $0x728] sm:$0xff] }
 0x190   :  { %v1405_v12 = vld [vmem:[#allocation5 + $0x2840] sm:$0xff]  ;;  %2134 = vmatpush.msrb.mxu3 %v1605_v11  ;;  %v146_v9 = vld [vmem:[#allocation5 + $0xe8] sm:$0xff] }
 0x191   :  { %v1469_v13 = vld [vmem:[#allocation5 + $0x2a40] sm:$0xff]  ;;  %2076 = vmatpush.msrb.mxu0 %v1405_v12  ;;  %v210_v10 = vld [vmem:[#allocation5 + $0x2e8] sm:$0xff] }
 0x192   :  { %v1533_v15 = vld [vmem:[#allocation5 + $0x2c40] sm:$0xff]  ;;  %2096 = vmatpush.msrb.mxu1 %v1469_v13  ;;  %v274_v11 = vld [vmem:[#allocation5 + $0x4e8] sm:$0xff] }
 0x193   :  { %v1601_v16 = vld [vmem:[#allocation5 + $0x2e60] sm:$0xff]  ;;  %2116 = vmatpush.msrb.mxu2 %v1533_v15  ;;  %v342_v12 = vld [vmem:[#allocation5 + $0x708] sm:$0xff] }
 0x194   :  { %v1401_v17 = vld [vmem:[#allocation5 + $0x2820] sm:$0xff]  ;;  %2135 = vmatpush.msrb.mxu3 %v1601_v16  ;;  %v142_v13 = vld [vmem:[#allocation5 + $0xc8] sm:$0xff] }
 0x195   :  { %v1465_v18 = vld [vmem:[#allocation5 + $0x2a20] sm:$0xff]  ;;  %2077 = vmatpush.msrb.mxu0 %v1401_v17  ;;  %v206_v14 = vld [vmem:[#allocation5 + $0x2c8] sm:$0xff] }
 0x196   :  { %v1529_v19 = vld [vmem:[#allocation5 + $0x2c20] sm:$0xff]  ;;  %2097 = vmatpush.msrb.mxu1 %v1465_v18  ;;  %v270_v15 = vld [vmem:[#allocation5 + $0x4c8] sm:$0xff] }
 0x197   :  { %v1597_v20 = vld [vmem:[#allocation5 + $0x2e40] sm:$0xff]  ;;  %2117 = vmatpush.msrb.mxu2 %v1529_v19  ;;  %v338_v16 = vld [vmem:[#allocation5 + $0x6e8] sm:$0xff] }
 0x198   :  { %v1397_v22 = vld [vmem:[#allocation5 + $0x2800] sm:$0xff]  ;;  %2136 = vmatpush.msrb.mxu3 %v1597_v20  ;;  %v138_v17 = vld [vmem:[#allocation5 + $0xa8] sm:$0xff] }
 0x199   :  { %v1461_v23 = vld [vmem:[#allocation5 + $0x2a00] sm:$0xff]  ;;  %2078 = vmatpush.msrb.mxu0 %v1397_v22  ;;  %v202_v18 = vld [vmem:[#allocation5 + $0x2a8] sm:$0xff] }
 0x19a   :  { %v1525_v25 = vld [vmem:[#allocation5 + $0x2c00] sm:$0xff]  ;;  %2098 = vmatpush.msrb.mxu1 %v1461_v23  ;;  %v266_v19 = vld [vmem:[#allocation5 + $0x4a8] sm:$0xff] }
 0x19b   :  { %v1593_v26 = vld [vmem:[#allocation5 + $0x2e20] sm:$0xff]  ;;  %2118 = vmatpush.msrb.mxu2 %v1525_v25  ;;  %2143 = vmatpush.msra.mxu0 %v178_v30  ;;  %v334_v20 = vld [vmem:[#allocation5 + $0x6c8] sm:$0xff] }
 0x19c   :  { %v113_v27 = vld [vmem:[#allocation2 + $0xa0] sm:$0xff]  ;;  %2137 = vmatpush.msrb.mxu3 %v1593_v26  ;;  %2119 = vmatmul.f32.vlgmr.msrb.gmra.mxu2 %v115_v28  ;;  %v134_v21 = vld [vmem:[#allocation5 + $0x88] sm:$0xff] }
 0x19d   :  { %v1589_v34 = vld [vmem:[#allocation5 + $0x2e00] sm:$0xff]  ;;  %2079 = vmatmul.f32.vlgmr.msrb.gmra.mxu0 %v113_v27  ;;  %2163 = vmatpush.msra.mxu1 %v242_v31  ;;  %v198_v22 = vld [vmem:[#allocation5 + $0x288] sm:$0xff]  ;;  %v1840_v27 = vpop.f32.mrf.mxu0 }
 0x19e   :  { %2183 = vmatpush.msra.mxu2 %v306_v33  ;;  %2138 = vmatpush.msrb.mxu3 %v1589_v34  ;;  %v262_v23 = vld [vmem:[#allocation5 + $0x488] sm:$0xff]  ;;  %v1841_v30 = vadd.f32 %v1840_v27, %v4054_v58 }
 0x19f   :  { %2099 = vmatmul.f32.vlgmr.msrb.gmra.mxu1 %v114_v36  ;;  %2139 = vmatmul.f32.vlgmr.msrb.gmra.mxu3 %v116_v37  ;;  %v330_v24 = vld [vmem:[#allocation5 + $0x6a8] sm:$0xff] }
 0x1a0   :  { %2144 = vmatpush.msra.mxu0 %v174_v39  ;;  %2164 = vmatpush.msra.mxu1 %v238_v40  ;;  %v130_v25 = vld [vmem:[#allocation5 + $0x68] sm:$0xff]  ;;  %v1861_v38 = vadd.f32 %v1860_v35, %v1841_v30 }
 0x1a1   :  { %2184 = vmatpush.msra.mxu2 %v302_v41  ;;  %2203 = vmatpush.msra.mxu3 %v370_v42  ;;  %v194_v26 = vld [vmem:[#allocation5 + $0x268] sm:$0xff] }
 0x1a2   :  { %2145 = vmatpush.msra.mxu0 %v170_v44  ;;  %2165 = vmatpush.msra.mxu1 %v234_v45  ;;  %v258_v28 = vld [vmem:[#allocation5 + $0x468] sm:$0xff]  ;;  %v1881_v46 = vadd.f32 %v1880_v43, %v1861_v38 }
 0x1a3   :  { %2185 = vmatpush.msra.mxu2 %v298_v48  ;;  %2204 = vmatpush.msra.mxu3 %v366_v49  ;;  %v326_v29 = vld [vmem:[#allocation5 + $0x688] sm:$0xff] }
 0x1a4   :  { %2146 = vmatpush.msra.mxu0 %v166_v50  ;;  %2166 = vmatpush.msra.mxu1 %v230_v51  ;;  %v126_v31 = vld [vmem:[#allocation5 + $0x48] sm:$0xff]  ;;  %v1900_v51 = vpop.f32.mrf.mxu3 }
 0x1a5   :  { %2186 = vmatpush.msra.mxu2 %v294_v53  ;;  %2205 = vmatpush.msra.mxu3 %v362_v54  ;;  %v190_v32 = vld [vmem:[#allocation5 + $0x248] sm:$0xff]  ;;  %v4057_v54 = vadd.f32 %v1900_v51, %v1881_v46 }
 0x1a6   :  { %2147 = vmatpush.msra.mxu0 %v162_v56  ;;  %2167 = vmatpush.msra.mxu1 %v226_v57  ;;  %v254_v33 = vld [vmem:[#allocation5 + $0x448] sm:$0xff] }
 0x1a7   :  { %2187 = vmatpush.msra.mxu2 %v290_v59  ;;  %2206 = vmatpush.msra.mxu3 %v358_v60  ;;  %v322_v34 = vld [vmem:[#allocation5 + $0x668] sm:$0xff] }
 0x1a8   :  { %2148 = vmatpush.msra.mxu0 %v158_v61  ;;  %2168 = vmatpush.msra.mxu1 %v222_v62  ;;  %v122_v36 = vld [vmem:[#allocation5 + $0x28] sm:$0xff] }
 0x1a9   :  { %2188 = vmatpush.msra.mxu2 %v286_v63  ;;  %2207 = vmatpush.msra.mxu3 %v354_v0  ;;  %v186_v37 = vld [vmem:[#allocation5 + $0x228] sm:$0xff] }
 0x1aa   :  { %2149 = vmatpush.msra.mxu0 %v154_v1  ;;  %2169 = vmatpush.msra.mxu1 %v218_v2  ;;  %v250_v39 = vld [vmem:[#allocation5 + $0x428] sm:$0xff] }
 0x1ab   :  { %2189 = vmatpush.msra.mxu2 %v282_v3  ;;  %2208 = vmatpush.msra.mxu3 %v350_v4  ;;  %v318_v40 = vld [vmem:[#allocation5 + $0x648] sm:$0xff] }
 0x1ac   :  { %2150 = vmatpush.msra.mxu0 %v150_v5  ;;  %2170 = vmatpush.msra.mxu1 %v214_v6  ;;  %v118_v41 = vld [vmem:[#allocation5 + $0x8] sm:$0xff] }
 0x1ad   :  { %2190 = vmatpush.msra.mxu2 %v278_v7  ;;  %2209 = vmatpush.msra.mxu3 %v346_v8  ;;  %v182_v42 = vld [vmem:[#allocation5 + $0x208] sm:$0xff] }
 0x1ae   :  { %2151 = vmatpush.msra.mxu0 %v146_v9  ;;  %2171 = vmatpush.msra.mxu1 %v210_v10  ;;  %v246_v44 = vld [vmem:[#allocation5 + $0x408] sm:$0xff] }
 0x1af   :  { %2191 = vmatpush.msra.mxu2 %v274_v11  ;;  %2210 = vmatpush.msra.mxu3 %v342_v12  ;;  %v314_v45 = vld [vmem:[#allocation5 + $0x628] sm:$0xff] }
 0x1b0   :  { %2152 = vmatpush.msra.mxu0 %v142_v13  ;;  %2172 = vmatpush.msra.mxu1 %v206_v14  ;;  %v434_v47 = vld [vmem:[#allocation5 + $0x9e8] sm:$0xff] }
 0x1b1   :  { %2192 = vmatpush.msra.mxu2 %v270_v15  ;;  %2211 = vmatpush.msra.mxu3 %v338_v16  ;;  %v498_v48 = vld [vmem:[#allocation5 + $0xbe8] sm:$0xff] }
 0x1b2   :  { %2153 = vmatpush.msra.mxu0 %v138_v17  ;;  %2173 = vmatpush.msra.mxu1 %v202_v18  ;;  %v562_v49 = vld [vmem:[#allocation5 + $0xde8] sm:$0xff] }
 0x1b3   :  { %2193 = vmatpush.msra.mxu2 %v266_v19  ;;  %2212 = vmatpush.msra.mxu3 %v334_v20  ;;  %v310_v50 = vld [vmem:[#allocation5 + $0x608] sm:$0xff] }
 0x1b4   :  { %2154 = vmatpush.msra.mxu0 %v134_v21  ;;  %2174 = vmatpush.msra.mxu1 %v198_v22  ;;  %v430_v52 = vld [vmem:[#allocation5 + $0x9c8] sm:$0xff] }
 0x1b5   :  { %2194 = vmatpush.msra.mxu2 %v262_v23  ;;  %2213 = vmatpush.msra.mxu3 %v330_v24  ;;  %v494_v53 = vld [vmem:[#allocation5 + $0xbc8] sm:$0xff] }
 0x1b6   :  { %2155 = vmatpush.msra.mxu0 %v130_v25  ;;  %2175 = vmatpush.msra.mxu1 %v194_v26  ;;  %v558_v55 = vld [vmem:[#allocation5 + $0xdc8] sm:$0xff] }
 0x1b7   :  { %2195 = vmatpush.msra.mxu2 %v258_v28  ;;  %2214 = vmatpush.msra.mxu3 %v326_v29  ;;  %v626_v56 = vld [vmem:[#allocation5 + $0xfe8] sm:$0xff] }
 0x1b8   :  { %2156 = vmatpush.msra.mxu0 %v126_v31  ;;  %2176 = vmatpush.msra.mxu1 %v190_v32  ;;  %v426_v57 = vld [vmem:[#allocation5 + $0x9a8] sm:$0xff] }
 0x1b9   :  { %2196 = vmatpush.msra.mxu2 %v254_v33  ;;  %2215 = vmatpush.msra.mxu3 %v322_v34  ;;  %v490_v58 = vld [vmem:[#allocation5 + $0xba8] sm:$0xff] }
 0x1ba   :  { %2157 = vmatpush.msra.mxu0 %v122_v36  ;;  %2177 = vmatpush.msra.mxu1 %v186_v37  ;;  %v554_v59 = vld [vmem:[#allocation5 + $0xda8] sm:$0xff] }
 0x1bb   :  { %2197 = vmatpush.msra.mxu2 %v250_v39  ;;  %2216 = vmatpush.msra.mxu3 %v318_v40  ;;  %v622_v60 = vld [vmem:[#allocation5 + $0xfc8] sm:$0xff]  ;;  %v1920_v39 = vpop.f32.mrf.mxu0 }
 0x1bc   :  { %2158 = vmatpush.msra.mxu0 %v118_v41  ;;  %2178 = vmatpush.msra.mxu1 %v182_v42  ;;  %v422_v61 = vld [vmem:[#allocation5 + $0x988] sm:$0xff]  ;;  %v1921_v42 = vadd.f32 %v1920_v39, %v4057_v54 }
 0x1bd   :  { %2198 = vmatpush.msra.mxu2 %v246_v44  ;;  %2217 = vmatpush.msra.mxu3 %v314_v45  ;;  %v486_v62 = vld [vmem:[#allocation5 + $0xb88] sm:$0xff] }
 0x1be   :  { %2223 = vmatpush.msrb.mxu0 %v434_v47  ;;  %2243 = vmatpush.msrb.mxu1 %v498_v48  ;;  %v550_v63 = vld [vmem:[#allocation5 + $0xd88] sm:$0xff]  ;;  %v1940_v47 = vpop.f32.mrf.mxu1 }
 0x1bf   :  { %2263 = vmatpush.msrb.mxu2 %v562_v49  ;;  %2218 = vmatpush.msra.mxu3 %v310_v50  ;;  %v618_v0 = vld [vmem:[#allocation5 + $0xfa8] sm:$0xff]  ;;  %v1941_v50 = vadd.f32 %v1940_v47, %v1921_v42 }
 0x1c0   :  { %2224 = vmatpush.msrb.mxu0 %v430_v52  ;;  %2244 = vmatpush.msrb.mxu1 %v494_v53  ;;  %v418_v1 = vld [vmem:[#allocation5 + $0x968] sm:$0xff]  ;;  %v1960_v53 = vpop.f32.mrf.mxu2 }
 0x1c1   :  { %2264 = vmatpush.msrb.mxu2 %v558_v55  ;;  %2283 = vmatpush.msrb.mxu3 %v626_v56  ;;  %v482_v2 = vld [vmem:[#allocation5 + $0xb68] sm:$0xff]  ;;  %v1961_v55 = vadd.f32 %v1960_v53, %v1941_v50 }
 0x1c2   :  { %2225 = vmatpush.msrb.mxu0 %v426_v57  ;;  %2245 = vmatpush.msrb.mxu1 %v490_v58  ;;  %v546_v3 = vld [vmem:[#allocation5 + $0xd68] sm:$0xff]  ;;  %v3774_v58 = vld [vmem:[#allocation2] sm:$0xff] }
 0x1c3   :  { %2265 = vmatpush.msrb.mxu2 %v554_v59  ;;  %2284 = vmatpush.msrb.mxu3 %v622_v60  ;;  %v614_v4 = vld [vmem:[#allocation5 + $0xf88] sm:$0xff] }
 0x1c4   :  { %2226 = vmatpush.msrb.mxu0 %v422_v61  ;;  %2246 = vmatpush.msrb.mxu1 %v486_v62  ;;  %v414_v5 = vld [vmem:[#allocation5 + $0x948] sm:$0xff]  ;;  %v1980_v62 = vpop.f32.mrf.mxu3 }
 0x1c5   :  { %2266 = vmatpush.msrb.mxu2 %v550_v63  ;;  %2285 = vmatpush.msrb.mxu3 %v618_v0  ;;  %v478_v6 = vld [vmem:[#allocation5 + $0xb48] sm:$0xff]  ;;  %v3776_v63 = vld [vmem:[#allocation2 + $0x10] sm:$0xff] }
 0x1c6   :  { %2227 = vmatpush.msrb.mxu0 %v418_v1  ;;  %2247 = vmatpush.msrb.mxu1 %v482_v2  ;;  %v542_v7 = vld [vmem:[#allocation5 + $0xd48] sm:$0xff]  ;;  %v4060_v1 = vadd.f32 %v1980_v62, %v1961_v55 }
 0x1c7   :  { %v610_v8 = vld [vmem:[#allocation5 + $0xf68] sm:$0xff]  ;;  %2267 = vmatpush.msrb.mxu2 %v546_v3  ;;  %2286 = vmatpush.msrb.mxu3 %v614_v4 }
 0x1c8   :  { %v410_v9 = vld [vmem:[#allocation5 + $0x928] sm:$0xff]  ;;  %2228 = vmatpush.msrb.mxu0 %v414_v5  ;;  %2248 = vmatpush.msrb.mxu1 %v478_v6  ;;  %v3777_v6 = vld [vmem:[#allocation2 + $0x18] sm:$0xff] }
 0x1c9   :  { %v474_v10 = vld [vmem:[#allocation5 + $0xb28] sm:$0xff]  ;;  %2268 = vmatpush.msrb.mxu2 %v542_v7  ;;  %2287 = vmatpush.msrb.mxu3 %v610_v8 }
 0x1ca   :  { %v538_v11 = vld [vmem:[#allocation5 + $0xd28] sm:$0xff]  ;;  %2229 = vmatpush.msrb.mxu0 %v410_v9  ;;  %2249 = vmatpush.msrb.mxu1 %v474_v10 }
 0x1cb   :  { %v606_v12 = vld [vmem:[#allocation5 + $0xf48] sm:$0xff]  ;;  %2269 = vmatpush.msrb.mxu2 %v538_v11  ;;  %2159 = vmatmul.f32.vlgmr.msra.gmra.mxu0 %v3774_v58 }
 0x1cc   :  { %v406_v13 = vld [vmem:[#allocation5 + $0x908] sm:$0xff]  ;;  %2288 = vmatpush.msrb.mxu3 %v606_v12  ;;  %2199 = vmatmul.f32.vlgmr.msra.gmra.mxu2 %v3776_v63 }
 0x1cd   :  { %v470_v14 = vld [vmem:[#allocation5 + $0xb08] sm:$0xff]  ;;  %2230 = vmatpush.msrb.mxu0 %v406_v13  ;;  %2219 = vmatmul.f32.vlgmr.msra.gmra.mxu3 %v3777_v6 }
 0x1ce   :  { %v534_v15 = vld [vmem:[#allocation5 + $0xd08] sm:$0xff]  ;;  %2250 = vmatpush.msrb.mxu1 %v470_v14 }
 0x1cf   :  { %v602_v16 = vld [vmem:[#allocation5 + $0xf28] sm:$0xff]  ;;  %2270 = vmatpush.msrb.mxu2 %v534_v15 }
 0x1d0   :  { %v402_v17 = vld [vmem:[#allocation5 + $0x8e8] sm:$0xff]  ;;  %2289 = vmatpush.msrb.mxu3 %v602_v16 }
 0x1d1   :  { %v466_v18 = vld [vmem:[#allocation5 + $0xae8] sm:$0xff]  ;;  %2231 = vmatpush.msrb.mxu0 %v402_v17  ;;  %v3778_v17 = vld [vmem:[#allocation2 + $0x30] sm:$0xff] }
 0x1d2   :  { %v530_v19 = vld [vmem:[#allocation5 + $0xce8] sm:$0xff]  ;;  %2251 = vmatpush.msrb.mxu1 %v466_v18 }
 0x1d3   :  { %v598_v20 = vld [vmem:[#allocation5 + $0xf08] sm:$0xff]  ;;  %2271 = vmatpush.msrb.mxu2 %v530_v19 }
 0x1d4   :  { %v398_v21 = vld [vmem:[#allocation5 + $0x8c8] sm:$0xff]  ;;  %2290 = vmatpush.msrb.mxu3 %v598_v20 }
 0x1d5   :  { %v462_v22 = vld [vmem:[#allocation5 + $0xac8] sm:$0xff]  ;;  %2232 = vmatpush.msrb.mxu0 %v398_v21  ;;  %v3779_v21 = vld [vmem:[#allocation2 + $0x20] sm:$0xff] }
 0x1d6   :  { %v526_v23 = vld [vmem:[#allocation5 + $0xcc8] sm:$0xff]  ;;  %2252 = vmatpush.msrb.mxu1 %v462_v22 }
 0x1d7   :  { %v594_v24 = vld [vmem:[#allocation5 + $0xee8] sm:$0xff]  ;;  %2272 = vmatpush.msrb.mxu2 %v526_v23  ;;  %v3780_v23 = vld [vmem:[#allocation2 + $0x38] sm:$0xff] }
 0x1d8   :  { %v394_v25 = vld [vmem:[#allocation5 + $0x8a8] sm:$0xff]  ;;  %2291 = vmatpush.msrb.mxu3 %v594_v24 }
 0x1d9   :  { %v458_v26 = vld [vmem:[#allocation5 + $0xaa8] sm:$0xff]  ;;  %2233 = vmatpush.msrb.mxu0 %v394_v25 }
 0x1da   :  { %v522_v27 = vld [vmem:[#allocation5 + $0xca8] sm:$0xff]  ;;  %2253 = vmatpush.msrb.mxu1 %v458_v26 }
 0x1db   :  { %v590_v28 = vld [vmem:[#allocation5 + $0xec8] sm:$0xff]  ;;  %2273 = vmatpush.msrb.mxu2 %v522_v27 }
 0x1dc   :  { %v390_v29 = vld [vmem:[#allocation5 + $0x888] sm:$0xff]  ;;  %2292 = vmatpush.msrb.mxu3 %v590_v28 }
 0x1dd   :  { %v454_v30 = vld [vmem:[#allocation5 + $0xa88] sm:$0xff]  ;;  %2234 = vmatpush.msrb.mxu0 %v390_v29 }
 0x1de   :  { %v518_v31 = vld [vmem:[#allocation5 + $0xc88] sm:$0xff]  ;;  %2254 = vmatpush.msrb.mxu1 %v454_v30 }
 0x1df   :  { %v586_v32 = vld [vmem:[#allocation5 + $0xea8] sm:$0xff]  ;;  %2274 = vmatpush.msrb.mxu2 %v518_v31 }
 0x1e0   :  { %v386_v33 = vld [vmem:[#allocation5 + $0x868] sm:$0xff]  ;;  %2293 = vmatpush.msrb.mxu3 %v586_v32 }
 0x1e1   :  { %v450_v34 = vld [vmem:[#allocation5 + $0xa68] sm:$0xff]  ;;  %2235 = vmatpush.msrb.mxu0 %v386_v33 }
 0x1e2   :  { %v514_v35 = vld [vmem:[#allocation5 + $0xc68] sm:$0xff]  ;;  %2255 = vmatpush.msrb.mxu1 %v450_v34 }
 0x1e3   :  { %v582_v36 = vld [vmem:[#allocation5 + $0xe88] sm:$0xff]  ;;  %2275 = vmatpush.msrb.mxu2 %v514_v35 }
 0x1e4   :  { %v382_v37 = vld [vmem:[#allocation5 + $0x848] sm:$0xff]  ;;  %2294 = vmatpush.msrb.mxu3 %v582_v36 }
 0x1e5   :  { %v446_v38 = vld [vmem:[#allocation5 + $0xa48] sm:$0xff]  ;;  %2236 = vmatpush.msrb.mxu0 %v382_v37 }
 0x1e6   :  { %v510_v40 = vld [vmem:[#allocation5 + $0xc48] sm:$0xff]  ;;  %2256 = vmatpush.msrb.mxu1 %v446_v38 }
 0x1e7   :  { %v578_v41 = vld [vmem:[#allocation5 + $0xe68] sm:$0xff]  ;;  %2276 = vmatpush.msrb.mxu2 %v510_v40 }
 0x1e8   :  { %v378_v43 = vld [vmem:[#allocation5 + $0x828] sm:$0xff]  ;;  %2295 = vmatpush.msrb.mxu3 %v578_v41 }
 0x1e9   :  { %v442_v44 = vld [vmem:[#allocation5 + $0xa28] sm:$0xff]  ;;  %2237 = vmatpush.msrb.mxu0 %v378_v43 }
 0x1ea   :  { %v506_v45 = vld [vmem:[#allocation5 + $0xc28] sm:$0xff]  ;;  %2257 = vmatpush.msrb.mxu1 %v442_v44 }
 0x1eb   :  { %v574_v46 = vld [vmem:[#allocation5 + $0xe48] sm:$0xff]  ;;  %2277 = vmatpush.msrb.mxu2 %v506_v45 }
 0x1ec   :  { %v374_v48 = vld [vmem:[#allocation5 + $0x808] sm:$0xff]  ;;  %2296 = vmatpush.msrb.mxu3 %v574_v46 }
 0x1ed   :  { %v438_v49 = vld [vmem:[#allocation5 + $0xa08] sm:$0xff]  ;;  %2238 = vmatpush.msrb.mxu0 %v374_v48 }
 0x1ee   :  { %v502_v51 = vld [vmem:[#allocation5 + $0xc08] sm:$0xff]  ;;  %2258 = vmatpush.msrb.mxu1 %v438_v49  ;;  %2239 = vmatmul.f32.vlgmr.msrb.gmra.mxu0 %v3779_v21 }
 0x1ef   :  { %v570_v52 = vld [vmem:[#allocation5 + $0xe28] sm:$0xff]  ;;  %2278 = vmatpush.msrb.mxu2 %v502_v51  ;;  %v2000_v51 = vpop.f32.mrf.mxu0 }
 0x1f0   :  { %v690_v54 = vld [vmem:[#allocation5 + $0x11e8] sm:$0xff]  ;;  %2297 = vmatpush.msrb.mxu3 %v570_v52  ;;  %2279 = vmatmul.f32.vlgmr.msrb.gmra.mxu2 %v3778_v17 }
 0x1f1   :  { %v754_v56 = vld [vmem:[#allocation5 + $0x13e8] sm:$0xff]  ;;  %2303 = vmatpush.msra.mxu0 %v690_v54  ;;  %v2001_v54 = vadd.f32 %v2000_v51, %v4060_v1 }
 0x1f2   :  { %v818_v57 = vld [vmem:[#allocation5 + $0x15e8] sm:$0xff] }
 0x1f3   :  { %v3775_v59 = vld [vmem:[#allocation2 + $0x8] sm:$0xff]  ;;  %2343 = vmatpush.msra.mxu2 %v818_v57 }
 0x1f4   :  { %2179 = vmatmul.f32.vlgmr.msra.gmra.mxu1 %v3775_v59  ;;  %v566_v60 = vld [vmem:[#allocation5 + $0xe08] sm:$0xff]  ;;  %v2020_v59 = vpop.f32.mrf.mxu1 }
 0x1f5   :  { %v686_v61 = vld [vmem:[#allocation5 + $0x11c8] sm:$0xff]  ;;  %2323 = vmatpush.msra.mxu1 %v754_v56  ;;  %2298 = vmatpush.msrb.mxu3 %v566_v60  ;;  %v2021_v62 = vadd.f32 %v2020_v59, %v2001_v54 }
 0x1f6   :  { %v750_v0 = vld [vmem:[#allocation5 + $0x13c8] sm:$0xff]  ;;  %2304 = vmatpush.msra.mxu0 %v686_v61  ;;  %2299 = vmatmul.f32.vlgmr.msrb.gmra.mxu3 %v3780_v23 }
 0x1f7   :  { %v814_v2 = vld [vmem:[#allocation5 + $0x15c8] sm:$0xff]  ;;  %2324 = vmatpush.msra.mxu1 %v750_v0 }
 0x1f8   :  { %v882_v3 = vld [vmem:[#allocation5 + $0x17e8] sm:$0xff]  ;;  %2344 = vmatpush.msra.mxu2 %v814_v2 }
 0x1f9   :  { %v682_v4 = vld [vmem:[#allocation5 + $0x11a8] sm:$0xff]  ;;  %2363 = vmatpush.msra.mxu3 %v882_v3  ;;  %v2040_v3 = vpop.f32.mrf.mxu2 }
 0x1fa   :  { %v746_v5 = vld [vmem:[#allocation5 + $0x13a8] sm:$0xff]  ;;  %2305 = vmatpush.msra.mxu0 %v682_v4  ;;  %v2041_v6 = vadd.f32 %v2040_v3, %v2021_v62 }
 0x1fb   :  { %v810_v7 = vld [vmem:[#allocation5 + $0x15a8] sm:$0xff]  ;;  %2325 = vmatpush.msra.mxu1 %v746_v5 }
 0x1fc   :  { %v878_v8 = vld [vmem:[#allocation5 + $0x17c8] sm:$0xff]  ;;  %2345 = vmatpush.msra.mxu2 %v810_v7 }
 0x1fd   :  { %v678_v9 = vld [vmem:[#allocation5 + $0x1188] sm:$0xff]  ;;  %2364 = vmatpush.msra.mxu3 %v878_v8 }
 0x1fe   :  { %v742_v10 = vld [vmem:[#allocation5 + $0x1388] sm:$0xff]  ;;  %2306 = vmatpush.msra.mxu0 %v678_v9  ;;  %v2060_v9 = vpop.f32.mrf.mxu3 }
 0x1ff   :  { %v806_v11 = vld [vmem:[#allocation5 + $0x1588] sm:$0xff]  ;;  %2326 = vmatpush.msra.mxu1 %v742_v10 }
 0x200   :  { %v874_v12 = vld [vmem:[#allocation5 + $0x17a8] sm:$0xff]  ;;  %2346 = vmatpush.msra.mxu2 %v806_v11 }
 0x201   :  { %v674_v13 = vld [vmem:[#allocation5 + $0x1168] sm:$0xff]  ;;  %2365 = vmatpush.msra.mxu3 %v874_v12  ;;  %v4063_v12 = vadd.f32 %v2060_v9, %v2041_v6 }
 0x202   :  { %v738_v14 = vld [vmem:[#allocation5 + $0x1368] sm:$0xff]  ;;  %2307 = vmatpush.msra.mxu0 %v674_v13  ;;  %v3782_v13 = vld [vmem:[#allocation2 + $0x40] sm:$0xff] }
 0x203   :  { %v802_v15 = vld [vmem:[#allocation5 + $0x1568] sm:$0xff]  ;;  %2327 = vmatpush.msra.mxu1 %v738_v14  ;;  %v3783_v14 = vld [vmem:[#allocation2 + $0x50] sm:$0xff] }
 0x204   :  { %v870_v16 = vld [vmem:[#allocation5 + $0x1788] sm:$0xff]  ;;  %2347 = vmatpush.msra.mxu2 %v802_v15 }
 0x205   :  { %v670_v18 = vld [vmem:[#allocation5 + $0x1148] sm:$0xff]  ;;  %2366 = vmatpush.msra.mxu3 %v870_v16 }
 0x206   :  { %v734_v19 = vld [vmem:[#allocation5 + $0x1348] sm:$0xff]  ;;  %2308 = vmatpush.msra.mxu0 %v670_v18 }
 0x207   :  { %v798_v20 = vld [vmem:[#allocation5 + $0x1548] sm:$0xff]  ;;  %2328 = vmatpush.msra.mxu1 %v734_v19 }
 0x208   :  { %v866_v22 = vld [vmem:[#allocation5 + $0x1768] sm:$0xff]  ;;  %2348 = vmatpush.msra.mxu2 %v798_v20  ;;  %v3785_v20 = vld [vmem:[#allocation2 + $0x58] sm:$0xff] }
 0x209   :  { %v666_v24 = vld [vmem:[#allocation5 + $0x1128] sm:$0xff]  ;;  %2367 = vmatpush.msra.mxu3 %v866_v22 }
 0x20a   :  { %v730_v25 = vld [vmem:[#allocation5 + $0x1328] sm:$0xff]  ;;  %2309 = vmatpush.msra.mxu0 %v666_v24 }
 0x20b   :  { %v794_v26 = vld [vmem:[#allocation5 + $0x1528] sm:$0xff]  ;;  %2329 = vmatpush.msra.mxu1 %v730_v25 }
 0x20c   :  { %v862_v27 = vld [vmem:[#allocation5 + $0x1748] sm:$0xff]  ;;  %2349 = vmatpush.msra.mxu2 %v794_v26 }
 0x20d   :  { %v3781_v28 = vld [vmem:[#allocation2 + $0x28] sm:$0xff]  ;;  %2368 = vmatpush.msra.mxu3 %v862_v27 }
 0x20e   :  { %2259 = vmatmul.f32.vlgmr.msrb.gmra.mxu1 %v3781_v28  ;;  %v662_v29 = vld [vmem:[#allocation5 + $0x1108] sm:$0xff] }
 0x20f   :  { %v726_v30 = vld [vmem:[#allocation5 + $0x1308] sm:$0xff]  ;;  %2310 = vmatpush.msra.mxu0 %v662_v29 }
 0x210   :  { %v790_v31 = vld [vmem:[#allocation5 + $0x1508] sm:$0xff]  ;;  %2330 = vmatpush.msra.mxu1 %v726_v30 }
 0x211   :  { %v858_v32 = vld [vmem:[#allocation5 + $0x1728] sm:$0xff]  ;;  %2350 = vmatpush.msra.mxu2 %v790_v31 }
 0x212   :  { %v658_v33 = vld [vmem:[#allocation5 + $0x10e8] sm:$0xff]  ;;  %2369 = vmatpush.msra.mxu3 %v858_v32 }
 0x213   :  { %v722_v34 = vld [vmem:[#allocation5 + $0x12e8] sm:$0xff]  ;;  %2311 = vmatpush.msra.mxu0 %v658_v33 }
 0x214   :  { %v786_v35 = vld [vmem:[#allocation5 + $0x14e8] sm:$0xff]  ;;  %2331 = vmatpush.msra.mxu1 %v722_v34 }
 0x215   :  { %v854_v36 = vld [vmem:[#allocation5 + $0x1708] sm:$0xff]  ;;  %2351 = vmatpush.msra.mxu2 %v786_v35 }
 0x216   :  { %v654_v37 = vld [vmem:[#allocation5 + $0x10c8] sm:$0xff]  ;;  %2370 = vmatpush.msra.mxu3 %v854_v36 }
 0x217   :  { %v718_v38 = vld [vmem:[#allocation5 + $0x12c8] sm:$0xff]  ;;  %2312 = vmatpush.msra.mxu0 %v654_v37 }
 0x218   :  { %v782_v39 = vld [vmem:[#allocation5 + $0x14c8] sm:$0xff]  ;;  %2332 = vmatpush.msra.mxu1 %v718_v38 }
 0x219   :  { %v850_v40 = vld [vmem:[#allocation5 + $0x16e8] sm:$0xff]  ;;  %2352 = vmatpush.msra.mxu2 %v782_v39 }
 0x21a   :  { %v650_v41 = vld [vmem:[#allocation5 + $0x10a8] sm:$0xff]  ;;  %2371 = vmatpush.msra.mxu3 %v850_v40 }
 0x21b   :  { %v714_v42 = vld [vmem:[#allocation5 + $0x12a8] sm:$0xff]  ;;  %2313 = vmatpush.msra.mxu0 %v650_v41 }
 0x21c   :  { %v778_v43 = vld [vmem:[#allocation5 + $0x14a8] sm:$0xff]  ;;  %2333 = vmatpush.msra.mxu1 %v714_v42 }
 0x21d   :  { %v846_v44 = vld [vmem:[#allocation5 + $0x16c8] sm:$0xff]  ;;  %2353 = vmatpush.msra.mxu2 %v778_v43 }
 0x21e   :  { %v646_v45 = vld [vmem:[#allocation5 + $0x1088] sm:$0xff]  ;;  %2372 = vmatpush.msra.mxu3 %v846_v44 }
 0x21f   :  { %v710_v46 = vld [vmem:[#allocation5 + $0x1288] sm:$0xff]  ;;  %2314 = vmatpush.msra.mxu0 %v646_v45 }
 0x220   :  { %v774_v47 = vld [vmem:[#allocation5 + $0x1488] sm:$0xff]  ;;  %2334 = vmatpush.msra.mxu1 %v710_v46 }
 0x221   :  { %v842_v48 = vld [vmem:[#allocation5 + $0x16a8] sm:$0xff]  ;;  %2354 = vmatpush.msra.mxu2 %v774_v47 }
 0x222   :  { %v642_v49 = vld [vmem:[#allocation5 + $0x1068] sm:$0xff]  ;;  %2373 = vmatpush.msra.mxu3 %v842_v48 }
 0x223   :  { %v706_v50 = vld [vmem:[#allocation5 + $0x1268] sm:$0xff]  ;;  %2315 = vmatpush.msra.mxu0 %v642_v49 }
 0x224   :  { %v770_v52 = vld [vmem:[#allocation5 + $0x1468] sm:$0xff]  ;;  %2335 = vmatpush.msra.mxu1 %v706_v50 }
 0x225   :  { %v838_v53 = vld [vmem:[#allocation5 + $0x1688] sm:$0xff]  ;;  %2355 = vmatpush.msra.mxu2 %v770_v52 }
 0x226   :  { %v638_v55 = vld [vmem:[#allocation5 + $0x1048] sm:$0xff]  ;;  %2374 = vmatpush.msra.mxu3 %v838_v53 }
 0x227   :  { %v702_v56 = vld [vmem:[#allocation5 + $0x1248] sm:$0xff]  ;;  %2316 = vmatpush.msra.mxu0 %v638_v55 }
 0x228   :  { %v766_v57 = vld [vmem:[#allocation5 + $0x1448] sm:$0xff]  ;;  %2336 = vmatpush.msra.mxu1 %v702_v56 }
 0x229   :  { %v834_v58 = vld [vmem:[#allocation5 + $0x1668] sm:$0xff]  ;;  %2356 = vmatpush.msra.mxu2 %v766_v57 }
 0x22a   :  { %v634_v60 = vld [vmem:[#allocation5 + $0x1028] sm:$0xff]  ;;  %2375 = vmatpush.msra.mxu3 %v834_v58 }
 0x22b   :  { %v698_v61 = vld [vmem:[#allocation5 + $0x1228] sm:$0xff]  ;;  %2317 = vmatpush.msra.mxu0 %v634_v60 }
 0x22c   :  { %v762_v63 = vld [vmem:[#allocation5 + $0x1428] sm:$0xff]  ;;  %2337 = vmatpush.msra.mxu1 %v698_v61 }
 0x22d   :  { %v830_v0 = vld [vmem:[#allocation5 + $0x1648] sm:$0xff]  ;;  %2357 = vmatpush.msra.mxu2 %v762_v63  ;;  %v2080_v63 = vpop.f32.mrf.mxu0 }
 0x22e   :  { %v630_v1 = vld [vmem:[#allocation5 + $0x1008] sm:$0xff]  ;;  %2376 = vmatpush.msra.mxu3 %v830_v0 }
 0x22f   :  { %v694_v2 = vld [vmem:[#allocation5 + $0x1208] sm:$0xff]  ;;  %2318 = vmatpush.msra.mxu0 %v630_v1 }
 0x230   :  { %v758_v4 = vld [vmem:[#allocation5 + $0x1408] sm:$0xff]  ;;  %2338 = vmatpush.msra.mxu1 %v694_v2  ;;  %2319 = vmatmul.f32.vlgmr.msra.gmra.mxu0 %v3782_v13  ;;  %v2081_v2 = vadd.f32 %v2080_v63, %v4063_v12 }
 0x231   :  { %v826_v5 = vld [vmem:[#allocation5 + $0x1628] sm:$0xff]  ;;  %2358 = vmatpush.msra.mxu2 %v758_v4 }
 0x232   :  { %v946_v7 = vld [vmem:[#allocation5 + $0x19e8] sm:$0xff]  ;;  %2377 = vmatpush.msra.mxu3 %v826_v5  ;;  %2359 = vmatmul.f32.vlgmr.msra.gmra.mxu2 %v3783_v14 }
 0x233   :  { %v1010_v8 = vld [vmem:[#allocation5 + $0x1be8] sm:$0xff]  ;;  %2383 = vmatpush.msrb.mxu0 %v946_v7  ;;  %v2100_v7 = vpop.f32.mrf.mxu1 }
 0x234   :  { %v1074_v10 = vld [vmem:[#allocation5 + $0x1de8] sm:$0xff]  ;;  %2403 = vmatpush.msrb.mxu1 %v1010_v8 }
 0x235   :  { %v822_v11 = vld [vmem:[#allocation5 + $0x1608] sm:$0xff]  ;;  %2423 = vmatpush.msrb.mxu2 %v1074_v10  ;;  %v4066_v10 = vadd.f32 %v2100_v7, %v2081_v2 }
 0x236   :  { %v942_v15 = vld [vmem:[#allocation5 + $0x19c8] sm:$0xff]  ;;  %2378 = vmatpush.msra.mxu3 %v822_v11 }
 0x237   :  { %v1006_v16 = vld [vmem:[#allocation5 + $0x1bc8] sm:$0xff]  ;;  %2379 = vmatmul.f32.vlgmr.msra.gmra.mxu3 %v3785_v20  ;;  %2384 = vmatpush.msrb.mxu0 %v942_v15 }
 0x238   :  { %v1070_v17 = vld [vmem:[#allocation5 + $0x1dc8] sm:$0xff]  ;;  %2404 = vmatpush.msrb.mxu1 %v1006_v16 }
 0x239   :  { %v1138_v18 = vld [vmem:[#allocation5 + $0x1fe8] sm:$0xff]  ;;  %2424 = vmatpush.msrb.mxu2 %v1070_v17 }
 0x23a   :  { %v3784_v19 = vld [vmem:[#allocation2 + $0x48] sm:$0xff]  ;;  %2443 = vmatpush.msrb.mxu3 %v1138_v18 }
 0x23b   :  { %2339 = vmatmul.f32.vlgmr.msra.gmra.mxu1 %v3784_v19  ;;  %v938_v21 = vld [vmem:[#allocation5 + $0x19a8] sm:$0xff] }
 0x23c   :  { %v1002_v22 = vld [vmem:[#allocation5 + $0x1ba8] sm:$0xff]  ;;  %2385 = vmatpush.msrb.mxu0 %v938_v21  ;;  %v3786_v21 = vld [vmem:[#allocation2 + $0x60] sm:$0xff] }
 0x23d   :  { %v1066_v23 = vld [vmem:[#allocation5 + $0x1da8] sm:$0xff]  ;;  %2405 = vmatpush.msrb.mxu1 %v1002_v22  ;;  %v3787_v22 = vld [vmem:[#allocation2 + $0x70] sm:$0xff] }
 0x23e   :  { %v1134_v24 = vld [vmem:[#allocation5 + $0x1fc8] sm:$0xff]  ;;  %2425 = vmatpush.msrb.mxu2 %v1066_v23 }
 0x23f   :  { %v934_v25 = vld [vmem:[#allocation5 + $0x1988] sm:$0xff]  ;;  %2444 = vmatpush.msrb.mxu3 %v1134_v24 }
 0x240   :  { %v998_v26 = vld [vmem:[#allocation5 + $0x1b88] sm:$0xff]  ;;  %2386 = vmatpush.msrb.mxu0 %v934_v25 }
 0x241   :  { %v1062_v27 = vld [vmem:[#allocation5 + $0x1d88] sm:$0xff]  ;;  %2406 = vmatpush.msrb.mxu1 %v998_v26 }
 0x242   :  { %v1130_v28 = vld [vmem:[#allocation5 + $0x1fa8] sm:$0xff]  ;;  %2426 = vmatpush.msrb.mxu2 %v1062_v27 }
 0x243   :  { %v930_v29 = vld [vmem:[#allocation5 + $0x1968] sm:$0xff]  ;;  %2445 = vmatpush.msrb.mxu3 %v1130_v28  ;;  %v3789_v28 = vld [vmem:[#allocation2 + $0x78] sm:$0xff] }
 0x244   :  { %v994_v30 = vld [vmem:[#allocation5 + $0x1b68] sm:$0xff]  ;;  %2387 = vmatpush.msrb.mxu0 %v930_v29 }
 0x245   :  { %v1058_v31 = vld [vmem:[#allocation5 + $0x1d68] sm:$0xff]  ;;  %2407 = vmatpush.msrb.mxu1 %v994_v30 }
 0x246   :  { %v1126_v32 = vld [vmem:[#allocation5 + $0x1f88] sm:$0xff]  ;;  %2427 = vmatpush.msrb.mxu2 %v1058_v31 }
 0x247   :  { %v926_v33 = vld [vmem:[#allocation5 + $0x1948] sm:$0xff]  ;;  %2446 = vmatpush.msrb.mxu3 %v1126_v32 }
 0x248   :  { %v990_v34 = vld [vmem:[#allocation5 + $0x1b48] sm:$0xff]  ;;  %2388 = vmatpush.msrb.mxu0 %v926_v33 }
 0x249   :  { %v1054_v35 = vld [vmem:[#allocation5 + $0x1d48] sm:$0xff]  ;;  %2408 = vmatpush.msrb.mxu1 %v990_v34 }
 0x24a   :  { %v1122_v36 = vld [vmem:[#allocation5 + $0x1f68] sm:$0xff]  ;;  %2428 = vmatpush.msrb.mxu2 %v1054_v35 }
 0x24b   :  { %v922_v37 = vld [vmem:[#allocation5 + $0x1928] sm:$0xff]  ;;  %2447 = vmatpush.msrb.mxu3 %v1122_v36 }
 0x24c   :  { %v986_v38 = vld [vmem:[#allocation5 + $0x1b28] sm:$0xff]  ;;  %2389 = vmatpush.msrb.mxu0 %v922_v37 }
 0x24d   :  { %v1050_v39 = vld [vmem:[#allocation5 + $0x1d28] sm:$0xff]  ;;  %2409 = vmatpush.msrb.mxu1 %v986_v38 }
 0x24e   :  { %v1118_v40 = vld [vmem:[#allocation5 + $0x1f48] sm:$0xff]  ;;  %2429 = vmatpush.msrb.mxu2 %v1050_v39 }
 0x24f   :  { %v918_v41 = vld [vmem:[#allocation5 + $0x1908] sm:$0xff]  ;;  %2448 = vmatpush.msrb.mxu3 %v1118_v40 }
 0x250   :  { %v982_v42 = vld [vmem:[#allocation5 + $0x1b08] sm:$0xff]  ;;  %2390 = vmatpush.msrb.mxu0 %v918_v41 }
 0x251   :  { %v1046_v43 = vld [vmem:[#allocation5 + $0x1d08] sm:$0xff]  ;;  %2410 = vmatpush.msrb.mxu1 %v982_v42 }
 0x252   :  { %v1114_v44 = vld [vmem:[#allocation5 + $0x1f28] sm:$0xff]  ;;  %2430 = vmatpush.msrb.mxu2 %v1046_v43 }
 0x253   :  { %v914_v45 = vld [vmem:[#allocation5 + $0x18e8] sm:$0xff]  ;;  %2449 = vmatpush.msrb.mxu3 %v1114_v44 }
 0x254   :  { %v978_v46 = vld [vmem:[#allocation5 + $0x1ae8] sm:$0xff]  ;;  %2391 = vmatpush.msrb.mxu0 %v914_v45 }
 0x255   :  { %v1042_v47 = vld [vmem:[#allocation5 + $0x1ce8] sm:$0xff]  ;;  %2411 = vmatpush.msrb.mxu1 %v978_v46 }
 0x256   :  { %v1110_v48 = vld [vmem:[#allocation5 + $0x1f08] sm:$0xff]  ;;  %2431 = vmatpush.msrb.mxu2 %v1042_v47 }
 0x257   :  { %v910_v49 = vld [vmem:[#allocation5 + $0x18c8] sm:$0xff]  ;;  %2450 = vmatpush.msrb.mxu3 %v1110_v48 }
 0x258   :  { %v974_v50 = vld [vmem:[#allocation5 + $0x1ac8] sm:$0xff]  ;;  %2392 = vmatpush.msrb.mxu0 %v910_v49 }
 0x259   :  { %v1038_v51 = vld [vmem:[#allocation5 + $0x1cc8] sm:$0xff]  ;;  %2412 = vmatpush.msrb.mxu1 %v974_v50 }
 0x25a   :  { %v1106_v52 = vld [vmem:[#allocation5 + $0x1ee8] sm:$0xff]  ;;  %2432 = vmatpush.msrb.mxu2 %v1038_v51 }
 0x25b   :  { %v906_v53 = vld [vmem:[#allocation5 + $0x18a8] sm:$0xff]  ;;  %2451 = vmatpush.msrb.mxu3 %v1106_v52 }
 0x25c   :  { %v970_v54 = vld [vmem:[#allocation5 + $0x1aa8] sm:$0xff]  ;;  %2393 = vmatpush.msrb.mxu0 %v906_v53 }
 0x25d   :  { %v1034_v55 = vld [vmem:[#allocation5 + $0x1ca8] sm:$0xff]  ;;  %2413 = vmatpush.msrb.mxu1 %v970_v54 }
 0x25e   :  { %v1102_v56 = vld [vmem:[#allocation5 + $0x1ec8] sm:$0xff]  ;;  %2433 = vmatpush.msrb.mxu2 %v1034_v55 }
 0x25f   :  { %v902_v57 = vld [vmem:[#allocation5 + $0x1888] sm:$0xff]  ;;  %2452 = vmatpush.msrb.mxu3 %v1102_v56 }
 0x260   :  { %v966_v58 = vld [vmem:[#allocation5 + $0x1a88] sm:$0xff]  ;;  %2394 = vmatpush.msrb.mxu0 %v902_v57 }
 0x261   :  { %v1030_v59 = vld [vmem:[#allocation5 + $0x1c88] sm:$0xff]  ;;  %2414 = vmatpush.msrb.mxu1 %v966_v58 }
 0x262   :  { %v1098_v60 = vld [vmem:[#allocation5 + $0x1ea8] sm:$0xff]  ;;  %2434 = vmatpush.msrb.mxu2 %v1030_v59 }
 0x263   :  { %v898_v61 = vld [vmem:[#allocation5 + $0x1868] sm:$0xff]  ;;  %2453 = vmatpush.msrb.mxu3 %v1098_v60 }
 0x264   :  { %v962_v62 = vld [vmem:[#allocation5 + $0x1a68] sm:$0xff]  ;;  %2395 = vmatpush.msrb.mxu0 %v898_v61 }
 0x265   :  { %v1026_v0 = vld [vmem:[#allocation5 + $0x1c68] sm:$0xff]  ;;  %2415 = vmatpush.msrb.mxu1 %v962_v62 }
 0x266   :  { %v1094_v1 = vld [vmem:[#allocation5 + $0x1e88] sm:$0xff]  ;;  %2435 = vmatpush.msrb.mxu2 %v1026_v0 }
 0x267   :  { %v894_v3 = vld [vmem:[#allocation5 + $0x1848] sm:$0xff]  ;;  %2454 = vmatpush.msrb.mxu3 %v1094_v1 }
 0x268   :  { %v958_v4 = vld [vmem:[#allocation5 + $0x1a48] sm:$0xff]  ;;  %2396 = vmatpush.msrb.mxu0 %v894_v3 }
 0x269   :  { %v1022_v5 = vld [vmem:[#allocation5 + $0x1c48] sm:$0xff]  ;;  %2416 = vmatpush.msrb.mxu1 %v958_v4 }
 0x26a   :  { %v1090_v6 = vld [vmem:[#allocation5 + $0x1e68] sm:$0xff]  ;;  %2436 = vmatpush.msrb.mxu2 %v1022_v5 }
 0x26b   :  { %v890_v8 = vld [vmem:[#allocation5 + $0x1828] sm:$0xff]  ;;  %2455 = vmatpush.msrb.mxu3 %v1090_v6 }
 0x26c   :  { %v954_v9 = vld [vmem:[#allocation5 + $0x1a28] sm:$0xff]  ;;  %2397 = vmatpush.msrb.mxu0 %v890_v8 }
 0x26d   :  { %v1018_v11 = vld [vmem:[#allocation5 + $0x1c28] sm:$0xff]  ;;  %2417 = vmatpush.msrb.mxu1 %v954_v9 }
 0x26e   :  { %v1086_v13 = vld [vmem:[#allocation5 + $0x1e48] sm:$0xff]  ;;  %2437 = vmatpush.msrb.mxu2 %v1018_v11 }
 0x26f   :  { %v886_v12 = vld [vmem:[#allocation5 + $0x1808] sm:$0xff]  ;;  %2456 = vmatpush.msrb.mxu3 %v1086_v13 }
 0x270   :  { %v950_v14 = vld [vmem:[#allocation5 + $0x1a08] sm:$0xff]  ;;  %2398 = vmatpush.msrb.mxu0 %v886_v12 }
 0x271   :  { %v1014_v15 = vld [vmem:[#allocation5 + $0x1c08] sm:$0xff]  ;;  %2418 = vmatpush.msrb.mxu1 %v950_v14  ;;  %2399 = vmatmul.f32.vlgmr.msrb.gmra.mxu0 %v3786_v21 }
 0x272   :  { %v1082_v16 = vld [vmem:[#allocation5 + $0x1e28] sm:$0xff]  ;;  %2438 = vmatpush.msrb.mxu2 %v1014_v15 }
 0x273   :  { %v1202_v17 = vld [vmem:[#allocation5 + $0x21e8] sm:$0xff]  ;;  %2457 = vmatpush.msrb.mxu3 %v1082_v16  ;;  %2439 = vmatmul.f32.vlgmr.msrb.gmra.mxu2 %v3787_v22 }
 0x274   :  { %v1266_v18 = vld [vmem:[#allocation5 + $0x23e8] sm:$0xff]  ;;  %2463 = vmatpush.msra.mxu0 %v1202_v17 }
 0x275   :  { %v1330_v19 = vld [vmem:[#allocation5 + $0x25e8] sm:$0xff]  ;;  %2483 = vmatpush.msra.mxu1 %v1266_v18 }
 0x276   :  { %v1078_v20 = vld [vmem:[#allocation5 + $0x1e08] sm:$0xff]  ;;  %2503 = vmatpush.msra.mxu2 %v1330_v19 }
 0x277   :  { %v1198_v23 = vld [vmem:[#allocation5 + $0x21c8] sm:$0xff]  ;;  %2458 = vmatpush.msrb.mxu3 %v1078_v20 }
 0x278   :  { %v1262_v24 = vld [vmem:[#allocation5 + $0x23c8] sm:$0xff]  ;;  %2459 = vmatmul.f32.vlgmr.msrb.gmra.mxu3 %v3789_v28  ;;  %2464 = vmatpush.msra.mxu0 %v1198_v23 }
 0x279   :  { %v1326_v25 = vld [vmem:[#allocation5 + $0x25c8] sm:$0xff]  ;;  %2484 = vmatpush.msra.mxu1 %v1262_v24 }
 0x27a   :  { %v1394_v26 = vld [vmem:[#allocation5 + $0x27e8] sm:$0xff]  ;;  %2504 = vmatpush.msra.mxu2 %v1326_v25 }
 0x27b   :  { %v3788_v27 = vld [vmem:[#allocation2 + $0x68] sm:$0xff]  ;;  %2523 = vmatpush.msra.mxu3 %v1394_v26  ;;  %v3790_v26 = vld [vmem:[#allocation2 + $0x80] sm:$0xff] }
 0x27c   :  { %2419 = vmatmul.f32.vlgmr.msrb.gmra.mxu1 %v3788_v27  ;;  %v1194_v29 = vld [vmem:[#allocation5 + $0x21a8] sm:$0xff]  ;;  %v3791_v27 = vld [vmem:[#allocation2 + $0x90] sm:$0xff] }
 0x27d   :  { %v1258_v30 = vld [vmem:[#allocation5 + $0x23a8] sm:$0xff]  ;;  %2465 = vmatpush.msra.mxu0 %v1194_v29 }
 0x27e   :  { %v1322_v31 = vld [vmem:[#allocation5 + $0x25a8] sm:$0xff]  ;;  %2485 = vmatpush.msra.mxu1 %v1258_v30 }
 0x27f   :  { %v1390_v32 = vld [vmem:[#allocation5 + $0x27c8] sm:$0xff]  ;;  %2505 = vmatpush.msra.mxu2 %v1322_v31 }
 0x280   :  { %v1190_v33 = vld [vmem:[#allocation5 + $0x2188] sm:$0xff]  ;;  %2524 = vmatpush.msra.mxu3 %v1390_v32 }
 0x281   :  { %v1254_v34 = vld [vmem:[#allocation5 + $0x2388] sm:$0xff]  ;;  %2466 = vmatpush.msra.mxu0 %v1190_v33  ;;  %v3793_v33 = vld [vmem:[#allocation2 + $0x98] sm:$0xff] }
 0x282   :  { %v1318_v35 = vld [vmem:[#allocation5 + $0x2588] sm:$0xff]  ;;  %2486 = vmatpush.msra.mxu1 %v1254_v34 }
 0x283   :  { %v1386_v36 = vld [vmem:[#allocation5 + $0x27a8] sm:$0xff]  ;;  %2506 = vmatpush.msra.mxu2 %v1318_v35 }
 0x284   :  { %v1186_v37 = vld [vmem:[#allocation5 + $0x2168] sm:$0xff]  ;;  %2525 = vmatpush.msra.mxu3 %v1386_v36 }
 0x285   :  { %v1250_v38 = vld [vmem:[#allocation5 + $0x2368] sm:$0xff]  ;;  %2467 = vmatpush.msra.mxu0 %v1186_v37 }
 0x286   :  { %v1314_v39 = vld [vmem:[#allocation5 + $0x2568] sm:$0xff]  ;;  %2487 = vmatpush.msra.mxu1 %v1250_v38 }
 0x287   :  { %v1382_v40 = vld [vmem:[#allocation5 + $0x2788] sm:$0xff]  ;;  %2507 = vmatpush.msra.mxu2 %v1314_v39 }
 0x288   :  { %v1182_v41 = vld [vmem:[#allocation5 + $0x2148] sm:$0xff]  ;;  %2526 = vmatpush.msra.mxu3 %v1382_v40 }
 0x289   :  { %v1246_v42 = vld [vmem:[#allocation5 + $0x2348] sm:$0xff]  ;;  %2468 = vmatpush.msra.mxu0 %v1182_v41 }
 0x28a   :  { %v1310_v43 = vld [vmem:[#allocation5 + $0x2548] sm:$0xff]  ;;  %2488 = vmatpush.msra.mxu1 %v1246_v42 }
 0x28b   :  { %v1378_v44 = vld [vmem:[#allocation5 + $0x2768] sm:$0xff]  ;;  %2508 = vmatpush.msra.mxu2 %v1310_v43 }
 0x28c   :  { %v1178_v45 = vld [vmem:[#allocation5 + $0x2128] sm:$0xff]  ;;  %2527 = vmatpush.msra.mxu3 %v1378_v44 }
 0x28d   :  { %v1242_v46 = vld [vmem:[#allocation5 + $0x2328] sm:$0xff]  ;;  %2469 = vmatpush.msra.mxu0 %v1178_v45 }
 0x28e   :  { %v1306_v47 = vld [vmem:[#allocation5 + $0x2528] sm:$0xff]  ;;  %2489 = vmatpush.msra.mxu1 %v1242_v46 }
 0x28f   :  { %v1374_v48 = vld [vmem:[#allocation5 + $0x2748] sm:$0xff]  ;;  %2509 = vmatpush.msra.mxu2 %v1306_v47 }
 0x290   :  { %v1174_v49 = vld [vmem:[#allocation5 + $0x2108] sm:$0xff]  ;;  %2528 = vmatpush.msra.mxu3 %v1374_v48 }
 0x291   :  { %v1238_v50 = vld [vmem:[#allocation5 + $0x2308] sm:$0xff]  ;;  %2470 = vmatpush.msra.mxu0 %v1174_v49 }
 0x292   :  { %v1302_v51 = vld [vmem:[#allocation5 + $0x2508] sm:$0xff]  ;;  %2490 = vmatpush.msra.mxu1 %v1238_v50 }
 0x293   :  { %v1370_v52 = vld [vmem:[#allocation5 + $0x2728] sm:$0xff]  ;;  %2510 = vmatpush.msra.mxu2 %v1302_v51 }
 0x294   :  { %v1170_v53 = vld [vmem:[#allocation5 + $0x20e8] sm:$0xff]  ;;  %2529 = vmatpush.msra.mxu3 %v1370_v52 }
 0x295   :  { %v1234_v54 = vld [vmem:[#allocation5 + $0x22e8] sm:$0xff]  ;;  %2471 = vmatpush.msra.mxu0 %v1170_v53 }
 0x296   :  { %v1298_v55 = vld [vmem:[#allocation5 + $0x24e8] sm:$0xff]  ;;  %2491 = vmatpush.msra.mxu1 %v1234_v54 }
 0x297   :  { %v1366_v56 = vld [vmem:[#allocation5 + $0x2708] sm:$0xff]  ;;  %2511 = vmatpush.msra.mxu2 %v1298_v55 }
 0x298   :  { %v1166_v57 = vld [vmem:[#allocation5 + $0x20c8] sm:$0xff]  ;;  %2530 = vmatpush.msra.mxu3 %v1366_v56 }
 0x299   :  { %v1230_v58 = vld [vmem:[#allocation5 + $0x22c8] sm:$0xff]  ;;  %2472 = vmatpush.msra.mxu0 %v1166_v57 }
 0x29a   :  { %v1294_v59 = vld [vmem:[#allocation5 + $0x24c8] sm:$0xff]  ;;  %2492 = vmatpush.msra.mxu1 %v1230_v58 }
 0x29b   :  { %v1362_v60 = vld [vmem:[#allocation5 + $0x26e8] sm:$0xff]  ;;  %2512 = vmatpush.msra.mxu2 %v1294_v59 }
 0x29c   :  { %v1162_v61 = vld [vmem:[#allocation5 + $0x20a8] sm:$0xff]  ;;  %2531 = vmatpush.msra.mxu3 %v1362_v60 }
 0x29d   :  { %v1226_v62 = vld [vmem:[#allocation5 + $0x22a8] sm:$0xff]  ;;  %2473 = vmatpush.msra.mxu0 %v1162_v61 }
 0x29e   :  { %v1290_v63 = vld [vmem:[#allocation5 + $0x24a8] sm:$0xff]  ;;  %2493 = vmatpush.msra.mxu1 %v1226_v62 }
 0x29f   :  { %v1358_v0 = vld [vmem:[#allocation5 + $0x26c8] sm:$0xff]  ;;  %2513 = vmatpush.msra.mxu2 %v1290_v63 }
 0x2a0   :  { %v1158_v1 = vld [vmem:[#allocation5 + $0x2088] sm:$0xff]  ;;  %2532 = vmatpush.msra.mxu3 %v1358_v0 }
 0x2a1   :  { %v1222_v2 = vld [vmem:[#allocation5 + $0x2288] sm:$0xff]  ;;  %2474 = vmatpush.msra.mxu0 %v1158_v1 }
 0x2a2   :  { %v1286_v3 = vld [vmem:[#allocation5 + $0x2488] sm:$0xff]  ;;  %2494 = vmatpush.msra.mxu1 %v1222_v2 }
 0x2a3   :  { %v1354_v4 = vld [vmem:[#allocation5 + $0x26a8] sm:$0xff]  ;;  %2514 = vmatpush.msra.mxu2 %v1286_v3 }
 0x2a4   :  { %v1154_v5 = vld [vmem:[#allocation5 + $0x2068] sm:$0xff]  ;;  %2533 = vmatpush.msra.mxu3 %v1354_v4 }
 0x2a5   :  { %v1218_v6 = vld [vmem:[#allocation5 + $0x2268] sm:$0xff]  ;;  %2475 = vmatpush.msra.mxu0 %v1154_v5 }
 0x2a6   :  { %v1282_v7 = vld [vmem:[#allocation5 + $0x2468] sm:$0xff]  ;;  %2495 = vmatpush.msra.mxu1 %v1218_v6 }
 0x2a7   :  { %v1350_v8 = vld [vmem:[#allocation5 + $0x2688] sm:$0xff]  ;;  %2515 = vmatpush.msra.mxu2 %v1282_v7 }
 0x2a8   :  { %v1150_v9 = vld [vmem:[#allocation5 + $0x2048] sm:$0xff]  ;;  %2534 = vmatpush.msra.mxu3 %v1350_v8 }
 0x2a9   :  { %v1214_v11 = vld [vmem:[#allocation5 + $0x2248] sm:$0xff]  ;;  %2476 = vmatpush.msra.mxu0 %v1150_v9 }
 0x2aa   :  { %v1278_v13 = vld [vmem:[#allocation5 + $0x2448] sm:$0xff]  ;;  %2496 = vmatpush.msra.mxu1 %v1214_v11 }
 0x2ab   :  { %v1346_v12 = vld [vmem:[#allocation5 + $0x2668] sm:$0xff]  ;;  %2516 = vmatpush.msra.mxu2 %v1278_v13 }
 0x2ac   :  { %v1146_v14 = vld [vmem:[#allocation5 + $0x2028] sm:$0xff]  ;;  %2535 = vmatpush.msra.mxu3 %v1346_v12 }
 0x2ad   :  { %v1210_v15 = vld [vmem:[#allocation5 + $0x2228] sm:$0xff]  ;;  %2477 = vmatpush.msra.mxu0 %v1146_v14 }
 0x2ae   :  { %v1274_v16 = vld [vmem:[#allocation5 + $0x2428] sm:$0xff]  ;;  %2497 = vmatpush.msra.mxu1 %v1210_v15 }
 0x2af   :  { %v1342_v17 = vld [vmem:[#allocation5 + $0x2648] sm:$0xff]  ;;  %2517 = vmatpush.msra.mxu2 %v1274_v16 }
 0x2b0   :  { %v1142_v18 = vld [vmem:[#allocation5 + $0x2008] sm:$0xff]  ;;  %2536 = vmatpush.msra.mxu3 %v1342_v17 }
 0x2b1   :  { %v1206_v19 = vld [vmem:[#allocation5 + $0x2208] sm:$0xff]  ;;  %2478 = vmatpush.msra.mxu0 %v1142_v18 }
 0x2b2   :  { %v1270_v20 = vld [vmem:[#allocation5 + $0x2408] sm:$0xff]  ;;  %2498 = vmatpush.msra.mxu1 %v1206_v19  ;;  %2479 = vmatmul.f32.vlgmr.msra.gmra.mxu0 %v3790_v26 }
 0x2b3   :  { %v1338_v21 = vld [vmem:[#allocation5 + $0x2628] sm:$0xff]  ;;  %2518 = vmatpush.msra.mxu2 %v1270_v20 }
 0x2b4   :  { %v1458_v22 = vld [vmem:[#allocation5 + $0x29e8] sm:$0xff]  ;;  %2537 = vmatpush.msra.mxu3 %v1338_v21  ;;  %2519 = vmatmul.f32.vlgmr.msra.gmra.mxu2 %v3791_v27  ;;  %v179_v27 = vld [vmem:[#allocation5 + $0x1f0] sm:$0xff] }
 0x2b5   :  { %v1522_v23 = vld [vmem:[#allocation5 + $0x2be8] sm:$0xff]  ;;  %2543 = vmatpush.msrb.mxu0 %v1458_v22 }
 0x2b6   :  { %v1586_v24 = vld [vmem:[#allocation5 + $0x2de8] sm:$0xff]  ;;  %2563 = vmatpush.msrb.mxu1 %v1522_v23 }
 0x2b7   :  { %v1334_v25 = vld [vmem:[#allocation5 + $0x2608] sm:$0xff]  ;;  %2583 = vmatpush.msrb.mxu2 %v1586_v24 }
 0x2b8   :  { %v1454_v28 = vld [vmem:[#allocation5 + $0x29c8] sm:$0xff]  ;;  %2538 = vmatpush.msra.mxu3 %v1334_v25 }
 0x2b9   :  { %v1518_v29 = vld [vmem:[#allocation5 + $0x2bc8] sm:$0xff]  ;;  %2539 = vmatmul.f32.vlgmr.msra.gmra.mxu3 %v3793_v33  ;;  %2544 = vmatpush.msrb.mxu0 %v1454_v28  ;;  %v243_v28 = vld [vmem:[#allocation5 + $0x3f0] sm:$0xff] }
 0x2ba   :  { %v1582_v30 = vld [vmem:[#allocation5 + $0x2dc8] sm:$0xff]  ;;  %2564 = vmatpush.msrb.mxu1 %v1518_v29  ;;  %v307_v29 = vld [vmem:[#allocation5 + $0x5f0] sm:$0xff] }
 0x2bb   :  { %v1650_v31 = vld [vmem:[#allocation5 + $0x2fe8] sm:$0xff]  ;;  %2584 = vmatpush.msrb.mxu2 %v1582_v30  ;;  %v175_v33 = vld [vmem:[#allocation5 + $0x1d0] sm:$0xff] }
 0x2bc   :  { %v3792_v32 = vld [vmem:[#allocation2 + $0x88] sm:$0xff]  ;;  %2603 = vmatpush.msrb.mxu3 %v1650_v31  ;;  %v3794_v31 = vld [vmem:[#allocation2 + $0xa0] sm:$0xff] }
 0x2bd   :  { %2499 = vmatmul.f32.vlgmr.msra.gmra.mxu1 %v3792_v32  ;;  %v1450_v34 = vld [vmem:[#allocation5 + $0x29a8] sm:$0xff]  ;;  %v3795_v32 = vld [vmem:[#allocation2 + $0xb0] sm:$0xff] }
 0x2be   :  { %v1514_v35 = vld [vmem:[#allocation5 + $0x2ba8] sm:$0xff]  ;;  %2545 = vmatpush.msrb.mxu0 %v1450_v34  ;;  %v239_v34 = vld [vmem:[#allocation5 + $0x3d0] sm:$0xff] }
 0x2bf   :  { %v1578_v36 = vld [vmem:[#allocation5 + $0x2da8] sm:$0xff]  ;;  %2565 = vmatpush.msrb.mxu1 %v1514_v35  ;;  %v303_v35 = vld [vmem:[#allocation5 + $0x5d0] sm:$0xff] }
 0x2c0   :  { %v1646_v37 = vld [vmem:[#allocation5 + $0x2fc8] sm:$0xff]  ;;  %2585 = vmatpush.msrb.mxu2 %v1578_v36  ;;  %v371_v36 = vld [vmem:[#allocation5 + $0x7f0] sm:$0xff] }
 0x2c1   :  { %v1446_v38 = vld [vmem:[#allocation5 + $0x2988] sm:$0xff]  ;;  %2604 = vmatpush.msrb.mxu3 %v1646_v37 }
 0x2c2   :  { %v1510_v39 = vld [vmem:[#allocation5 + $0x2b88] sm:$0xff]  ;;  %2546 = vmatpush.msrb.mxu0 %v1446_v38  ;;  %v3797_v38 = vld [vmem:[#allocation2 + $0xb8] sm:$0xff] }
 0x2c3   :  { %v1574_v40 = vld [vmem:[#allocation5 + $0x2d88] sm:$0xff]  ;;  %2566 = vmatpush.msrb.mxu1 %v1510_v39  ;;  %v171_v39 = vld [vmem:[#allocation5 + $0x1b0] sm:$0xff] }
 0x2c4   :  { %v1642_v41 = vld [vmem:[#allocation5 + $0x2fa8] sm:$0xff]  ;;  %2586 = vmatpush.msrb.mxu2 %v1574_v40  ;;  %v235_v40 = vld [vmem:[#allocation5 + $0x3b0] sm:$0xff] }
 0x2c5   :  { %v1442_v42 = vld [vmem:[#allocation5 + $0x2968] sm:$0xff]  ;;  %2605 = vmatpush.msrb.mxu3 %v1642_v41  ;;  %v299_v41 = vld [vmem:[#allocation5 + $0x5b0] sm:$0xff] }
 0x2c6   :  { %v1506_v43 = vld [vmem:[#allocation5 + $0x2b68] sm:$0xff]  ;;  %2547 = vmatpush.msrb.mxu0 %v1442_v42  ;;  %v367_v42 = vld [vmem:[#allocation5 + $0x7d0] sm:$0xff] }
 0x2c7   :  { %v1570_v44 = vld [vmem:[#allocation5 + $0x2d68] sm:$0xff]  ;;  %2567 = vmatpush.msrb.mxu1 %v1506_v43  ;;  %v167_v43 = vld [vmem:[#allocation5 + $0x190] sm:$0xff] }
 0x2c8   :  { %v1638_v45 = vld [vmem:[#allocation5 + $0x2f88] sm:$0xff]  ;;  %2587 = vmatpush.msrb.mxu2 %v1570_v44  ;;  %v231_v44 = vld [vmem:[#allocation5 + $0x390] sm:$0xff] }
 0x2c9   :  { %v1438_v46 = vld [vmem:[#allocation5 + $0x2948] sm:$0xff]  ;;  %2606 = vmatpush.msrb.mxu3 %v1638_v45  ;;  %v295_v45 = vld [vmem:[#allocation5 + $0x590] sm:$0xff] }
 0x2ca   :  { %v1502_v47 = vld [vmem:[#allocation5 + $0x2b48] sm:$0xff]  ;;  %2548 = vmatpush.msrb.mxu0 %v1438_v46  ;;  %v363_v46 = vld [vmem:[#allocation5 + $0x7b0] sm:$0xff] }
 0x2cb   :  { %v1566_v48 = vld [vmem:[#allocation5 + $0x2d48] sm:$0xff]  ;;  %2568 = vmatpush.msrb.mxu1 %v1502_v47  ;;  %v163_v47 = vld [vmem:[#allocation5 + $0x170] sm:$0xff] }
 0x2cc   :  { %v1634_v49 = vld [vmem:[#allocation5 + $0x2f68] sm:$0xff]  ;;  %2588 = vmatpush.msrb.mxu2 %v1566_v48  ;;  %v227_v48 = vld [vmem:[#allocation5 + $0x370] sm:$0xff] }
 0x2cd   :  { %v1434_v50 = vld [vmem:[#allocation5 + $0x2928] sm:$0xff]  ;;  %2607 = vmatpush.msrb.mxu3 %v1634_v49  ;;  %v291_v49 = vld [vmem:[#allocation5 + $0x570] sm:$0xff] }
 0x2ce   :  { %v1498_v51 = vld [vmem:[#allocation5 + $0x2b28] sm:$0xff]  ;;  %2549 = vmatpush.msrb.mxu0 %v1434_v50  ;;  %v359_v50 = vld [vmem:[#allocation5 + $0x790] sm:$0xff] }
 0x2cf   :  { %v1562_v52 = vld [vmem:[#allocation5 + $0x2d28] sm:$0xff]  ;;  %2569 = vmatpush.msrb.mxu1 %v1498_v51  ;;  %v159_v51 = vld [vmem:[#allocation5 + $0x150] sm:$0xff] }
 0x2d0   :  { %v1630_v53 = vld [vmem:[#allocation5 + $0x2f48] sm:$0xff]  ;;  %2589 = vmatpush.msrb.mxu2 %v1562_v52  ;;  %v223_v52 = vld [vmem:[#allocation5 + $0x350] sm:$0xff] }
 0x2d1   :  { %v1430_v54 = vld [vmem:[#allocation5 + $0x2908] sm:$0xff]  ;;  %2608 = vmatpush.msrb.mxu3 %v1630_v53  ;;  %v287_v53 = vld [vmem:[#allocation5 + $0x550] sm:$0xff] }
 0x2d2   :  { %v1494_v55 = vld [vmem:[#allocation5 + $0x2b08] sm:$0xff]  ;;  %2550 = vmatpush.msrb.mxu0 %v1430_v54  ;;  %v355_v54 = vld [vmem:[#allocation5 + $0x770] sm:$0xff] }
 0x2d3   :  { %v1558_v56 = vld [vmem:[#allocation5 + $0x2d08] sm:$0xff]  ;;  %2570 = vmatpush.msrb.mxu1 %v1494_v55  ;;  %v155_v55 = vld [vmem:[#allocation5 + $0x130] sm:$0xff] }
 0x2d4   :  { %v1626_v57 = vld [vmem:[#allocation5 + $0x2f28] sm:$0xff]  ;;  %2590 = vmatpush.msrb.mxu2 %v1558_v56  ;;  %v219_v56 = vld [vmem:[#allocation5 + $0x330] sm:$0xff] }
 0x2d5   :  { %v1426_v58 = vld [vmem:[#allocation5 + $0x28e8] sm:$0xff]  ;;  %2609 = vmatpush.msrb.mxu3 %v1626_v57  ;;  %v283_v57 = vld [vmem:[#allocation5 + $0x530] sm:$0xff] }
 0x2d6   :  { %v1490_v59 = vld [vmem:[#allocation5 + $0x2ae8] sm:$0xff]  ;;  %2551 = vmatpush.msrb.mxu0 %v1426_v58  ;;  %v351_v58 = vld [vmem:[#allocation5 + $0x750] sm:$0xff] }
 0x2d7   :  { %v1554_v60 = vld [vmem:[#allocation5 + $0x2ce8] sm:$0xff]  ;;  %2571 = vmatpush.msrb.mxu1 %v1490_v59  ;;  %v151_v59 = vld [vmem:[#allocation5 + $0x110] sm:$0xff] }
 0x2d8   :  { %v1622_v61 = vld [vmem:[#allocation5 + $0x2f08] sm:$0xff]  ;;  %2591 = vmatpush.msrb.mxu2 %v1554_v60  ;;  %v215_v60 = vld [vmem:[#allocation5 + $0x310] sm:$0xff] }
 0x2d9   :  { %v1422_v62 = vld [vmem:[#allocation5 + $0x28c8] sm:$0xff]  ;;  %2610 = vmatpush.msrb.mxu3 %v1622_v61  ;;  %v279_v61 = vld [vmem:[#allocation5 + $0x510] sm:$0xff] }
 0x2da   :  { %v1486_v63 = vld [vmem:[#allocation5 + $0x2ac8] sm:$0xff]  ;;  %2552 = vmatpush.msrb.mxu0 %v1422_v62  ;;  %v347_v62 = vld [vmem:[#allocation5 + $0x730] sm:$0xff] }
 0x2db   :  { %v1550_v0 = vld [vmem:[#allocation5 + $0x2cc8] sm:$0xff]  ;;  %2572 = vmatpush.msrb.mxu1 %v1486_v63  ;;  %v147_v63 = vld [vmem:[#allocation5 + $0xf0] sm:$0xff] }
 0x2dc   :  { %v1618_v1 = vld [vmem:[#allocation5 + $0x2ee8] sm:$0xff]  ;;  %2592 = vmatpush.msrb.mxu2 %v1550_v0  ;;  %v211_v0 = vld [vmem:[#allocation5 + $0x2f0] sm:$0xff] }
 0x2dd   :  { %v1418_v2 = vld [vmem:[#allocation5 + $0x28a8] sm:$0xff]  ;;  %2611 = vmatpush.msrb.mxu3 %v1618_v1  ;;  %v275_v1 = vld [vmem:[#allocation5 + $0x4f0] sm:$0xff] }
 0x2de   :  { %v1482_v3 = vld [vmem:[#allocation5 + $0x2aa8] sm:$0xff]  ;;  %2553 = vmatpush.msrb.mxu0 %v1418_v2  ;;  %v343_v2 = vld [vmem:[#allocation5 + $0x710] sm:$0xff] }
 0x2df   :  { %v1546_v4 = vld [vmem:[#allocation5 + $0x2ca8] sm:$0xff]  ;;  %2573 = vmatpush.msrb.mxu1 %v1482_v3  ;;  %v143_v3 = vld [vmem:[#allocation5 + $0xd0] sm:$0xff] }
 0x2e0   :  { %v1614_v5 = vld [vmem:[#allocation5 + $0x2ec8] sm:$0xff]  ;;  %2593 = vmatpush.msrb.mxu2 %v1546_v4  ;;  %v207_v4 = vld [vmem:[#allocation5 + $0x2d0] sm:$0xff] }
 0x2e1   :  { %v1414_v6 = vld [vmem:[#allocation5 + $0x2888] sm:$0xff]  ;;  %2612 = vmatpush.msrb.mxu3 %v1614_v5  ;;  %v271_v5 = vld [vmem:[#allocation5 + $0x4d0] sm:$0xff] }
 0x2e2   :  { %v1478_v7 = vld [vmem:[#allocation5 + $0x2a88] sm:$0xff]  ;;  %2554 = vmatpush.msrb.mxu0 %v1414_v6  ;;  %v339_v6 = vld [vmem:[#allocation5 + $0x6f0] sm:$0xff] }
 0x2e3   :  { %v1542_v8 = vld [vmem:[#allocation5 + $0x2c88] sm:$0xff]  ;;  %2574 = vmatpush.msrb.mxu1 %v1478_v7  ;;  %v139_v7 = vld [vmem:[#allocation5 + $0xb0] sm:$0xff] }
 0x2e4   :  { %v1610_v9 = vld [vmem:[#allocation5 + $0x2ea8] sm:$0xff]  ;;  %2594 = vmatpush.msrb.mxu2 %v1542_v8  ;;  %v203_v8 = vld [vmem:[#allocation5 + $0x2b0] sm:$0xff] }
 0x2e5   :  { %v1410_v11 = vld [vmem:[#allocation5 + $0x2868] sm:$0xff]  ;;  %2613 = vmatpush.msrb.mxu3 %v1610_v9  ;;  %v267_v9 = vld [vmem:[#allocation5 + $0x4b0] sm:$0xff] }
 0x2e6   :  { %v1474_v13 = vld [vmem:[#allocation5 + $0x2a68] sm:$0xff]  ;;  %2555 = vmatpush.msrb.mxu0 %v1410_v11  ;;  %v335_v11 = vld [vmem:[#allocation5 + $0x6d0] sm:$0xff] }
 0x2e7   :  { %v1538_v12 = vld [vmem:[#allocation5 + $0x2c68] sm:$0xff]  ;;  %2575 = vmatpush.msrb.mxu1 %v1474_v13  ;;  %v135_v13 = vld [vmem:[#allocation5 + $0x90] sm:$0xff] }
 0x2e8   :  { %v1606_v14 = vld [vmem:[#allocation5 + $0x2e88] sm:$0xff]  ;;  %2595 = vmatpush.msrb.mxu2 %v1538_v12  ;;  %v199_v12 = vld [vmem:[#allocation5 + $0x290] sm:$0xff] }
 0x2e9   :  { %v1406_v15 = vld [vmem:[#allocation5 + $0x2848] sm:$0xff]  ;;  %2614 = vmatpush.msrb.mxu3 %v1606_v14  ;;  %v263_v14 = vld [vmem:[#allocation5 + $0x490] sm:$0xff] }
 0x2ea   :  { %v1470_v16 = vld [vmem:[#allocation5 + $0x2a48] sm:$0xff]  ;;  %2556 = vmatpush.msrb.mxu0 %v1406_v15  ;;  %v331_v15 = vld [vmem:[#allocation5 + $0x6b0] sm:$0xff] }
 0x2eb   :  { %v1534_v17 = vld [vmem:[#allocation5 + $0x2c48] sm:$0xff]  ;;  %2576 = vmatpush.msrb.mxu1 %v1470_v16  ;;  %v131_v16 = vld [vmem:[#allocation5 + $0x70] sm:$0xff] }
 0x2ec   :  { %v1602_v18 = vld [vmem:[#allocation5 + $0x2e68] sm:$0xff]  ;;  %2596 = vmatpush.msrb.mxu2 %v1534_v17  ;;  %v195_v17 = vld [vmem:[#allocation5 + $0x270] sm:$0xff] }
 0x2ed   :  { %v1402_v19 = vld [vmem:[#allocation5 + $0x2828] sm:$0xff]  ;;  %2615 = vmatpush.msrb.mxu3 %v1602_v18  ;;  %v259_v18 = vld [vmem:[#allocation5 + $0x470] sm:$0xff] }
 0x2ee   :  { %v1466_v20 = vld [vmem:[#allocation5 + $0x2a28] sm:$0xff]  ;;  %2557 = vmatpush.msrb.mxu0 %v1402_v19  ;;  %v327_v19 = vld [vmem:[#allocation5 + $0x690] sm:$0xff] }
 0x2ef   :  { %v1530_v21 = vld [vmem:[#allocation5 + $0x2c28] sm:$0xff]  ;;  %2577 = vmatpush.msrb.mxu1 %v1466_v20  ;;  %v127_v20 = vld [vmem:[#allocation5 + $0x50] sm:$0xff] }
 0x2f0   :  { %v1598_v22 = vld [vmem:[#allocation5 + $0x2e48] sm:$0xff]  ;;  %2597 = vmatpush.msrb.mxu2 %v1530_v21  ;;  %v191_v21 = vld [vmem:[#allocation5 + $0x250] sm:$0xff] }
 0x2f1   :  { %v1398_v23 = vld [vmem:[#allocation5 + $0x2808] sm:$0xff]  ;;  %2616 = vmatpush.msrb.mxu3 %v1598_v22  ;;  %v255_v22 = vld [vmem:[#allocation5 + $0x450] sm:$0xff] }
 0x2f2   :  { %v1462_v24 = vld [vmem:[#allocation5 + $0x2a08] sm:$0xff]  ;;  %2558 = vmatpush.msrb.mxu0 %v1398_v23  ;;  %v323_v23 = vld [vmem:[#allocation5 + $0x670] sm:$0xff] }
 0x2f3   :  { %v1526_v25 = vld [vmem:[#allocation5 + $0x2c08] sm:$0xff]  ;;  %2578 = vmatpush.msrb.mxu1 %v1462_v24  ;;  %2559 = vmatmul.f32.vlgmr.msrb.gmra.mxu0 %v3794_v31  ;;  %v123_v24 = vld [vmem:[#allocation5 + $0x30] sm:$0xff] }
 0x2f4   :  { %v1594_v26 = vld [vmem:[#allocation5 + $0x2e28] sm:$0xff]  ;;  %2598 = vmatpush.msrb.mxu2 %v1526_v25  ;;  %2623 = vmatpush.msra.mxu0 %v179_v27  ;;  %v187_v25 = vld [vmem:[#allocation5 + $0x230] sm:$0xff] }
 0x2f5   :  { %2617 = vmatpush.msrb.mxu3 %v1594_v26  ;;  %v1590_v30 = vld [vmem:[#allocation5 + $0x2e08] sm:$0xff]  ;;  %2599 = vmatmul.f32.vlgmr.msrb.gmra.mxu2 %v3795_v32  ;;  %v251_v26 = vld [vmem:[#allocation5 + $0x430] sm:$0xff] }
 0x2f6   :  { %2643 = vmatpush.msra.mxu1 %v243_v28  ;;  %2663 = vmatpush.msra.mxu2 %v307_v29  ;;  %v3796_v37 = vld [vmem:[#allocation2 + $0xa8] sm:$0xff]  ;;  %v319_v27 = vld [vmem:[#allocation5 + $0x650] sm:$0xff] }
 0x2f7   :  { %2618 = vmatpush.msrb.mxu3 %v1590_v30  ;;  %2579 = vmatmul.f32.vlgmr.msrb.gmra.mxu1 %v3796_v37  ;;  %v119_v28 = vld [vmem:[#allocation5 + $0x10] sm:$0xff] }
 0x2f8   :  { %2619 = vmatmul.f32.vlgmr.msrb.gmra.mxu3 %v3797_v38  ;;  %2624 = vmatpush.msra.mxu0 %v175_v33  ;;  %v183_v29 = vld [vmem:[#allocation5 + $0x210] sm:$0xff] }
 0x2f9   :  { %2644 = vmatpush.msra.mxu1 %v239_v34  ;;  %2664 = vmatpush.msra.mxu2 %v303_v35  ;;  %v247_v30 = vld [vmem:[#allocation5 + $0x410] sm:$0xff] }
 0x2fa   :  { %2683 = vmatpush.msra.mxu3 %v371_v36  ;;  %2625 = vmatpush.msra.mxu0 %v171_v39  ;;  %v315_v31 = vld [vmem:[#allocation5 + $0x630] sm:$0xff] }
 0x2fb   :  { %2645 = vmatpush.msra.mxu1 %v235_v40  ;;  %2665 = vmatpush.msra.mxu2 %v299_v41  ;;  %v435_v32 = vld [vmem:[#allocation5 + $0x9f0] sm:$0xff] }
 0x2fc   :  { %2684 = vmatpush.msra.mxu3 %v367_v42  ;;  %2626 = vmatpush.msra.mxu0 %v167_v43  ;;  %v499_v33 = vld [vmem:[#allocation5 + $0xbf0] sm:$0xff] }
 0x2fd   :  { %2646 = vmatpush.msra.mxu1 %v231_v44  ;;  %2666 = vmatpush.msra.mxu2 %v295_v45  ;;  %v563_v34 = vld [vmem:[#allocation5 + $0xdf0] sm:$0xff] }
 0x2fe   :  { %2685 = vmatpush.msra.mxu3 %v363_v46  ;;  %2627 = vmatpush.msra.mxu0 %v163_v47  ;;  %v311_v35 = vld [vmem:[#allocation5 + $0x610] sm:$0xff] }
 0x2ff   :  { %2647 = vmatpush.msra.mxu1 %v227_v48  ;;  %2667 = vmatpush.msra.mxu2 %v291_v49  ;;  %v431_v36 = vld [vmem:[#allocation5 + $0x9d0] sm:$0xff] }
 0x300   :  { %2686 = vmatpush.msra.mxu3 %v359_v50  ;;  %2628 = vmatpush.msra.mxu0 %v159_v51  ;;  %v495_v37 = vld [vmem:[#allocation5 + $0xbd0] sm:$0xff] }
 0x301   :  { %2648 = vmatpush.msra.mxu1 %v223_v52  ;;  %2668 = vmatpush.msra.mxu2 %v287_v53  ;;  %v559_v38 = vld [vmem:[#allocation5 + $0xdd0] sm:$0xff] }
 0x302   :  { %2687 = vmatpush.msra.mxu3 %v355_v54  ;;  %2629 = vmatpush.msra.mxu0 %v155_v55  ;;  %v627_v39 = vld [vmem:[#allocation5 + $0xff0] sm:$0xff] }
 0x303   :  { %2649 = vmatpush.msra.mxu1 %v219_v56  ;;  %2669 = vmatpush.msra.mxu2 %v283_v57  ;;  %v427_v40 = vld [vmem:[#allocation5 + $0x9b0] sm:$0xff] }
 0x304   :  { %2688 = vmatpush.msra.mxu3 %v351_v58  ;;  %2630 = vmatpush.msra.mxu0 %v151_v59  ;;  %v491_v41 = vld [vmem:[#allocation5 + $0xbb0] sm:$0xff] }
 0x305   :  { %2650 = vmatpush.msra.mxu1 %v215_v60  ;;  %2670 = vmatpush.msra.mxu2 %v279_v61  ;;  %v555_v42 = vld [vmem:[#allocation5 + $0xdb0] sm:$0xff] }
 0x306   :  { %2689 = vmatpush.msra.mxu3 %v347_v62  ;;  %2631 = vmatpush.msra.mxu0 %v147_v63  ;;  %v623_v43 = vld [vmem:[#allocation5 + $0xfd0] sm:$0xff] }
 0x307   :  { %2651 = vmatpush.msra.mxu1 %v211_v0  ;;  %2671 = vmatpush.msra.mxu2 %v275_v1  ;;  %v423_v44 = vld [vmem:[#allocation5 + $0x990] sm:$0xff] }
 0x308   :  { %2690 = vmatpush.msra.mxu3 %v343_v2  ;;  %2632 = vmatpush.msra.mxu0 %v143_v3  ;;  %v487_v45 = vld [vmem:[#allocation5 + $0xb90] sm:$0xff] }
 0x309   :  { %2652 = vmatpush.msra.mxu1 %v207_v4  ;;  %2672 = vmatpush.msra.mxu2 %v271_v5  ;;  %v551_v46 = vld [vmem:[#allocation5 + $0xd90] sm:$0xff] }
 0x30a   :  { %2691 = vmatpush.msra.mxu3 %v339_v6  ;;  %2633 = vmatpush.msra.mxu0 %v139_v7  ;;  %v619_v47 = vld [vmem:[#allocation5 + $0xfb0] sm:$0xff] }
 0x30b   :  { %2653 = vmatpush.msra.mxu1 %v203_v8  ;;  %2673 = vmatpush.msra.mxu2 %v267_v9  ;;  %v419_v48 = vld [vmem:[#allocation5 + $0x970] sm:$0xff] }
 0x30c   :  { %2692 = vmatpush.msra.mxu3 %v335_v11  ;;  %2634 = vmatpush.msra.mxu0 %v135_v13  ;;  %v483_v49 = vld [vmem:[#allocation5 + $0xb70] sm:$0xff] }
 0x30d   :  { %2654 = vmatpush.msra.mxu1 %v199_v12  ;;  %2674 = vmatpush.msra.mxu2 %v263_v14  ;;  %v547_v50 = vld [vmem:[#allocation5 + $0xd70] sm:$0xff] }
 0x30e   :  { %2693 = vmatpush.msra.mxu3 %v331_v15  ;;  %2635 = vmatpush.msra.mxu0 %v131_v16  ;;  %v615_v51 = vld [vmem:[#allocation5 + $0xf90] sm:$0xff] }
 0x30f   :  { %2655 = vmatpush.msra.mxu1 %v195_v17  ;;  %2675 = vmatpush.msra.mxu2 %v259_v18  ;;  %v415_v52 = vld [vmem:[#allocation5 + $0x950] sm:$0xff] }
 0x310   :  { %2694 = vmatpush.msra.mxu3 %v327_v19  ;;  %2636 = vmatpush.msra.mxu0 %v127_v20  ;;  %v479_v53 = vld [vmem:[#allocation5 + $0xb50] sm:$0xff] }
 0x311   :  { %2656 = vmatpush.msra.mxu1 %v191_v21  ;;  %2676 = vmatpush.msra.mxu2 %v255_v22  ;;  %v543_v54 = vld [vmem:[#allocation5 + $0xd50] sm:$0xff] }
 0x312   :  { %2695 = vmatpush.msra.mxu3 %v323_v23  ;;  %2637 = vmatpush.msra.mxu0 %v123_v24  ;;  %v611_v55 = vld [vmem:[#allocation5 + $0xf70] sm:$0xff] }
 0x313   :  { %2657 = vmatpush.msra.mxu1 %v187_v25  ;;  %2677 = vmatpush.msra.mxu2 %v251_v26  ;;  %v411_v56 = vld [vmem:[#allocation5 + $0x930] sm:$0xff] }
 0x314   :  { %2696 = vmatpush.msra.mxu3 %v319_v27  ;;  %2638 = vmatpush.msra.mxu0 %v119_v28  ;;  %v475_v57 = vld [vmem:[#allocation5 + $0xb30] sm:$0xff] }
 0x315   :  { %2658 = vmatpush.msra.mxu1 %v183_v29  ;;  %2678 = vmatpush.msra.mxu2 %v247_v30  ;;  %v539_v58 = vld [vmem:[#allocation5 + $0xd30] sm:$0xff] }
 0x316   :  { %2697 = vmatpush.msra.mxu3 %v315_v31  ;;  %2703 = vmatpush.msrb.mxu0 %v435_v32  ;;  %v607_v59 = vld [vmem:[#allocation5 + $0xf50] sm:$0xff] }
 0x317   :  { %2723 = vmatpush.msrb.mxu1 %v499_v33  ;;  %2743 = vmatpush.msrb.mxu2 %v563_v34  ;;  %v407_v60 = vld [vmem:[#allocation5 + $0x910] sm:$0xff] }
 0x318   :  { %2698 = vmatpush.msra.mxu3 %v311_v35  ;;  %2704 = vmatpush.msrb.mxu0 %v431_v36  ;;  %v471_v61 = vld [vmem:[#allocation5 + $0xb10] sm:$0xff]  ;;  %v3798_v36 = vld [vmem:[#allocation2] sm:$0xff] }
 0x319   :  { %2724 = vmatpush.msrb.mxu1 %v495_v37  ;;  %2744 = vmatpush.msrb.mxu2 %v559_v38  ;;  %v535_v62 = vld [vmem:[#allocation5 + $0xd10] sm:$0xff]  ;;  %v3799_v37 = vld [vmem:[#allocation2 + $0x8] sm:$0xff] }
 0x31a   :  { %2763 = vmatpush.msrb.mxu3 %v627_v39  ;;  %2705 = vmatpush.msrb.mxu0 %v427_v40  ;;  %v603_v63 = vld [vmem:[#allocation5 + $0xf30] sm:$0xff] }
 0x31b   :  { %2725 = vmatpush.msrb.mxu1 %v491_v41  ;;  %2745 = vmatpush.msrb.mxu2 %v555_v42  ;;  %v403_v0 = vld [vmem:[#allocation5 + $0x8f0] sm:$0xff] }
 0x31c   :  { %2764 = vmatpush.msrb.mxu3 %v623_v43  ;;  %2706 = vmatpush.msrb.mxu0 %v423_v44  ;;  %v467_v1 = vld [vmem:[#allocation5 + $0xaf0] sm:$0xff] }
 0x31d   :  { %2726 = vmatpush.msrb.mxu1 %v487_v45  ;;  %2746 = vmatpush.msrb.mxu2 %v551_v46  ;;  %v531_v2 = vld [vmem:[#allocation5 + $0xcf0] sm:$0xff]  ;;  %v3801_v46 = vld [vmem:[#allocation2 + $0x18] sm:$0xff] }
 0x31e   :  { %2765 = vmatpush.msrb.mxu3 %v619_v47  ;;  %2707 = vmatpush.msrb.mxu0 %v419_v48  ;;  %v599_v3 = vld [vmem:[#allocation5 + $0xf10] sm:$0xff] }
 0x31f   :  { %2727 = vmatpush.msrb.mxu1 %v483_v49  ;;  %2747 = vmatpush.msrb.mxu2 %v547_v50  ;;  %v399_v4 = vld [vmem:[#allocation5 + $0x8d0] sm:$0xff] }
 0x320   :  { %2766 = vmatpush.msrb.mxu3 %v615_v51  ;;  %2708 = vmatpush.msrb.mxu0 %v415_v52  ;;  %v463_v5 = vld [vmem:[#allocation5 + $0xad0] sm:$0xff] }
 0x321   :  { %2728 = vmatpush.msrb.mxu1 %v479_v53  ;;  %2748 = vmatpush.msrb.mxu2 %v543_v54  ;;  %v527_v6 = vld [vmem:[#allocation5 + $0xcd0] sm:$0xff] }
 0x322   :  { %2767 = vmatpush.msrb.mxu3 %v611_v55  ;;  %2709 = vmatpush.msrb.mxu0 %v411_v56  ;;  %v595_v7 = vld [vmem:[#allocation5 + $0xef0] sm:$0xff] }
 0x323   :  { %2729 = vmatpush.msrb.mxu1 %v475_v57  ;;  %2749 = vmatpush.msrb.mxu2 %v539_v58  ;;  %v395_v8 = vld [vmem:[#allocation5 + $0x8b0] sm:$0xff] }
 0x324   :  { %2768 = vmatpush.msrb.mxu3 %v607_v59  ;;  %2710 = vmatpush.msrb.mxu0 %v407_v60  ;;  %v459_v9 = vld [vmem:[#allocation5 + $0xab0] sm:$0xff] }
 0x325   :  { %2730 = vmatpush.msrb.mxu1 %v471_v61  ;;  %2750 = vmatpush.msrb.mxu2 %v535_v62  ;;  %v523_v11 = vld [vmem:[#allocation5 + $0xcb0] sm:$0xff]  ;;  %v3803_v61 = vld [vmem:[#allocation2 + $0x20] sm:$0xff] }
 0x326   :  { %2769 = vmatpush.msrb.mxu3 %v603_v63  ;;  %2711 = vmatpush.msrb.mxu0 %v403_v0  ;;  %v591_v13 = vld [vmem:[#allocation5 + $0xed0] sm:$0xff]  ;;  %v3804_v63 = vld [vmem:[#allocation2 + $0x38] sm:$0xff] }
 0x327   :  { %2731 = vmatpush.msrb.mxu1 %v467_v1  ;;  %2751 = vmatpush.msrb.mxu2 %v531_v2  ;;  %v391_v12 = vld [vmem:[#allocation5 + $0x890] sm:$0xff] }
 0x328   :  { %2770 = vmatpush.msrb.mxu3 %v599_v3  ;;  %2712 = vmatpush.msrb.mxu0 %v399_v4  ;;  %v455_v14 = vld [vmem:[#allocation5 + $0xa90] sm:$0xff]  ;;  %v3805_v4 = vld [vmem:[#allocation2 + $0x28] sm:$0xff] }
 0x329   :  { %2732 = vmatpush.msrb.mxu1 %v463_v5  ;;  %2752 = vmatpush.msrb.mxu2 %v527_v6  ;;  %v519_v15 = vld [vmem:[#allocation5 + $0xc90] sm:$0xff] }
 0x32a   :  { %2771 = vmatpush.msrb.mxu3 %v595_v7  ;;  %2713 = vmatpush.msrb.mxu0 %v395_v8  ;;  %v587_v16 = vld [vmem:[#allocation5 + $0xeb0] sm:$0xff] }
 0x32b   :  { %2733 = vmatpush.msrb.mxu1 %v459_v9  ;;  %2753 = vmatpush.msrb.mxu2 %v523_v11  ;;  %v387_v17 = vld [vmem:[#allocation5 + $0x870] sm:$0xff] }
 0x32c   :  { %2772 = vmatpush.msrb.mxu3 %v591_v13  ;;  %v451_v18 = vld [vmem:[#allocation5 + $0xa70] sm:$0xff]  ;;  %2714 = vmatpush.msrb.mxu0 %v391_v12 }
 0x32d   :  { %2734 = vmatpush.msrb.mxu1 %v455_v14  ;;  %v515_v19 = vld [vmem:[#allocation5 + $0xc70] sm:$0xff]  ;;  %2754 = vmatpush.msrb.mxu2 %v519_v15 }
 0x32e   :  { %v583_v20 = vld [vmem:[#allocation5 + $0xe90] sm:$0xff]  ;;  %2773 = vmatpush.msrb.mxu3 %v587_v16  ;;  %2715 = vmatpush.msrb.mxu0 %v387_v17 }
 0x32f   :  { %v383_v21 = vld [vmem:[#allocation5 + $0x850] sm:$0xff]  ;;  %2735 = vmatpush.msrb.mxu1 %v451_v18  ;;  %2755 = vmatpush.msrb.mxu2 %v515_v19 }
 0x330   :  { %v447_v22 = vld [vmem:[#allocation5 + $0xa50] sm:$0xff]  ;;  %2774 = vmatpush.msrb.mxu3 %v583_v20  ;;  %2716 = vmatpush.msrb.mxu0 %v383_v21 }
 0x331   :  { %v511_v23 = vld [vmem:[#allocation5 + $0xc50] sm:$0xff]  ;;  %2736 = vmatpush.msrb.mxu1 %v447_v22  ;;  %2639 = vmatmul.f32.vlgmr.msra.gmra.mxu0 %v3798_v36 }
 0x332   :  { %v579_v24 = vld [vmem:[#allocation5 + $0xe70] sm:$0xff]  ;;  %2756 = vmatpush.msrb.mxu2 %v511_v23  ;;  %2659 = vmatmul.f32.vlgmr.msra.gmra.mxu1 %v3799_v37 }
 0x333   :  { %v379_v25 = vld [vmem:[#allocation5 + $0x830] sm:$0xff]  ;;  %2775 = vmatpush.msrb.mxu3 %v579_v24 }
 0x334   :  { %v443_v26 = vld [vmem:[#allocation5 + $0xa30] sm:$0xff]  ;;  %2717 = vmatpush.msrb.mxu0 %v379_v25  ;;  %2699 = vmatmul.f32.vlgmr.msra.gmra.mxu3 %v3801_v46  ;;  %v3806_v46 = vld [vmem:[#allocation2 + $0x40] sm:$0xff] }
 0x335   :  { %v507_v27 = vld [vmem:[#allocation5 + $0xc30] sm:$0xff]  ;;  %2737 = vmatpush.msrb.mxu1 %v443_v26 }
 0x336   :  { %v575_v28 = vld [vmem:[#allocation5 + $0xe50] sm:$0xff]  ;;  %2757 = vmatpush.msrb.mxu2 %v507_v27 }
 0x337   :  { %v375_v29 = vld [vmem:[#allocation5 + $0x810] sm:$0xff]  ;;  %2776 = vmatpush.msrb.mxu3 %v575_v28 }
 0x338   :  { %v439_v30 = vld [vmem:[#allocation5 + $0xa10] sm:$0xff]  ;;  %2718 = vmatpush.msrb.mxu0 %v375_v29 }
 0x339   :  { %v503_v31 = vld [vmem:[#allocation5 + $0xc10] sm:$0xff]  ;;  %2738 = vmatpush.msrb.mxu1 %v439_v30  ;;  %2719 = vmatmul.f32.vlgmr.msrb.gmra.mxu0 %v3803_v61 }
 0x33a   :  { %v571_v32 = vld [vmem:[#allocation5 + $0xe30] sm:$0xff]  ;;  %2758 = vmatpush.msrb.mxu2 %v503_v31  ;;  %2739 = vmatmul.f32.vlgmr.msrb.gmra.mxu1 %v3805_v4 }
 0x33b   :  { %v691_v33 = vld [vmem:[#allocation5 + $0x11f0] sm:$0xff]  ;;  %2777 = vmatpush.msrb.mxu3 %v571_v32 }
 0x33c   :  { %v755_v34 = vld [vmem:[#allocation5 + $0x13f0] sm:$0xff]  ;;  %2783 = vmatpush.msra.mxu0 %v691_v33 }
 0x33d   :  { %v819_v35 = vld [vmem:[#allocation5 + $0x15f0] sm:$0xff]  ;;  %2803 = vmatpush.msra.mxu1 %v755_v34 }
 0x33e   :  { %v567_v38 = vld [vmem:[#allocation5 + $0xe10] sm:$0xff] }
 0x33f   :  { %v687_v39 = vld [vmem:[#allocation5 + $0x11d0] sm:$0xff]  ;;  %2778 = vmatpush.msrb.mxu3 %v567_v38 }
 0x340   :  { %v3800_v40 = vld [vmem:[#allocation2 + $0x10] sm:$0xff]  ;;  %2784 = vmatpush.msra.mxu0 %v687_v39  ;;  %2779 = vmatmul.f32.vlgmr.msrb.gmra.mxu3 %v3804_v63 }
 0x341   :  { %2679 = vmatmul.f32.vlgmr.msra.gmra.mxu2 %v3800_v40  ;;  %v751_v41 = vld [vmem:[#allocation5 + $0x13d0] sm:$0xff] }
 0x342   :  { %2823 = vmatpush.msra.mxu2 %v819_v35  ;;  %v815_v42 = vld [vmem:[#allocation5 + $0x15d0] sm:$0xff]  ;;  %2804 = vmatpush.msra.mxu1 %v751_v41 }
 0x343   :  { %v883_v43 = vld [vmem:[#allocation5 + $0x17f0] sm:$0xff] }
 0x344   :  { %v683_v44 = vld [vmem:[#allocation5 + $0x11b0] sm:$0xff]  ;;  %2824 = vmatpush.msra.mxu2 %v815_v42  ;;  %2843 = vmatpush.msra.mxu3 %v883_v43 }
 0x345   :  { %v747_v45 = vld [vmem:[#allocation5 + $0x13b0] sm:$0xff]  ;;  %2785 = vmatpush.msra.mxu0 %v683_v44 }
 0x346   :  { %v811_v47 = vld [vmem:[#allocation5 + $0x15b0] sm:$0xff]  ;;  %2805 = vmatpush.msra.mxu1 %v747_v45 }
 0x347   :  { %v879_v48 = vld [vmem:[#allocation5 + $0x17d0] sm:$0xff]  ;;  %2825 = vmatpush.msra.mxu2 %v811_v47 }
 0x348   :  { %v679_v49 = vld [vmem:[#allocation5 + $0x1190] sm:$0xff]  ;;  %2844 = vmatpush.msra.mxu3 %v879_v48 }
 0x349   :  { %v743_v50 = vld [vmem:[#allocation5 + $0x1390] sm:$0xff]  ;;  %2786 = vmatpush.msra.mxu0 %v679_v49 }
 0x34a   :  { %v807_v51 = vld [vmem:[#allocation5 + $0x1590] sm:$0xff]  ;;  %2806 = vmatpush.msra.mxu1 %v743_v50 }
 0x34b   :  { %v875_v52 = vld [vmem:[#allocation5 + $0x17b0] sm:$0xff]  ;;  %2826 = vmatpush.msra.mxu2 %v807_v51 }
 0x34c   :  { %v675_v53 = vld [vmem:[#allocation5 + $0x1170] sm:$0xff]  ;;  %2845 = vmatpush.msra.mxu3 %v875_v52  ;;  %v3808_v52 = vld [vmem:[#allocation2 + $0x48] sm:$0xff] }
 0x34d   :  { %v739_v54 = vld [vmem:[#allocation5 + $0x1370] sm:$0xff]  ;;  %2787 = vmatpush.msra.mxu0 %v675_v53  ;;  %v3809_v53 = vld [vmem:[#allocation2 + $0x58] sm:$0xff] }
 0x34e   :  { %v803_v55 = vld [vmem:[#allocation5 + $0x1570] sm:$0xff]  ;;  %2807 = vmatpush.msra.mxu1 %v739_v54 }
 0x34f   :  { %v871_v56 = vld [vmem:[#allocation5 + $0x1790] sm:$0xff]  ;;  %2827 = vmatpush.msra.mxu2 %v803_v55 }
 0x350   :  { %v3802_v57 = vld [vmem:[#allocation2 + $0x30] sm:$0xff]  ;;  %2846 = vmatpush.msra.mxu3 %v871_v56 }
 0x351   :  { %2759 = vmatmul.f32.vlgmr.msrb.gmra.mxu2 %v3802_v57  ;;  %v671_v58 = vld [vmem:[#allocation5 + $0x1150] sm:$0xff] }
 0x352   :  { %v735_v59 = vld [vmem:[#allocation5 + $0x1350] sm:$0xff]  ;;  %2788 = vmatpush.msra.mxu0 %v671_v58 }
 0x353   :  { %v799_v60 = vld [vmem:[#allocation5 + $0x1550] sm:$0xff]  ;;  %2808 = vmatpush.msra.mxu1 %v735_v59 }
 0x354   :  { %v867_v62 = vld [vmem:[#allocation5 + $0x1770] sm:$0xff]  ;;  %2828 = vmatpush.msra.mxu2 %v799_v60 }
 0x355   :  { %v667_v0 = vld [vmem:[#allocation5 + $0x1130] sm:$0xff]  ;;  %2847 = vmatpush.msra.mxu3 %v867_v62 }
 0x356   :  { %v731_v1 = vld [vmem:[#allocation5 + $0x1330] sm:$0xff]  ;;  %2789 = vmatpush.msra.mxu0 %v667_v0 }
 0x357   :  { %v795_v2 = vld [vmem:[#allocation5 + $0x1530] sm:$0xff]  ;;  %2809 = vmatpush.msra.mxu1 %v731_v1 }
 0x358   :  { %v863_v3 = vld [vmem:[#allocation5 + $0x1750] sm:$0xff]  ;;  %2829 = vmatpush.msra.mxu2 %v795_v2 }
 0x359   :  { %v663_v5 = vld [vmem:[#allocation5 + $0x1110] sm:$0xff]  ;;  %2848 = vmatpush.msra.mxu3 %v863_v3 }
 0x35a   :  { %v727_v6 = vld [vmem:[#allocation5 + $0x1310] sm:$0xff]  ;;  %2790 = vmatpush.msra.mxu0 %v663_v5 }
 0x35b   :  { %v791_v7 = vld [vmem:[#allocation5 + $0x1510] sm:$0xff]  ;;  %2810 = vmatpush.msra.mxu1 %v727_v6 }
 0x35c   :  { %v859_v8 = vld [vmem:[#allocation5 + $0x1730] sm:$0xff]  ;;  %2830 = vmatpush.msra.mxu2 %v791_v7 }
 0x35d   :  { %v659_v9 = vld [vmem:[#allocation5 + $0x10f0] sm:$0xff]  ;;  %2849 = vmatpush.msra.mxu3 %v859_v8 }
 0x35e   :  { %v723_v11 = vld [vmem:[#allocation5 + $0x12f0] sm:$0xff]  ;;  %2791 = vmatpush.msra.mxu0 %v659_v9 }
 0x35f   :  { %v787_v13 = vld [vmem:[#allocation5 + $0x14f0] sm:$0xff]  ;;  %2811 = vmatpush.msra.mxu1 %v723_v11 }
 0x360   :  { %v855_v12 = vld [vmem:[#allocation5 + $0x1710] sm:$0xff]  ;;  %2831 = vmatpush.msra.mxu2 %v787_v13 }
 0x361   :  { %v655_v14 = vld [vmem:[#allocation5 + $0x10d0] sm:$0xff]  ;;  %2850 = vmatpush.msra.mxu3 %v855_v12 }
 0x362   :  { %v719_v15 = vld [vmem:[#allocation5 + $0x12d0] sm:$0xff]  ;;  %2792 = vmatpush.msra.mxu0 %v655_v14 }
 0x363   :  { %v783_v16 = vld [vmem:[#allocation5 + $0x14d0] sm:$0xff]  ;;  %2812 = vmatpush.msra.mxu1 %v719_v15 }
 0x364   :  { %v851_v17 = vld [vmem:[#allocation5 + $0x16f0] sm:$0xff]  ;;  %2832 = vmatpush.msra.mxu2 %v783_v16 }
 0x365   :  { %v651_v18 = vld [vmem:[#allocation5 + $0x10b0] sm:$0xff]  ;;  %2851 = vmatpush.msra.mxu3 %v851_v17 }
 0x366   :  { %v715_v19 = vld [vmem:[#allocation5 + $0x12b0] sm:$0xff]  ;;  %2793 = vmatpush.msra.mxu0 %v651_v18 }
 0x367   :  { %v779_v20 = vld [vmem:[#allocation5 + $0x14b0] sm:$0xff]  ;;  %2813 = vmatpush.msra.mxu1 %v715_v19 }
 0x368   :  { %v847_v21 = vld [vmem:[#allocation5 + $0x16d0] sm:$0xff]  ;;  %2833 = vmatpush.msra.mxu2 %v779_v20 }
 0x369   :  { %v647_v22 = vld [vmem:[#allocation5 + $0x1090] sm:$0xff]  ;;  %2852 = vmatpush.msra.mxu3 %v847_v21 }
 0x36a   :  { %v711_v23 = vld [vmem:[#allocation5 + $0x1290] sm:$0xff]  ;;  %2794 = vmatpush.msra.mxu0 %v647_v22 }
 0x36b   :  { %v775_v24 = vld [vmem:[#allocation5 + $0x1490] sm:$0xff]  ;;  %2814 = vmatpush.msra.mxu1 %v711_v23 }
 0x36c   :  { %v843_v25 = vld [vmem:[#allocation5 + $0x16b0] sm:$0xff]  ;;  %2834 = vmatpush.msra.mxu2 %v775_v24 }
 0x36d   :  { %v643_v26 = vld [vmem:[#allocation5 + $0x1070] sm:$0xff]  ;;  %2853 = vmatpush.msra.mxu3 %v843_v25 }
 0x36e   :  { %v707_v27 = vld [vmem:[#allocation5 + $0x1270] sm:$0xff]  ;;  %2795 = vmatpush.msra.mxu0 %v643_v26 }
 0x36f   :  { %v771_v28 = vld [vmem:[#allocation5 + $0x1470] sm:$0xff]  ;;  %2815 = vmatpush.msra.mxu1 %v707_v27 }
 0x370   :  { %v839_v29 = vld [vmem:[#allocation5 + $0x1690] sm:$0xff]  ;;  %2835 = vmatpush.msra.mxu2 %v771_v28 }
 0x371   :  { %v639_v30 = vld [vmem:[#allocation5 + $0x1050] sm:$0xff]  ;;  %2854 = vmatpush.msra.mxu3 %v839_v29 }
 0x372   :  { %v703_v31 = vld [vmem:[#allocation5 + $0x1250] sm:$0xff]  ;;  %2796 = vmatpush.msra.mxu0 %v639_v30 }
 0x373   :  { %v767_v32 = vld [vmem:[#allocation5 + $0x1450] sm:$0xff]  ;;  %2816 = vmatpush.msra.mxu1 %v703_v31 }
 0x374   :  { %v835_v33 = vld [vmem:[#allocation5 + $0x1670] sm:$0xff]  ;;  %2836 = vmatpush.msra.mxu2 %v767_v32 }
 0x375   :  { %v635_v34 = vld [vmem:[#allocation5 + $0x1030] sm:$0xff]  ;;  %2855 = vmatpush.msra.mxu3 %v835_v33 }
 0x376   :  { %v699_v35 = vld [vmem:[#allocation5 + $0x1230] sm:$0xff]  ;;  %2797 = vmatpush.msra.mxu0 %v635_v34 }
 0x377   :  { %v763_v36 = vld [vmem:[#allocation5 + $0x1430] sm:$0xff]  ;;  %2817 = vmatpush.msra.mxu1 %v699_v35 }
 0x378   :  { %v831_v37 = vld [vmem:[#allocation5 + $0x1650] sm:$0xff]  ;;  %2837 = vmatpush.msra.mxu2 %v763_v36 }
 0x379   :  { %v631_v38 = vld [vmem:[#allocation5 + $0x1010] sm:$0xff]  ;;  %2856 = vmatpush.msra.mxu3 %v831_v37 }
 0x37a   :  { %v695_v39 = vld [vmem:[#allocation5 + $0x1210] sm:$0xff]  ;;  %2798 = vmatpush.msra.mxu0 %v631_v38 }
 0x37b   :  { %v759_v40 = vld [vmem:[#allocation5 + $0x1410] sm:$0xff]  ;;  %2818 = vmatpush.msra.mxu1 %v695_v39  ;;  %2799 = vmatmul.f32.vlgmr.msra.gmra.mxu0 %v3806_v46 }
 0x37c   :  { %v827_v41 = vld [vmem:[#allocation5 + $0x1630] sm:$0xff]  ;;  %2838 = vmatpush.msra.mxu2 %v759_v40  ;;  %2819 = vmatmul.f32.vlgmr.msra.gmra.mxu1 %v3808_v52 }
 0x37d   :  { %v947_v42 = vld [vmem:[#allocation5 + $0x19f0] sm:$0xff]  ;;  %2857 = vmatpush.msra.mxu3 %v827_v41 }
 0x37e   :  { %v1011_v43 = vld [vmem:[#allocation5 + $0x1bf0] sm:$0xff]  ;;  %2863 = vmatpush.msrb.mxu0 %v947_v42 }
 0x37f   :  { %v1075_v44 = vld [vmem:[#allocation5 + $0x1df0] sm:$0xff]  ;;  %2883 = vmatpush.msrb.mxu1 %v1011_v43 }
 0x380   :  { %v823_v45 = vld [vmem:[#allocation5 + $0x1610] sm:$0xff]  ;;  %2903 = vmatpush.msrb.mxu2 %v1075_v44 }
 0x381   :  { %v3807_v47 = vld [vmem:[#allocation2 + $0x50] sm:$0xff]  ;;  %2858 = vmatpush.msra.mxu3 %v823_v45 }
 0x382   :  { %2839 = vmatmul.f32.vlgmr.msra.gmra.mxu2 %v3807_v47  ;;  %v943_v48 = vld [vmem:[#allocation5 + $0x19d0] sm:$0xff]  ;;  %2859 = vmatmul.f32.vlgmr.msra.gmra.mxu3 %v3809_v53 }
 0x383   :  { %v1007_v49 = vld [vmem:[#allocation5 + $0x1bd0] sm:$0xff]  ;;  %2864 = vmatpush.msrb.mxu0 %v943_v48 }
 0x384   :  { %v1071_v50 = vld [vmem:[#allocation5 + $0x1dd0] sm:$0xff]  ;;  %2884 = vmatpush.msrb.mxu1 %v1007_v49 }
 0x385   :  { %v1139_v51 = vld [vmem:[#allocation5 + $0x1ff0] sm:$0xff]  ;;  %2904 = vmatpush.msrb.mxu2 %v1071_v50 }
 0x386   :  { %v939_v54 = vld [vmem:[#allocation5 + $0x19b0] sm:$0xff]  ;;  %2923 = vmatpush.msrb.mxu3 %v1139_v51  ;;  %v3810_v51 = vld [vmem:[#allocation2 + $0x60] sm:$0xff] }
 0x387   :  { %v1003_v55 = vld [vmem:[#allocation5 + $0x1bb0] sm:$0xff]  ;;  %2865 = vmatpush.msrb.mxu0 %v939_v54 }
 0x388   :  { %v1067_v56 = vld [vmem:[#allocation5 + $0x1db0] sm:$0xff]  ;;  %2885 = vmatpush.msrb.mxu1 %v1003_v55 }
 0x389   :  { %v1135_v57 = vld [vmem:[#allocation5 + $0x1fd0] sm:$0xff]  ;;  %2905 = vmatpush.msrb.mxu2 %v1067_v56 }
 0x38a   :  { %v935_v58 = vld [vmem:[#allocation5 + $0x1990] sm:$0xff]  ;;  %2924 = vmatpush.msrb.mxu3 %v1135_v57  ;;  %v3812_v57 = vld [vmem:[#allocation2 + $0x68] sm:$0xff] }
 0x38b   :  { %v999_v59 = vld [vmem:[#allocation5 + $0x1b90] sm:$0xff]  ;;  %2866 = vmatpush.msrb.mxu0 %v935_v58  ;;  %v3813_v58 = vld [vmem:[#allocation2 + $0x78] sm:$0xff] }
 0x38c   :  { %v1063_v60 = vld [vmem:[#allocation5 + $0x1d90] sm:$0xff]  ;;  %2886 = vmatpush.msrb.mxu1 %v999_v59 }
 0x38d   :  { %v1131_v61 = vld [vmem:[#allocation5 + $0x1fb0] sm:$0xff]  ;;  %2906 = vmatpush.msrb.mxu2 %v1063_v60 }
 0x38e   :  { %v931_v62 = vld [vmem:[#allocation5 + $0x1970] sm:$0xff]  ;;  %2925 = vmatpush.msrb.mxu3 %v1131_v61 }
 0x38f   :  { %v995_v63 = vld [vmem:[#allocation5 + $0x1b70] sm:$0xff]  ;;  %2867 = vmatpush.msrb.mxu0 %v931_v62 }
 0x390   :  { %v1059_v0 = vld [vmem:[#allocation5 + $0x1d70] sm:$0xff]  ;;  %2887 = vmatpush.msrb.mxu1 %v995_v63 }
 0x391   :  { %v1127_v1 = vld [vmem:[#allocation5 + $0x1f90] sm:$0xff]  ;;  %2907 = vmatpush.msrb.mxu2 %v1059_v0 }
 0x392   :  { %v927_v2 = vld [vmem:[#allocation5 + $0x1950] sm:$0xff]  ;;  %2926 = vmatpush.msrb.mxu3 %v1127_v1 }
 0x393   :  { %v991_v3 = vld [vmem:[#allocation5 + $0x1b50] sm:$0xff]  ;;  %2868 = vmatpush.msrb.mxu0 %v927_v2 }
 0x394   :  { %v1055_v4 = vld [vmem:[#allocation5 + $0x1d50] sm:$0xff]  ;;  %2888 = vmatpush.msrb.mxu1 %v991_v3 }
 0x395   :  { %v1123_v5 = vld [vmem:[#allocation5 + $0x1f70] sm:$0xff]  ;;  %2908 = vmatpush.msrb.mxu2 %v1055_v4 }
 0x396   :  { %v923_v6 = vld [vmem:[#allocation5 + $0x1930] sm:$0xff]  ;;  %2927 = vmatpush.msrb.mxu3 %v1123_v5 }
 0x397   :  { %v987_v7 = vld [vmem:[#allocation5 + $0x1b30] sm:$0xff]  ;;  %2869 = vmatpush.msrb.mxu0 %v923_v6 }
 0x398   :  { %v1051_v8 = vld [vmem:[#allocation5 + $0x1d30] sm:$0xff]  ;;  %2889 = vmatpush.msrb.mxu1 %v987_v7 }
 0x399   :  { %v1119_v9 = vld [vmem:[#allocation5 + $0x1f50] sm:$0xff]  ;;  %2909 = vmatpush.msrb.mxu2 %v1051_v8 }
 0x39a   :  { %v919_v11 = vld [vmem:[#allocation5 + $0x1910] sm:$0xff]  ;;  %2928 = vmatpush.msrb.mxu3 %v1119_v9 }
 0x39b   :  { %v983_v13 = vld [vmem:[#allocation5 + $0x1b10] sm:$0xff]  ;;  %2870 = vmatpush.msrb.mxu0 %v919_v11 }
 0x39c   :  { %v1047_v12 = vld [vmem:[#allocation5 + $0x1d10] sm:$0xff]  ;;  %2890 = vmatpush.msrb.mxu1 %v983_v13 }
 0x39d   :  { %v1115_v14 = vld [vmem:[#allocation5 + $0x1f30] sm:$0xff]  ;;  %2910 = vmatpush.msrb.mxu2 %v1047_v12 }
 0x39e   :  { %v915_v15 = vld [vmem:[#allocation5 + $0x18f0] sm:$0xff]  ;;  %2929 = vmatpush.msrb.mxu3 %v1115_v14 }
 0x39f   :  { %v979_v16 = vld [vmem:[#allocation5 + $0x1af0] sm:$0xff]  ;;  %2871 = vmatpush.msrb.mxu0 %v915_v15 }
 0x3a0   :  { %v1043_v17 = vld [vmem:[#allocation5 + $0x1cf0] sm:$0xff]  ;;  %2891 = vmatpush.msrb.mxu1 %v979_v16 }
 0x3a1   :  { %v1111_v18 = vld [vmem:[#allocation5 + $0x1f10] sm:$0xff]  ;;  %2911 = vmatpush.msrb.mxu2 %v1043_v17 }
 0x3a2   :  { %v911_v19 = vld [vmem:[#allocation5 + $0x18d0] sm:$0xff]  ;;  %2930 = vmatpush.msrb.mxu3 %v1111_v18 }
 0x3a3   :  { %v975_v20 = vld [vmem:[#allocation5 + $0x1ad0] sm:$0xff]  ;;  %2872 = vmatpush.msrb.mxu0 %v911_v19 }
 0x3a4   :  { %v1039_v21 = vld [vmem:[#allocation5 + $0x1cd0] sm:$0xff]  ;;  %2892 = vmatpush.msrb.mxu1 %v975_v20 }
 0x3a5   :  { %v1107_v22 = vld [vmem:[#allocation5 + $0x1ef0] sm:$0xff]  ;;  %2912 = vmatpush.msrb.mxu2 %v1039_v21 }
 0x3a6   :  { %v907_v23 = vld [vmem:[#allocation5 + $0x18b0] sm:$0xff]  ;;  %2931 = vmatpush.msrb.mxu3 %v1107_v22 }
 0x3a7   :  { %v971_v24 = vld [vmem:[#allocation5 + $0x1ab0] sm:$0xff]  ;;  %2873 = vmatpush.msrb.mxu0 %v907_v23 }
 0x3a8   :  { %v1035_v25 = vld [vmem:[#allocation5 + $0x1cb0] sm:$0xff]  ;;  %2893 = vmatpush.msrb.mxu1 %v971_v24 }
 0x3a9   :  { %v1103_v26 = vld [vmem:[#allocation5 + $0x1ed0] sm:$0xff]  ;;  %2913 = vmatpush.msrb.mxu2 %v1035_v25 }
 0x3aa   :  { %v903_v27 = vld [vmem:[#allocation5 + $0x1890] sm:$0xff]  ;;  %2932 = vmatpush.msrb.mxu3 %v1103_v26 }
 0x3ab   :  { %v967_v28 = vld [vmem:[#allocation5 + $0x1a90] sm:$0xff]  ;;  %2874 = vmatpush.msrb.mxu0 %v903_v27 }
 0x3ac   :  { %v1031_v29 = vld [vmem:[#allocation5 + $0x1c90] sm:$0xff]  ;;  %2894 = vmatpush.msrb.mxu1 %v967_v28 }
 0x3ad   :  { %v1099_v30 = vld [vmem:[#allocation5 + $0x1eb0] sm:$0xff]  ;;  %2914 = vmatpush.msrb.mxu2 %v1031_v29 }
 0x3ae   :  { %v899_v31 = vld [vmem:[#allocation5 + $0x1870] sm:$0xff]  ;;  %2933 = vmatpush.msrb.mxu3 %v1099_v30 }
 0x3af   :  { %v963_v32 = vld [vmem:[#allocation5 + $0x1a70] sm:$0xff]  ;;  %2875 = vmatpush.msrb.mxu0 %v899_v31 }
 0x3b0   :  { %v1027_v33 = vld [vmem:[#allocation5 + $0x1c70] sm:$0xff]  ;;  %2895 = vmatpush.msrb.mxu1 %v963_v32 }
 0x3b1   :  { %v1095_v34 = vld [vmem:[#allocation5 + $0x1e90] sm:$0xff]  ;;  %2915 = vmatpush.msrb.mxu2 %v1027_v33 }
 0x3b2   :  { %v895_v35 = vld [vmem:[#allocation5 + $0x1850] sm:$0xff]  ;;  %2934 = vmatpush.msrb.mxu3 %v1095_v34 }
 0x3b3   :  { %v959_v36 = vld [vmem:[#allocation5 + $0x1a50] sm:$0xff]  ;;  %2876 = vmatpush.msrb.mxu0 %v895_v35 }
 0x3b4   :  { %v1023_v37 = vld [vmem:[#allocation5 + $0x1c50] sm:$0xff]  ;;  %2896 = vmatpush.msrb.mxu1 %v959_v36 }
 0x3b5   :  { %v1091_v38 = vld [vmem:[#allocation5 + $0x1e70] sm:$0xff]  ;;  %2916 = vmatpush.msrb.mxu2 %v1023_v37 }
 0x3b6   :  { %v891_v39 = vld [vmem:[#allocation5 + $0x1830] sm:$0xff]  ;;  %2935 = vmatpush.msrb.mxu3 %v1091_v38 }
 0x3b7   :  { %v955_v40 = vld [vmem:[#allocation5 + $0x1a30] sm:$0xff]  ;;  %2877 = vmatpush.msrb.mxu0 %v891_v39 }
 0x3b8   :  { %v1019_v41 = vld [vmem:[#allocation5 + $0x1c30] sm:$0xff]  ;;  %2897 = vmatpush.msrb.mxu1 %v955_v40 }
 0x3b9   :  { %v1087_v42 = vld [vmem:[#allocation5 + $0x1e50] sm:$0xff]  ;;  %2917 = vmatpush.msrb.mxu2 %v1019_v41 }
 0x3ba   :  { %v887_v43 = vld [vmem:[#allocation5 + $0x1810] sm:$0xff]  ;;  %2936 = vmatpush.msrb.mxu3 %v1087_v42 }
 0x3bb   :  { %v951_v44 = vld [vmem:[#allocation5 + $0x1a10] sm:$0xff]  ;;  %2878 = vmatpush.msrb.mxu0 %v887_v43 }
 0x3bc   :  { %v1015_v45 = vld [vmem:[#allocation5 + $0x1c10] sm:$0xff]  ;;  %2898 = vmatpush.msrb.mxu1 %v951_v44  ;;  %2879 = vmatmul.f32.vlgmr.msrb.gmra.mxu0 %v3810_v51 }
 0x3bd   :  { %v1083_v46 = vld [vmem:[#allocation5 + $0x1e30] sm:$0xff]  ;;  %2918 = vmatpush.msrb.mxu2 %v1015_v45  ;;  %2899 = vmatmul.f32.vlgmr.msrb.gmra.mxu1 %v3812_v57 }
 0x3be   :  { %v1203_v47 = vld [vmem:[#allocation5 + $0x21f0] sm:$0xff]  ;;  %2937 = vmatpush.msrb.mxu3 %v1083_v46 }
 0x3bf   :  { %v1267_v48 = vld [vmem:[#allocation5 + $0x23f0] sm:$0xff]  ;;  %2943 = vmatpush.msra.mxu0 %v1203_v47 }
 0x3c0   :  { %v1331_v49 = vld [vmem:[#allocation5 + $0x25f0] sm:$0xff]  ;;  %2963 = vmatpush.msra.mxu1 %v1267_v48 }
 0x3c1   :  { %v1079_v50 = vld [vmem:[#allocation5 + $0x1e10] sm:$0xff]  ;;  %2983 = vmatpush.msra.mxu2 %v1331_v49 }
 0x3c2   :  { %v3811_v52 = vld [vmem:[#allocation2 + $0x70] sm:$0xff]  ;;  %2938 = vmatpush.msrb.mxu3 %v1079_v50 }
 0x3c3   :  { %2919 = vmatmul.f32.vlgmr.msrb.gmra.mxu2 %v3811_v52  ;;  %v1199_v53 = vld [vmem:[#allocation5 + $0x21d0] sm:$0xff]  ;;  %2939 = vmatmul.f32.vlgmr.msrb.gmra.mxu3 %v3813_v58 }
 0x3c4   :  { %v1263_v54 = vld [vmem:[#allocation5 + $0x23d0] sm:$0xff]  ;;  %2944 = vmatpush.msra.mxu0 %v1199_v53 }
 0x3c5   :  { %v1327_v55 = vld [vmem:[#allocation5 + $0x25d0] sm:$0xff]  ;;  %2964 = vmatpush.msra.mxu1 %v1263_v54 }
 0x3c6   :  { %v1395_v56 = vld [vmem:[#allocation5 + $0x27f0] sm:$0xff]  ;;  %2984 = vmatpush.msra.mxu2 %v1327_v55 }
 0x3c7   :  { %v1195_v59 = vld [vmem:[#allocation5 + $0x21b0] sm:$0xff]  ;;  %3003 = vmatpush.msra.mxu3 %v1395_v56  ;;  %v3814_v56 = vld [vmem:[#allocation2 + $0x80] sm:$0xff] }
 0x3c8   :  { %v1259_v60 = vld [vmem:[#allocation5 + $0x23b0] sm:$0xff]  ;;  %2945 = vmatpush.msra.mxu0 %v1195_v59 }
 0x3c9   :  { %v1323_v61 = vld [vmem:[#allocation5 + $0x25b0] sm:$0xff]  ;;  %2965 = vmatpush.msra.mxu1 %v1259_v60 }
 0x3ca   :  { %v1391_v62 = vld [vmem:[#allocation5 + $0x27d0] sm:$0xff]  ;;  %2985 = vmatpush.msra.mxu2 %v1323_v61 }
 0x3cb   :  { %v1191_v63 = vld [vmem:[#allocation5 + $0x2190] sm:$0xff]  ;;  %3004 = vmatpush.msra.mxu3 %v1391_v62  ;;  %v3816_v62 = vld [vmem:[#allocation2 + $0x88] sm:$0xff] }
 0x3cc   :  { %v1255_v0 = vld [vmem:[#allocation5 + $0x2390] sm:$0xff]  ;;  %2946 = vmatpush.msra.mxu0 %v1191_v63  ;;  %v3817_v63 = vld [vmem:[#allocation2 + $0x98] sm:$0xff] }
 0x3cd   :  { %v1319_v1 = vld [vmem:[#allocation5 + $0x2590] sm:$0xff]  ;;  %2966 = vmatpush.msra.mxu1 %v1255_v0 }
 0x3ce   :  { %v1387_v2 = vld [vmem:[#allocation5 + $0x27b0] sm:$0xff]  ;;  %2986 = vmatpush.msra.mxu2 %v1319_v1 }
 0x3cf   :  { %v1187_v3 = vld [vmem:[#allocation5 + $0x2170] sm:$0xff]  ;;  %3005 = vmatpush.msra.mxu3 %v1387_v2 }
 0x3d0   :  { %v1251_v4 = vld [vmem:[#allocation5 + $0x2370] sm:$0xff]  ;;  %2947 = vmatpush.msra.mxu0 %v1187_v3 }
 0x3d1   :  { %v1315_v5 = vld [vmem:[#allocation5 + $0x2570] sm:$0xff]  ;;  %2967 = vmatpush.msra.mxu1 %v1251_v4 }
 0x3d2   :  { %v1383_v6 = vld [vmem:[#allocation5 + $0x2790] sm:$0xff]  ;;  %2987 = vmatpush.msra.mxu2 %v1315_v5 }
 0x3d3   :  { %v1183_v7 = vld [vmem:[#allocation5 + $0x2150] sm:$0xff]  ;;  %3006 = vmatpush.msra.mxu3 %v1383_v6 }
 0x3d4   :  { %v1247_v8 = vld [vmem:[#allocation5 + $0x2350] sm:$0xff]  ;;  %2948 = vmatpush.msra.mxu0 %v1183_v7 }
 0x3d5   :  { %v1311_v9 = vld [vmem:[#allocation5 + $0x2550] sm:$0xff]  ;;  %2968 = vmatpush.msra.mxu1 %v1247_v8 }
 0x3d6   :  { %v1379_v11 = vld [vmem:[#allocation5 + $0x2770] sm:$0xff]  ;;  %2988 = vmatpush.msra.mxu2 %v1311_v9 }
 0x3d7   :  { %v1179_v13 = vld [vmem:[#allocation5 + $0x2130] sm:$0xff]  ;;  %3007 = vmatpush.msra.mxu3 %v1379_v11 }
 0x3d8   :  { %v1243_v12 = vld [vmem:[#allocation5 + $0x2330] sm:$0xff]  ;;  %2949 = vmatpush.msra.mxu0 %v1179_v13 }
 0x3d9   :  { %v1307_v14 = vld [vmem:[#allocation5 + $0x2530] sm:$0xff]  ;;  %2969 = vmatpush.msra.mxu1 %v1243_v12 }
 0x3da   :  { %v1375_v15 = vld [vmem:[#allocation5 + $0x2750] sm:$0xff]  ;;  %2989 = vmatpush.msra.mxu2 %v1307_v14 }
 0x3db   :  { %v1175_v16 = vld [vmem:[#allocation5 + $0x2110] sm:$0xff]  ;;  %3008 = vmatpush.msra.mxu3 %v1375_v15 }
 0x3dc   :  { %v1239_v17 = vld [vmem:[#allocation5 + $0x2310] sm:$0xff]  ;;  %2950 = vmatpush.msra.mxu0 %v1175_v16 }
 0x3dd   :  { %v1303_v18 = vld [vmem:[#allocation5 + $0x2510] sm:$0xff]  ;;  %2970 = vmatpush.msra.mxu1 %v1239_v17 }
 0x3de   :  { %v1371_v19 = vld [vmem:[#allocation5 + $0x2730] sm:$0xff]  ;;  %2990 = vmatpush.msra.mxu2 %v1303_v18 }
 0x3df   :  { %v1171_v20 = vld [vmem:[#allocation5 + $0x20f0] sm:$0xff]  ;;  %3009 = vmatpush.msra.mxu3 %v1371_v19 }
 0x3e0   :  { %v1235_v21 = vld [vmem:[#allocation5 + $0x22f0] sm:$0xff]  ;;  %2951 = vmatpush.msra.mxu0 %v1171_v20 }
 0x3e1   :  { %v1299_v22 = vld [vmem:[#allocation5 + $0x24f0] sm:$0xff]  ;;  %2971 = vmatpush.msra.mxu1 %v1235_v21 }
 0x3e2   :  { %v1367_v23 = vld [vmem:[#allocation5 + $0x2710] sm:$0xff]  ;;  %2991 = vmatpush.msra.mxu2 %v1299_v22 }
 0x3e3   :  { %v1167_v24 = vld [vmem:[#allocation5 + $0x20d0] sm:$0xff]  ;;  %3010 = vmatpush.msra.mxu3 %v1367_v23 }
 0x3e4   :  { %v1231_v25 = vld [vmem:[#allocation5 + $0x22d0] sm:$0xff]  ;;  %2952 = vmatpush.msra.mxu0 %v1167_v24 }
 0x3e5   :  { %v1295_v26 = vld [vmem:[#allocation5 + $0x24d0] sm:$0xff]  ;;  %2972 = vmatpush.msra.mxu1 %v1231_v25 }
 0x3e6   :  { %v1363_v27 = vld [vmem:[#allocation5 + $0x26f0] sm:$0xff]  ;;  %2992 = vmatpush.msra.mxu2 %v1295_v26 }
 0x3e7   :  { %v1163_v28 = vld [vmem:[#allocation5 + $0x20b0] sm:$0xff]  ;;  %3011 = vmatpush.msra.mxu3 %v1363_v27 }
 0x3e8   :  { %v1227_v29 = vld [vmem:[#allocation5 + $0x22b0] sm:$0xff]  ;;  %2953 = vmatpush.msra.mxu0 %v1163_v28 }
 0x3e9   :  { %v1291_v30 = vld [vmem:[#allocation5 + $0x24b0] sm:$0xff]  ;;  %2973 = vmatpush.msra.mxu1 %v1227_v29 }
 0x3ea   :  { %v1359_v31 = vld [vmem:[#allocation5 + $0x26d0] sm:$0xff]  ;;  %2993 = vmatpush.msra.mxu2 %v1291_v30 }
 0x3eb   :  { %v1159_v32 = vld [vmem:[#allocation5 + $0x2090] sm:$0xff]  ;;  %3012 = vmatpush.msra.mxu3 %v1359_v31 }
 0x3ec   :  { %v1223_v33 = vld [vmem:[#allocation5 + $0x2290] sm:$0xff]  ;;  %2954 = vmatpush.msra.mxu0 %v1159_v32 }
 0x3ed   :  { %v1287_v34 = vld [vmem:[#allocation5 + $0x2490] sm:$0xff]  ;;  %2974 = vmatpush.msra.mxu1 %v1223_v33 }
 0x3ee   :  { %v1355_v35 = vld [vmem:[#allocation5 + $0x26b0] sm:$0xff]  ;;  %2994 = vmatpush.msra.mxu2 %v1287_v34 }
 0x3ef   :  { %v1155_v36 = vld [vmem:[#allocation5 + $0x2070] sm:$0xff]  ;;  %3013 = vmatpush.msra.mxu3 %v1355_v35 }
 0x3f0   :  { %v1219_v37 = vld [vmem:[#allocation5 + $0x2270] sm:$0xff]  ;;  %2955 = vmatpush.msra.mxu0 %v1155_v36 }
 0x3f1   :  { %v1283_v38 = vld [vmem:[#allocation5 + $0x2470] sm:$0xff]  ;;  %2975 = vmatpush.msra.mxu1 %v1219_v37 }
 0x3f2   :  { %v1351_v39 = vld [vmem:[#allocation5 + $0x2690] sm:$0xff]  ;;  %2995 = vmatpush.msra.mxu2 %v1283_v38 }
 0x3f3   :  { %v1151_v40 = vld [vmem:[#allocation5 + $0x2050] sm:$0xff]  ;;  %3014 = vmatpush.msra.mxu3 %v1351_v39 }
 0x3f4   :  { %v1215_v41 = vld [vmem:[#allocation5 + $0x2250] sm:$0xff]  ;;  %2956 = vmatpush.msra.mxu0 %v1151_v40 }
 0x3f5   :  { %v1279_v42 = vld [vmem:[#allocation5 + $0x2450] sm:$0xff]  ;;  %2976 = vmatpush.msra.mxu1 %v1215_v41 }
 0x3f6   :  { %v1347_v43 = vld [vmem:[#allocation5 + $0x2670] sm:$0xff]  ;;  %2996 = vmatpush.msra.mxu2 %v1279_v42 }
 0x3f7   :  { %v1147_v44 = vld [vmem:[#allocation5 + $0x2030] sm:$0xff]  ;;  %3015 = vmatpush.msra.mxu3 %v1347_v43 }
 0x3f8   :  { %v1211_v45 = vld [vmem:[#allocation5 + $0x2230] sm:$0xff]  ;;  %2957 = vmatpush.msra.mxu0 %v1147_v44 }
 0x3f9   :  { %v1275_v46 = vld [vmem:[#allocation5 + $0x2430] sm:$0xff]  ;;  %2977 = vmatpush.msra.mxu1 %v1211_v45 }
 0x3fa   :  { %v1343_v47 = vld [vmem:[#allocation5 + $0x2650] sm:$0xff]  ;;  %2997 = vmatpush.msra.mxu2 %v1275_v46 }
 0x3fb   :  { %v1143_v48 = vld [vmem:[#allocation5 + $0x2010] sm:$0xff]  ;;  %3016 = vmatpush.msra.mxu3 %v1343_v47 }
 0x3fc   :  { %v1207_v49 = vld [vmem:[#allocation5 + $0x2210] sm:$0xff]  ;;  %2958 = vmatpush.msra.mxu0 %v1143_v48 }
 0x3fd   :  { %v1271_v50 = vld [vmem:[#allocation5 + $0x2410] sm:$0xff]  ;;  %2978 = vmatpush.msra.mxu1 %v1207_v49  ;;  %2959 = vmatmul.f32.vlgmr.msra.gmra.mxu0 %v3814_v56 }
 0x3fe   :  { %v1339_v51 = vld [vmem:[#allocation5 + $0x2630] sm:$0xff]  ;;  %2998 = vmatpush.msra.mxu2 %v1271_v50  ;;  %2979 = vmatmul.f32.vlgmr.msra.gmra.mxu1 %v3816_v62 }
 0x3ff   :  { %v1459_v52 = vld [vmem:[#allocation5 + $0x29f0] sm:$0xff]  ;;  %3017 = vmatpush.msra.mxu3 %v1339_v51 }
 0x400   :  { %v1523_v53 = vld [vmem:[#allocation5 + $0x2bf0] sm:$0xff]  ;;  %3023 = vmatpush.msrb.mxu0 %v1459_v52 }
 0x401   :  { %v1587_v54 = vld [vmem:[#allocation5 + $0x2df0] sm:$0xff]  ;;  %3043 = vmatpush.msrb.mxu1 %v1523_v53 }
 0x402   :  { %v1335_v55 = vld [vmem:[#allocation5 + $0x2610] sm:$0xff]  ;;  %3063 = vmatpush.msrb.mxu2 %v1587_v54 }
 0x403   :  { %v3815_v57 = vld [vmem:[#allocation2 + $0x90] sm:$0xff]  ;;  %3018 = vmatpush.msra.mxu3 %v1335_v55 }
 0x404   :  { %2999 = vmatmul.f32.vlgmr.msra.gmra.mxu2 %v3815_v57  ;;  %v1455_v58 = vld [vmem:[#allocation5 + $0x29d0] sm:$0xff]  ;;  %3019 = vmatmul.f32.vlgmr.msra.gmra.mxu3 %v3817_v63  ;;  %v180_v57 = vld [vmem:[#allocation5 + $0x1f8] sm:$0xff] }
 0x405   :  { %v1519_v59 = vld [vmem:[#allocation5 + $0x2bd0] sm:$0xff]  ;;  %3024 = vmatpush.msrb.mxu0 %v1455_v58  ;;  %v244_v58 = vld [vmem:[#allocation5 + $0x3f8] sm:$0xff] }
 0x406   :  { %v1583_v60 = vld [vmem:[#allocation5 + $0x2dd0] sm:$0xff]  ;;  %3044 = vmatpush.msrb.mxu1 %v1519_v59  ;;  %v308_v59 = vld [vmem:[#allocation5 + $0x5f8] sm:$0xff] }
 0x407   :  { %v1651_v61 = vld [vmem:[#allocation5 + $0x2ff0] sm:$0xff]  ;;  %3064 = vmatpush.msrb.mxu2 %v1583_v60  ;;  %v176_v63 = vld [vmem:[#allocation5 + $0x1d8] sm:$0xff] }
 0x408   :  { %v1451_v0 = vld [vmem:[#allocation5 + $0x29b0] sm:$0xff]  ;;  %3083 = vmatpush.msrb.mxu3 %v1651_v61  ;;  %v3818_v61 = vld [vmem:[#allocation2 + $0xa0] sm:$0xff] }
 0x409   :  { %v1515_v1 = vld [vmem:[#allocation5 + $0x2bb0] sm:$0xff]  ;;  %3025 = vmatpush.msrb.mxu0 %v1451_v0  ;;  %v240_v0 = vld [vmem:[#allocation5 + $0x3d8] sm:$0xff] }
 0x40a   :  { %v1579_v2 = vld [vmem:[#allocation5 + $0x2db0] sm:$0xff]  ;;  %3045 = vmatpush.msrb.mxu1 %v1515_v1  ;;  %v304_v1 = vld [vmem:[#allocation5 + $0x5d8] sm:$0xff] }
 0x40b   :  { %v1647_v3 = vld [vmem:[#allocation5 + $0x2fd0] sm:$0xff]  ;;  %3065 = vmatpush.msrb.mxu2 %v1579_v2  ;;  %v372_v2 = vld [vmem:[#allocation5 + $0x7f8] sm:$0xff] }
 0x40c   :  { %v1447_v4 = vld [vmem:[#allocation5 + $0x2990] sm:$0xff]  ;;  %3084 = vmatpush.msrb.mxu3 %v1647_v3  ;;  %v3820_v3 = vld [vmem:[#allocation2 + $0xa8] sm:$0xff] }
 0x40d   :  { %v1511_v5 = vld [vmem:[#allocation5 + $0x2b90] sm:$0xff]  ;;  %3026 = vmatpush.msrb.mxu0 %v1447_v4  ;;  %v3821_v4 = vld [vmem:[#allocation2 + $0xb8] sm:$0xff] }
 0x40e   :  { %v1575_v6 = vld [vmem:[#allocation5 + $0x2d90] sm:$0xff]  ;;  %3046 = vmatpush.msrb.mxu1 %v1511_v5  ;;  %v172_v5 = vld [vmem:[#allocation5 + $0x1b8] sm:$0xff] }
 0x40f   :  { %v1643_v7 = vld [vmem:[#allocation5 + $0x2fb0] sm:$0xff]  ;;  %3066 = vmatpush.msrb.mxu2 %v1575_v6  ;;  %v236_v6 = vld [vmem:[#allocation5 + $0x3b8] sm:$0xff] }
 0x410   :  { %v1443_v8 = vld [vmem:[#allocation5 + $0x2970] sm:$0xff]  ;;  %3085 = vmatpush.msrb.mxu3 %v1643_v7  ;;  %v300_v7 = vld [vmem:[#allocation5 + $0x5b8] sm:$0xff] }
 0x411   :  { %v1507_v9 = vld [vmem:[#allocation5 + $0x2b70] sm:$0xff]  ;;  %3027 = vmatpush.msrb.mxu0 %v1443_v8  ;;  %v368_v8 = vld [vmem:[#allocation5 + $0x7d8] sm:$0xff] }
 0x412   :  { %v1571_v11 = vld [vmem:[#allocation5 + $0x2d70] sm:$0xff]  ;;  %3047 = vmatpush.msrb.mxu1 %v1507_v9  ;;  %v168_v9 = vld [vmem:[#allocation5 + $0x198] sm:$0xff] }
 0x413   :  { %v1639_v13 = vld [vmem:[#allocation5 + $0x2f90] sm:$0xff]  ;;  %3067 = vmatpush.msrb.mxu2 %v1571_v11  ;;  %v232_v11 = vld [vmem:[#allocation5 + $0x398] sm:$0xff] }
 0x414   :  { %v1439_v12 = vld [vmem:[#allocation5 + $0x2950] sm:$0xff]  ;;  %3086 = vmatpush.msrb.mxu3 %v1639_v13  ;;  %v296_v13 = vld [vmem:[#allocation5 + $0x598] sm:$0xff] }
 0x415   :  { %v1503_v14 = vld [vmem:[#allocation5 + $0x2b50] sm:$0xff]  ;;  %3028 = vmatpush.msrb.mxu0 %v1439_v12  ;;  %v364_v12 = vld [vmem:[#allocation5 + $0x7b8] sm:$0xff] }
 0x416   :  { %v1567_v15 = vld [vmem:[#allocation5 + $0x2d50] sm:$0xff]  ;;  %3048 = vmatpush.msrb.mxu1 %v1503_v14  ;;  %v164_v14 = vld [vmem:[#allocation5 + $0x178] sm:$0xff] }
 0x417   :  { %v1635_v16 = vld [vmem:[#allocation5 + $0x2f70] sm:$0xff]  ;;  %3068 = vmatpush.msrb.mxu2 %v1567_v15  ;;  %v228_v15 = vld [vmem:[#allocation5 + $0x378] sm:$0xff] }
 0x418   :  { %v1435_v17 = vld [vmem:[#allocation5 + $0x2930] sm:$0xff]  ;;  %3087 = vmatpush.msrb.mxu3 %v1635_v16  ;;  %v292_v16 = vld [vmem:[#allocation5 + $0x578] sm:$0xff] }
 0x419   :  { %v1499_v18 = vld [vmem:[#allocation5 + $0x2b30] sm:$0xff]  ;;  %3029 = vmatpush.msrb.mxu0 %v1435_v17  ;;  %v360_v17 = vld [vmem:[#allocation5 + $0x798] sm:$0xff] }
 0x41a   :  { %v1563_v19 = vld [vmem:[#allocation5 + $0x2d30] sm:$0xff]  ;;  %3049 = vmatpush.msrb.mxu1 %v1499_v18  ;;  %v160_v18 = vld [vmem:[#allocation5 + $0x158] sm:$0xff] }
 0x41b   :  { %v1631_v20 = vld [vmem:[#allocation5 + $0x2f50] sm:$0xff]  ;;  %3069 = vmatpush.msrb.mxu2 %v1563_v19  ;;  %v224_v19 = vld [vmem:[#allocation5 + $0x358] sm:$0xff] }
 0x41c   :  { %v1431_v21 = vld [vmem:[#allocation5 + $0x2910] sm:$0xff]  ;;  %3088 = vmatpush.msrb.mxu3 %v1631_v20  ;;  %v288_v20 = vld [vmem:[#allocation5 + $0x558] sm:$0xff] }
 0x41d   :  { %v1495_v22 = vld [vmem:[#allocation5 + $0x2b10] sm:$0xff]  ;;  %3030 = vmatpush.msrb.mxu0 %v1431_v21  ;;  %v356_v21 = vld [vmem:[#allocation5 + $0x778] sm:$0xff] }
 0x41e   :  { %v1559_v23 = vld [vmem:[#allocation5 + $0x2d10] sm:$0xff]  ;;  %3050 = vmatpush.msrb.mxu1 %v1495_v22  ;;  %v156_v22 = vld [vmem:[#allocation5 + $0x138] sm:$0xff] }
 0x41f   :  { %v1627_v24 = vld [vmem:[#allocation5 + $0x2f30] sm:$0xff]  ;;  %3070 = vmatpush.msrb.mxu2 %v1559_v23  ;;  %v220_v23 = vld [vmem:[#allocation5 + $0x338] sm:$0xff] }
 0x420   :  { %v1427_v25 = vld [vmem:[#allocation5 + $0x28f0] sm:$0xff]  ;;  %3089 = vmatpush.msrb.mxu3 %v1627_v24  ;;  %v284_v24 = vld [vmem:[#allocation5 + $0x538] sm:$0xff] }
 0x421   :  { %v1491_v26 = vld [vmem:[#allocation5 + $0x2af0] sm:$0xff]  ;;  %3031 = vmatpush.msrb.mxu0 %v1427_v25  ;;  %v352_v25 = vld [vmem:[#allocation5 + $0x758] sm:$0xff] }
 0x422   :  { %v1555_v27 = vld [vmem:[#allocation5 + $0x2cf0] sm:$0xff]  ;;  %3051 = vmatpush.msrb.mxu1 %v1491_v26  ;;  %v152_v26 = vld [vmem:[#allocation5 + $0x118] sm:$0xff] }
 0x423   :  { %v1623_v28 = vld [vmem:[#allocation5 + $0x2f10] sm:$0xff]  ;;  %3071 = vmatpush.msrb.mxu2 %v1555_v27  ;;  %v216_v27 = vld [vmem:[#allocation5 + $0x318] sm:$0xff] }
 0x424   :  { %v1423_v29 = vld [vmem:[#allocation5 + $0x28d0] sm:$0xff]  ;;  %3090 = vmatpush.msrb.mxu3 %v1623_v28  ;;  %v280_v28 = vld [vmem:[#allocation5 + $0x518] sm:$0xff] }
 0x425   :  { %v1487_v30 = vld [vmem:[#allocation5 + $0x2ad0] sm:$0xff]  ;;  %3032 = vmatpush.msrb.mxu0 %v1423_v29  ;;  %v348_v29 = vld [vmem:[#allocation5 + $0x738] sm:$0xff] }
 0x426   :  { %v1551_v31 = vld [vmem:[#allocation5 + $0x2cd0] sm:$0xff]  ;;  %3052 = vmatpush.msrb.mxu1 %v1487_v30  ;;  %v148_v30 = vld [vmem:[#allocation5 + $0xf8] sm:$0xff] }
 0x427   :  { %v1619_v32 = vld [vmem:[#allocation5 + $0x2ef0] sm:$0xff]  ;;  %3072 = vmatpush.msrb.mxu2 %v1551_v31  ;;  %v212_v31 = vld [vmem:[#allocation5 + $0x2f8] sm:$0xff] }
 0x428   :  { %v1419_v33 = vld [vmem:[#allocation5 + $0x28b0] sm:$0xff]  ;;  %3091 = vmatpush.msrb.mxu3 %v1619_v32  ;;  %v276_v32 = vld [vmem:[#allocation5 + $0x4f8] sm:$0xff] }
 0x429   :  { %v1483_v34 = vld [vmem:[#allocation5 + $0x2ab0] sm:$0xff]  ;;  %3033 = vmatpush.msrb.mxu0 %v1419_v33  ;;  %v344_v33 = vld [vmem:[#allocation5 + $0x718] sm:$0xff] }
 0x42a   :  { %v1547_v35 = vld [vmem:[#allocation5 + $0x2cb0] sm:$0xff]  ;;  %3053 = vmatpush.msrb.mxu1 %v1483_v34  ;;  %v144_v34 = vld [vmem:[#allocation5 + $0xd8] sm:$0xff] }
 0x42b   :  { %v1615_v36 = vld [vmem:[#allocation5 + $0x2ed0] sm:$0xff]  ;;  %3073 = vmatpush.msrb.mxu2 %v1547_v35  ;;  %v208_v35 = vld [vmem:[#allocation5 + $0x2d8] sm:$0xff] }
 0x42c   :  { %v1415_v37 = vld [vmem:[#allocation5 + $0x2890] sm:$0xff]  ;;  %3092 = vmatpush.msrb.mxu3 %v1615_v36  ;;  %v272_v36 = vld [vmem:[#allocation5 + $0x4d8] sm:$0xff] }
 0x42d   :  { %v1479_v38 = vld [vmem:[#allocation5 + $0x2a90] sm:$0xff]  ;;  %3034 = vmatpush.msrb.mxu0 %v1415_v37  ;;  %v340_v37 = vld [vmem:[#allocation5 + $0x6f8] sm:$0xff] }
 0x42e   :  { %v1543_v39 = vld [vmem:[#allocation5 + $0x2c90] sm:$0xff]  ;;  %3054 = vmatpush.msrb.mxu1 %v1479_v38  ;;  %v140_v38 = vld [vmem:[#allocation5 + $0xb8] sm:$0xff] }
 0x42f   :  { %v1611_v40 = vld [vmem:[#allocation5 + $0x2eb0] sm:$0xff]  ;;  %3074 = vmatpush.msrb.mxu2 %v1543_v39  ;;  %v204_v39 = vld [vmem:[#allocation5 + $0x2b8] sm:$0xff] }
 0x430   :  { %v1411_v41 = vld [vmem:[#allocation5 + $0x2870] sm:$0xff]  ;;  %3093 = vmatpush.msrb.mxu3 %v1611_v40  ;;  %v268_v40 = vld [vmem:[#allocation5 + $0x4b8] sm:$0xff] }
 0x431   :  { %v1475_v42 = vld [vmem:[#allocation5 + $0x2a70] sm:$0xff]  ;;  %3035 = vmatpush.msrb.mxu0 %v1411_v41  ;;  %v336_v41 = vld [vmem:[#allocation5 + $0x6d8] sm:$0xff] }
 0x432   :  { %v1539_v43 = vld [vmem:[#allocation5 + $0x2c70] sm:$0xff]  ;;  %3055 = vmatpush.msrb.mxu1 %v1475_v42  ;;  %v136_v42 = vld [vmem:[#allocation5 + $0x98] sm:$0xff] }
 0x433   :  { %v1607_v44 = vld [vmem:[#allocation5 + $0x2e90] sm:$0xff]  ;;  %3075 = vmatpush.msrb.mxu2 %v1539_v43  ;;  %v200_v43 = vld [vmem:[#allocation5 + $0x298] sm:$0xff] }
 0x434   :  { %v1407_v45 = vld [vmem:[#allocation5 + $0x2850] sm:$0xff]  ;;  %3094 = vmatpush.msrb.mxu3 %v1607_v44  ;;  %v264_v44 = vld [vmem:[#allocation5 + $0x498] sm:$0xff] }
 0x435   :  { %v1471_v46 = vld [vmem:[#allocation5 + $0x2a50] sm:$0xff]  ;;  %3036 = vmatpush.msrb.mxu0 %v1407_v45  ;;  %v332_v45 = vld [vmem:[#allocation5 + $0x6b8] sm:$0xff] }
 0x436   :  { %v1535_v47 = vld [vmem:[#allocation5 + $0x2c50] sm:$0xff]  ;;  %3056 = vmatpush.msrb.mxu1 %v1471_v46  ;;  %v132_v46 = vld [vmem:[#allocation5 + $0x78] sm:$0xff] }
 0x437   :  { %v1603_v48 = vld [vmem:[#allocation5 + $0x2e70] sm:$0xff]  ;;  %3076 = vmatpush.msrb.mxu2 %v1535_v47  ;;  %v196_v47 = vld [vmem:[#allocation5 + $0x278] sm:$0xff] }
 0x438   :  { %v1403_v49 = vld [vmem:[#allocation5 + $0x2830] sm:$0xff]  ;;  %3095 = vmatpush.msrb.mxu3 %v1603_v48  ;;  %v260_v48 = vld [vmem:[#allocation5 + $0x478] sm:$0xff] }
 0x439   :  { %v1467_v50 = vld [vmem:[#allocation5 + $0x2a30] sm:$0xff]  ;;  %3037 = vmatpush.msrb.mxu0 %v1403_v49  ;;  %v328_v49 = vld [vmem:[#allocation5 + $0x698] sm:$0xff] }
 0x43a   :  { %v1531_v51 = vld [vmem:[#allocation5 + $0x2c30] sm:$0xff]  ;;  %3057 = vmatpush.msrb.mxu1 %v1467_v50  ;;  %v128_v50 = vld [vmem:[#allocation5 + $0x58] sm:$0xff] }
 0x43b   :  { %v1599_v52 = vld [vmem:[#allocation5 + $0x2e50] sm:$0xff]  ;;  %3077 = vmatpush.msrb.mxu2 %v1531_v51  ;;  %v192_v51 = vld [vmem:[#allocation5 + $0x258] sm:$0xff] }
 0x43c   :  { %v1399_v53 = vld [vmem:[#allocation5 + $0x2810] sm:$0xff]  ;;  %3096 = vmatpush.msrb.mxu3 %v1599_v52  ;;  %v256_v52 = vld [vmem:[#allocation5 + $0x458] sm:$0xff] }
 0x43d   :  { %v1463_v54 = vld [vmem:[#allocation5 + $0x2a10] sm:$0xff]  ;;  %3038 = vmatpush.msrb.mxu0 %v1399_v53  ;;  %v324_v53 = vld [vmem:[#allocation5 + $0x678] sm:$0xff] }
 0x43e   :  { %v1527_v55 = vld [vmem:[#allocation5 + $0x2c10] sm:$0xff]  ;;  %3058 = vmatpush.msrb.mxu1 %v1463_v54  ;;  %3039 = vmatmul.f32.vlgmr.msrb.gmra.mxu0 %v3818_v61  ;;  %v124_v54 = vld [vmem:[#allocation5 + $0x38] sm:$0xff] }
 0x43f   :  { %v1595_v56 = vld [vmem:[#allocation5 + $0x2e30] sm:$0xff]  ;;  %3078 = vmatpush.msrb.mxu2 %v1527_v55  ;;  %3103 = vmatpush.msra.mxu0 %v180_v57  ;;  %v188_v55 = vld [vmem:[#allocation5 + $0x238] sm:$0xff] }
 0x440   :  { %3097 = vmatpush.msrb.mxu3 %v1595_v56  ;;  %v1591_v60 = vld [vmem:[#allocation5 + $0x2e10] sm:$0xff]  ;;  %3123 = vmatpush.msra.mxu1 %v244_v58  ;;  %v252_v56 = vld [vmem:[#allocation5 + $0x438] sm:$0xff] }
 0x441   :  { %v3819_v62 = vld [vmem:[#allocation2 + $0xb0] sm:$0xff]  ;;  %3143 = vmatpush.msra.mxu2 %v308_v59  ;;  %3059 = vmatmul.f32.vlgmr.msrb.gmra.mxu1 %v3820_v3  ;;  %v320_v57 = vld [vmem:[#allocation5 + $0x658] sm:$0xff] }
 0x442   :  { %3079 = vmatmul.f32.vlgmr.msrb.gmra.mxu2 %v3819_v62  ;;  %3098 = vmatpush.msrb.mxu3 %v1591_v60  ;;  %v120_v58 = vld [vmem:[#allocation5 + $0x18] sm:$0xff] }
 0x443   :  { %3099 = vmatmul.f32.vlgmr.msrb.gmra.mxu3 %v3821_v4  ;;  %3104 = vmatpush.msra.mxu0 %v176_v63  ;;  %v184_v59 = vld [vmem:[#allocation5 + $0x218] sm:$0xff] }
 0x444   :  { %3124 = vmatpush.msra.mxu1 %v240_v0  ;;  %3144 = vmatpush.msra.mxu2 %v304_v1  ;;  %v248_v60 = vld [vmem:[#allocation5 + $0x418] sm:$0xff] }
 0x445   :  { %3163 = vmatpush.msra.mxu3 %v372_v2  ;;  %3105 = vmatpush.msra.mxu0 %v172_v5  ;;  %v316_v61 = vld [vmem:[#allocation5 + $0x638] sm:$0xff] }
 0x446   :  { %3125 = vmatpush.msra.mxu1 %v236_v6  ;;  %3145 = vmatpush.msra.mxu2 %v300_v7  ;;  %v436_v62 = vld [vmem:[#allocation5 + $0x9f8] sm:$0xff] }
 0x447   :  { %3164 = vmatpush.msra.mxu3 %v368_v8  ;;  %3106 = vmatpush.msra.mxu0 %v168_v9  ;;  %v500_v63 = vld [vmem:[#allocation5 + $0xbf8] sm:$0xff] }
 0x448   :  { %3126 = vmatpush.msra.mxu1 %v232_v11  ;;  %3146 = vmatpush.msra.mxu2 %v296_v13  ;;  %v564_v0 = vld [vmem:[#allocation5 + $0xdf8] sm:$0xff] }
 0x449   :  { %3165 = vmatpush.msra.mxu3 %v364_v12  ;;  %3107 = vmatpush.msra.mxu0 %v164_v14  ;;  %v312_v1 = vld [vmem:[#allocation5 + $0x618] sm:$0xff] }
 0x44a   :  { %3127 = vmatpush.msra.mxu1 %v228_v15  ;;  %3147 = vmatpush.msra.mxu2 %v292_v16  ;;  %v432_v2 = vld [vmem:[#allocation5 + $0x9d8] sm:$0xff] }
 0x44b   :  { %3166 = vmatpush.msra.mxu3 %v360_v17  ;;  %3108 = vmatpush.msra.mxu0 %v160_v18  ;;  %v496_v3 = vld [vmem:[#allocation5 + $0xbd8] sm:$0xff] }
 0x44c   :  { %3128 = vmatpush.msra.mxu1 %v224_v19  ;;  %3148 = vmatpush.msra.mxu2 %v288_v20  ;;  %v560_v4 = vld [vmem:[#allocation5 + $0xdd8] sm:$0xff] }
 0x44d   :  { %3167 = vmatpush.msra.mxu3 %v356_v21  ;;  %3109 = vmatpush.msra.mxu0 %v156_v22  ;;  %v628_v5 = vld [vmem:[#allocation5 + $0xff8] sm:$0xff] }
 0x44e   :  { %3129 = vmatpush.msra.mxu1 %v220_v23  ;;  %3149 = vmatpush.msra.mxu2 %v284_v24  ;;  %v428_v6 = vld [vmem:[#allocation5 + $0x9b8] sm:$0xff] }
 0x44f   :  { %3168 = vmatpush.msra.mxu3 %v352_v25  ;;  %3110 = vmatpush.msra.mxu0 %v152_v26  ;;  %v492_v7 = vld [vmem:[#allocation5 + $0xbb8] sm:$0xff] }
 0x450   :  { %3130 = vmatpush.msra.mxu1 %v216_v27  ;;  %3150 = vmatpush.msra.mxu2 %v280_v28  ;;  %v556_v8 = vld [vmem:[#allocation5 + $0xdb8] sm:$0xff] }
 0x451   :  { %3169 = vmatpush.msra.mxu3 %v348_v29  ;;  %3111 = vmatpush.msra.mxu0 %v148_v30  ;;  %v624_v9 = vld [vmem:[#allocation5 + $0xfd8] sm:$0xff] }
 0x452   :  { %3131 = vmatpush.msra.mxu1 %v212_v31  ;;  %3151 = vmatpush.msra.mxu2 %v276_v32  ;;  %v424_v11 = vld [vmem:[#allocation5 + $0x998] sm:$0xff] }
 0x453   :  { %3170 = vmatpush.msra.mxu3 %v344_v33  ;;  %3112 = vmatpush.msra.mxu0 %v144_v34  ;;  %v488_v13 = vld [vmem:[#allocation5 + $0xb98] sm:$0xff] }
 0x454   :  { %3132 = vmatpush.msra.mxu1 %v208_v35  ;;  %3152 = vmatpush.msra.mxu2 %v272_v36  ;;  %v552_v12 = vld [vmem:[#allocation5 + $0xd98] sm:$0xff] }
 0x455   :  { %3171 = vmatpush.msra.mxu3 %v340_v37  ;;  %3113 = vmatpush.msra.mxu0 %v140_v38  ;;  %v620_v14 = vld [vmem:[#allocation5 + $0xfb8] sm:$0xff] }
 0x456   :  { %3133 = vmatpush.msra.mxu1 %v204_v39  ;;  %3153 = vmatpush.msra.mxu2 %v268_v40  ;;  %v420_v15 = vld [vmem:[#allocation5 + $0x978] sm:$0xff] }
 0x457   :  { %3172 = vmatpush.msra.mxu3 %v336_v41  ;;  %3114 = vmatpush.msra.mxu0 %v136_v42  ;;  %v484_v16 = vld [vmem:[#allocation5 + $0xb78] sm:$0xff] }
 0x458   :  { %3134 = vmatpush.msra.mxu1 %v200_v43  ;;  %3154 = vmatpush.msra.mxu2 %v264_v44  ;;  %v548_v17 = vld [vmem:[#allocation5 + $0xd78] sm:$0xff] }
 0x459   :  { %3173 = vmatpush.msra.mxu3 %v332_v45  ;;  %3115 = vmatpush.msra.mxu0 %v132_v46  ;;  %v616_v18 = vld [vmem:[#allocation5 + $0xf98] sm:$0xff] }
 0x45a   :  { %3135 = vmatpush.msra.mxu1 %v196_v47  ;;  %3155 = vmatpush.msra.mxu2 %v260_v48  ;;  %v416_v19 = vld [vmem:[#allocation5 + $0x958] sm:$0xff] }
 0x45b   :  { %3174 = vmatpush.msra.mxu3 %v328_v49  ;;  %3116 = vmatpush.msra.mxu0 %v128_v50  ;;  %v480_v20 = vld [vmem:[#allocation5 + $0xb58] sm:$0xff] }
 0x45c   :  { %3136 = vmatpush.msra.mxu1 %v192_v51  ;;  %3156 = vmatpush.msra.mxu2 %v256_v52  ;;  %v544_v21 = vld [vmem:[#allocation5 + $0xd58] sm:$0xff] }
 0x45d   :  { %3175 = vmatpush.msra.mxu3 %v324_v53  ;;  %3117 = vmatpush.msra.mxu0 %v124_v54  ;;  %v612_v22 = vld [vmem:[#allocation5 + $0xf78] sm:$0xff] }
 0x45e   :  { %3137 = vmatpush.msra.mxu1 %v188_v55  ;;  %3157 = vmatpush.msra.mxu2 %v252_v56  ;;  %v412_v23 = vld [vmem:[#allocation5 + $0x938] sm:$0xff] }
 0x45f   :  { %3176 = vmatpush.msra.mxu3 %v320_v57  ;;  %3118 = vmatpush.msra.mxu0 %v120_v58  ;;  %v476_v24 = vld [vmem:[#allocation5 + $0xb38] sm:$0xff] }
 0x460   :  { %3138 = vmatpush.msra.mxu1 %v184_v59  ;;  %3158 = vmatpush.msra.mxu2 %v248_v60  ;;  %v540_v25 = vld [vmem:[#allocation5 + $0xd38] sm:$0xff] }
 0x461   :  { %3177 = vmatpush.msra.mxu3 %v316_v61  ;;  %3183 = vmatpush.msrb.mxu0 %v436_v62  ;;  %v608_v26 = vld [vmem:[#allocation5 + $0xf58] sm:$0xff] }
 0x462   :  { %3203 = vmatpush.msrb.mxu1 %v500_v63  ;;  %3223 = vmatpush.msrb.mxu2 %v564_v0  ;;  %v408_v27 = vld [vmem:[#allocation5 + $0x918] sm:$0xff] }
 0x463   :  { %3178 = vmatpush.msra.mxu3 %v312_v1  ;;  %3184 = vmatpush.msrb.mxu0 %v432_v2  ;;  %v472_v28 = vld [vmem:[#allocation5 + $0xb18] sm:$0xff]  ;;  %v3822_v2 = vld [vmem:[#allocation2] sm:$0xff] }
 0x464   :  { %3204 = vmatpush.msrb.mxu1 %v496_v3  ;;  %3224 = vmatpush.msrb.mxu2 %v560_v4  ;;  %v536_v29 = vld [vmem:[#allocation5 + $0xd18] sm:$0xff]  ;;  %v3823_v3 = vld [vmem:[#allocation2 + $0x8] sm:$0xff] }
 0x465   :  { %3243 = vmatpush.msrb.mxu3 %v628_v5  ;;  %3185 = vmatpush.msrb.mxu0 %v428_v6  ;;  %v604_v30 = vld [vmem:[#allocation5 + $0xf38] sm:$0xff]  ;;  %v3824_v6 = vld [vmem:[#allocation2 + $0x10] sm:$0xff] }
 0x466   :  { %3205 = vmatpush.msrb.mxu1 %v492_v7  ;;  %3225 = vmatpush.msrb.mxu2 %v556_v8  ;;  %v404_v31 = vld [vmem:[#allocation5 + $0x8f8] sm:$0xff] }
 0x467   :  { %3244 = vmatpush.msrb.mxu3 %v624_v9  ;;  %3186 = vmatpush.msrb.mxu0 %v424_v11  ;;  %v468_v32 = vld [vmem:[#allocation5 + $0xaf8] sm:$0xff] }
 0x468   :  { %3206 = vmatpush.msrb.mxu1 %v488_v13  ;;  %3226 = vmatpush.msrb.mxu2 %v552_v12  ;;  %v532_v33 = vld [vmem:[#allocation5 + $0xcf8] sm:$0xff] }
 0x469   :  { %3245 = vmatpush.msrb.mxu3 %v620_v14  ;;  %3187 = vmatpush.msrb.mxu0 %v420_v15  ;;  %v600_v34 = vld [vmem:[#allocation5 + $0xf18] sm:$0xff] }
 0x46a   :  { %3207 = vmatpush.msrb.mxu1 %v484_v16  ;;  %3227 = vmatpush.msrb.mxu2 %v548_v17  ;;  %v400_v35 = vld [vmem:[#allocation5 + $0x8d8] sm:$0xff] }
 0x46b   :  { %3246 = vmatpush.msrb.mxu3 %v616_v18  ;;  %3188 = vmatpush.msrb.mxu0 %v416_v19  ;;  %v464_v36 = vld [vmem:[#allocation5 + $0xad8] sm:$0xff] }
 0x46c   :  { %3208 = vmatpush.msrb.mxu1 %v480_v20  ;;  %3228 = vmatpush.msrb.mxu2 %v544_v21  ;;  %v528_v37 = vld [vmem:[#allocation5 + $0xcd8] sm:$0xff] }
 0x46d   :  { %3247 = vmatpush.msrb.mxu3 %v612_v22  ;;  %3189 = vmatpush.msrb.mxu0 %v412_v23  ;;  %v596_v38 = vld [vmem:[#allocation5 + $0xef8] sm:$0xff] }
 0x46e   :  { %3209 = vmatpush.msrb.mxu1 %v476_v24  ;;  %3229 = vmatpush.msrb.mxu2 %v540_v25  ;;  %v396_v39 = vld [vmem:[#allocation5 + $0x8b8] sm:$0xff]  ;;  %v3826_v24 = vld [vmem:[#allocation2 + $0x30] sm:$0xff] }
 0x46f   :  { %3248 = vmatpush.msrb.mxu3 %v608_v26  ;;  %3190 = vmatpush.msrb.mxu0 %v408_v27  ;;  %v460_v40 = vld [vmem:[#allocation5 + $0xab8] sm:$0xff] }
 0x470   :  { %3210 = vmatpush.msrb.mxu1 %v472_v28  ;;  %3230 = vmatpush.msrb.mxu2 %v536_v29  ;;  %v524_v41 = vld [vmem:[#allocation5 + $0xcb8] sm:$0xff]  ;;  %v3827_v28 = vld [vmem:[#allocation2 + $0x20] sm:$0xff] }
 0x471   :  { %3249 = vmatpush.msrb.mxu3 %v604_v30  ;;  %3191 = vmatpush.msrb.mxu0 %v404_v31  ;;  %v592_v42 = vld [vmem:[#allocation5 + $0xed8] sm:$0xff] }
 0x472   :  { %3211 = vmatpush.msrb.mxu1 %v468_v32  ;;  %3231 = vmatpush.msrb.mxu2 %v532_v33  ;;  %v392_v43 = vld [vmem:[#allocation5 + $0x898] sm:$0xff] }
 0x473   :  { %3250 = vmatpush.msrb.mxu3 %v600_v34  ;;  %3192 = vmatpush.msrb.mxu0 %v400_v35  ;;  %v456_v44 = vld [vmem:[#allocation5 + $0xa98] sm:$0xff]  ;;  %v3829_v35 = vld [vmem:[#allocation2 + $0x28] sm:$0xff] }
 0x474   :  { %3212 = vmatpush.msrb.mxu1 %v464_v36  ;;  %3232 = vmatpush.msrb.mxu2 %v528_v37  ;;  %v520_v45 = vld [vmem:[#allocation5 + $0xc98] sm:$0xff] }
 0x475   :  { %3251 = vmatpush.msrb.mxu3 %v596_v38  ;;  %3193 = vmatpush.msrb.mxu0 %v396_v39  ;;  %v588_v46 = vld [vmem:[#allocation5 + $0xeb8] sm:$0xff] }
 0x476   :  { %3213 = vmatpush.msrb.mxu1 %v460_v40  ;;  %3233 = vmatpush.msrb.mxu2 %v524_v41  ;;  %v388_v47 = vld [vmem:[#allocation5 + $0x878] sm:$0xff] }
 0x477   :  { %3252 = vmatpush.msrb.mxu3 %v592_v42  ;;  %v452_v48 = vld [vmem:[#allocation5 + $0xa78] sm:$0xff]  ;;  %3194 = vmatpush.msrb.mxu0 %v392_v43 }
 0x478   :  { %3214 = vmatpush.msrb.mxu1 %v456_v44  ;;  %v516_v49 = vld [vmem:[#allocation5 + $0xc78] sm:$0xff]  ;;  %3234 = vmatpush.msrb.mxu2 %v520_v45 }
 0x479   :  { %v584_v50 = vld [vmem:[#allocation5 + $0xe98] sm:$0xff]  ;;  %3253 = vmatpush.msrb.mxu3 %v588_v46  ;;  %3195 = vmatpush.msrb.mxu0 %v388_v47 }
 0x47a   :  { %v384_v51 = vld [vmem:[#allocation5 + $0x858] sm:$0xff]  ;;  %3215 = vmatpush.msrb.mxu1 %v452_v48  ;;  %3235 = vmatpush.msrb.mxu2 %v516_v49 }
 0x47b   :  { %v448_v52 = vld [vmem:[#allocation5 + $0xa58] sm:$0xff]  ;;  %3254 = vmatpush.msrb.mxu3 %v584_v50  ;;  %3196 = vmatpush.msrb.mxu0 %v384_v51 }
 0x47c   :  { %v512_v53 = vld [vmem:[#allocation5 + $0xc58] sm:$0xff]  ;;  %3216 = vmatpush.msrb.mxu1 %v448_v52  ;;  %3119 = vmatmul.f32.vlgmr.msra.gmra.mxu0 %v3822_v2 }
 0x47d   :  { %v580_v54 = vld [vmem:[#allocation5 + $0xe78] sm:$0xff]  ;;  %3236 = vmatpush.msrb.mxu2 %v512_v53  ;;  %3139 = vmatmul.f32.vlgmr.msra.gmra.mxu1 %v3823_v3 }
 0x47e   :  { %v380_v55 = vld [vmem:[#allocation5 + $0x838] sm:$0xff]  ;;  %3255 = vmatpush.msrb.mxu3 %v580_v54  ;;  %3159 = vmatmul.f32.vlgmr.msra.gmra.mxu2 %v3824_v6  ;;  %v4068_v6 = vpop.f32.mrf.mxu2 }
 0x47f   :  { %v444_v56 = vld [vmem:[#allocation5 + $0xa38] sm:$0xff]  ;;  %3197 = vmatpush.msrb.mxu0 %v380_v55 }
 0x480   :  { %v508_v57 = vld [vmem:[#allocation5 + $0xc38] sm:$0xff]  ;;  %3217 = vmatpush.msrb.mxu1 %v444_v56 }
 0x481   :  { %v576_v58 = vld [vmem:[#allocation5 + $0xe58] sm:$0xff]  ;;  %3237 = vmatpush.msrb.mxu2 %v508_v57 }
 0x482   :  { %v376_v59 = vld [vmem:[#allocation5 + $0x818] sm:$0xff]  ;;  %3256 = vmatpush.msrb.mxu3 %v576_v58 }
 0x483   :  { %v440_v60 = vld [vmem:[#allocation5 + $0xa18] sm:$0xff]  ;;  %3198 = vmatpush.msrb.mxu0 %v376_v59 }
 0x484   :  { %v504_v61 = vld [vmem:[#allocation5 + $0xc18] sm:$0xff]  ;;  %3218 = vmatpush.msrb.mxu1 %v440_v60  ;;  %3199 = vmatmul.f32.vlgmr.msrb.gmra.mxu0 %v3827_v28 }
 0x485   :  { %v572_v62 = vld [vmem:[#allocation5 + $0xe38] sm:$0xff]  ;;  %3238 = vmatpush.msrb.mxu2 %v504_v61  ;;  %3219 = vmatmul.f32.vlgmr.msrb.gmra.mxu1 %v3829_v35 }
 0x486   :  { %v692_v63 = vld [vmem:[#allocation5 + $0x11f8] sm:$0xff]  ;;  %3257 = vmatpush.msrb.mxu3 %v572_v62  ;;  %3239 = vmatmul.f32.vlgmr.msrb.gmra.mxu2 %v3826_v24 }
 0x487   :  { %v756_v0 = vld [vmem:[#allocation5 + $0x13f8] sm:$0xff]  ;;  %3263 = vmatpush.msra.mxu0 %v692_v63 }
 0x488   :  { %v820_v1 = vld [vmem:[#allocation5 + $0x15f8] sm:$0xff]  ;;  %3283 = vmatpush.msra.mxu1 %v756_v0 }
 0x489   :  { %v568_v4 = vld [vmem:[#allocation5 + $0xe18] sm:$0xff]  ;;  %3303 = vmatpush.msra.mxu2 %v820_v1 }
 0x48a   :  { %v688_v5 = vld [vmem:[#allocation5 + $0x11d8] sm:$0xff]  ;;  %3258 = vmatpush.msrb.mxu3 %v568_v4 }
 0x48b   :  { %v752_v7 = vld [vmem:[#allocation5 + $0x13d8] sm:$0xff]  ;;  %3264 = vmatpush.msra.mxu0 %v688_v5 }
 0x48c   :  { %v816_v8 = vld [vmem:[#allocation5 + $0x15d8] sm:$0xff]  ;;  %3284 = vmatpush.msra.mxu1 %v752_v7  ;;  %v4070_v7 = vpop.f32.mrf.mxu0 }
 0x48d   :  { %v884_v9 = vld [vmem:[#allocation5 + $0x17f8] sm:$0xff]  ;;  %3304 = vmatpush.msra.mxu2 %v816_v8 }
 0x48e   :  { %v684_v11 = vld [vmem:[#allocation5 + $0x11b8] sm:$0xff] }
 0x48f   :  { %v748_v13 = vld [vmem:[#allocation5 + $0x13b8] sm:$0xff]  ;;  %3265 = vmatpush.msra.mxu0 %v684_v11 }
 0x490   :  { %v3825_v12 = vld [vmem:[#allocation2 + $0x18] sm:$0xff]  ;;  %3285 = vmatpush.msra.mxu1 %v748_v13 }
 0x491   :  { %3179 = vmatmul.f32.vlgmr.msra.gmra.mxu3 %v3825_v12  ;;  %v812_v14 = vld [vmem:[#allocation5 + $0x15b8] sm:$0xff] }
 0x492   :  { %v880_v15 = vld [vmem:[#allocation5 + $0x17d8] sm:$0xff]  ;;  %3323 = vmatpush.msra.mxu3 %v884_v9  ;;  %3305 = vmatpush.msra.mxu2 %v812_v14 }
 0x493   :  { %v680_v16 = vld [vmem:[#allocation5 + $0x1198] sm:$0xff] }
 0x494   :  { %v744_v17 = vld [vmem:[#allocation5 + $0x1398] sm:$0xff]  ;;  %3324 = vmatpush.msra.mxu3 %v880_v15  ;;  %3266 = vmatpush.msra.mxu0 %v680_v16  ;;  %v4072_v15 = vpop.f32.mrf.mxu3  ;;  %v4074_v16 = vpop.f32.mrf.mxu1 }
 0x495   :  { %v808_v18 = vld [vmem:[#allocation5 + $0x1598] sm:$0xff]  ;;  %3286 = vmatpush.msra.mxu1 %v744_v17  ;;  %v3830_v17 = vld [vmem:[#allocation2 + $0x40] sm:$0xff] }
 0x496   :  { %v876_v19 = vld [vmem:[#allocation5 + $0x17b8] sm:$0xff]  ;;  %3306 = vmatpush.msra.mxu2 %v808_v18  ;;  %v3831_v18 = vld [vmem:[#allocation2 + $0x50] sm:$0xff] }
 0x497   :  { %v676_v20 = vld [vmem:[#allocation5 + $0x1178] sm:$0xff]  ;;  %3325 = vmatpush.msra.mxu3 %v876_v19 }
 0x498   :  { %v740_v21 = vld [vmem:[#allocation5 + $0x1378] sm:$0xff]  ;;  %3267 = vmatpush.msra.mxu0 %v676_v20 }
 0x499   :  { %v804_v22 = vld [vmem:[#allocation5 + $0x1578] sm:$0xff]  ;;  %3287 = vmatpush.msra.mxu1 %v740_v21 }
 0x49a   :  { %v872_v23 = vld [vmem:[#allocation5 + $0x1798] sm:$0xff]  ;;  %3307 = vmatpush.msra.mxu2 %v804_v22 }
 0x49b   :  { %v672_v25 = vld [vmem:[#allocation5 + $0x1158] sm:$0xff]  ;;  %3326 = vmatpush.msra.mxu3 %v872_v23  ;;  %v3832_v23 = vld [vmem:[#allocation2 + $0x48] sm:$0xff] }
 0x49c   :  { %v736_v26 = vld [vmem:[#allocation5 + $0x1358] sm:$0xff]  ;;  %3268 = vmatpush.msra.mxu0 %v672_v25 }
 0x49d   :  { %v800_v27 = vld [vmem:[#allocation5 + $0x1558] sm:$0xff]  ;;  %3288 = vmatpush.msra.mxu1 %v736_v26 }
 0x49e   :  { %v868_v29 = vld [vmem:[#allocation5 + $0x1778] sm:$0xff]  ;;  %3308 = vmatpush.msra.mxu2 %v800_v27  ;;  %v4076_v27 = vpop.f32.mrf.mxu2 }
 0x49f   :  { %v3828_v30 = vld [vmem:[#allocation2 + $0x38] sm:$0xff]  ;;  %3327 = vmatpush.msra.mxu3 %v868_v29 }
 0x4a0   :  { %3259 = vmatmul.f32.vlgmr.msrb.gmra.mxu3 %v3828_v30  ;;  %v668_v31 = vld [vmem:[#allocation5 + $0x1138] sm:$0xff] }
 0x4a1   :  { %v732_v32 = vld [vmem:[#allocation5 + $0x1338] sm:$0xff]  ;;  %3269 = vmatpush.msra.mxu0 %v668_v31 }
 0x4a2   :  { %v796_v33 = vld [vmem:[#allocation5 + $0x1538] sm:$0xff]  ;;  %3289 = vmatpush.msra.mxu1 %v732_v32  ;;  %v4078_v32 = vpop.f32.mrf.mxu0 }
 0x4a3   :  { %v864_v34 = vld [vmem:[#allocation5 + $0x1758] sm:$0xff]  ;;  %3309 = vmatpush.msra.mxu2 %v796_v33 }
 0x4a4   :  { %v664_v36 = vld [vmem:[#allocation5 + $0x1118] sm:$0xff]  ;;  %3328 = vmatpush.msra.mxu3 %v864_v34 }
 0x4a5   :  { %v728_v37 = vld [vmem:[#allocation5 + $0x1318] sm:$0xff]  ;;  %3270 = vmatpush.msra.mxu0 %v664_v36 }
 0x4a6   :  { %v792_v38 = vld [vmem:[#allocation5 + $0x1518] sm:$0xff]  ;;  %3290 = vmatpush.msra.mxu1 %v728_v37  ;;  %v4080_v37 = vpop.f32.mrf.mxu3 }
 0x4a7   :  { %v860_v39 = vld [vmem:[#allocation5 + $0x1738] sm:$0xff]  ;;  %3310 = vmatpush.msra.mxu2 %v792_v38 }
 0x4a8   :  { %v660_v40 = vld [vmem:[#allocation5 + $0x10f8] sm:$0xff]  ;;  %3329 = vmatpush.msra.mxu3 %v860_v39 }
 0x4a9   :  { %v724_v41 = vld [vmem:[#allocation5 + $0x12f8] sm:$0xff]  ;;  %3271 = vmatpush.msra.mxu0 %v660_v40 }
 0x4aa   :  { %v788_v42 = vld [vmem:[#allocation5 + $0x14f8] sm:$0xff]  ;;  %3291 = vmatpush.msra.mxu1 %v724_v41 }
 0x4ab   :  { %v856_v43 = vld [vmem:[#allocation5 + $0x1718] sm:$0xff]  ;;  %3311 = vmatpush.msra.mxu2 %v788_v42  ;;  %v4082_v42 = vpop.f32.mrf.mxu1 }
 0x4ac   :  { %v656_v44 = vld [vmem:[#allocation5 + $0x10d8] sm:$0xff]  ;;  %3330 = vmatpush.msra.mxu3 %v856_v43 }
 0x4ad   :  { %v720_v45 = vld [vmem:[#allocation5 + $0x12d8] sm:$0xff]  ;;  %3272 = vmatpush.msra.mxu0 %v656_v44 }
 0x4ae   :  { %v784_v46 = vld [vmem:[#allocation5 + $0x14d8] sm:$0xff]  ;;  %3292 = vmatpush.msra.mxu1 %v720_v45 }
 0x4af   :  { %v852_v47 = vld [vmem:[#allocation5 + $0x16f8] sm:$0xff]  ;;  %3312 = vmatpush.msra.mxu2 %v784_v46 }
 0x4b0   :  { %v652_v48 = vld [vmem:[#allocation5 + $0x10b8] sm:$0xff]  ;;  %3331 = vmatpush.msra.mxu3 %v852_v47 }
 0x4b1   :  { %v716_v49 = vld [vmem:[#allocation5 + $0x12b8] sm:$0xff]  ;;  %3273 = vmatpush.msra.mxu0 %v652_v48 }
 0x4b2   :  { %v780_v50 = vld [vmem:[#allocation5 + $0x14b8] sm:$0xff]  ;;  %3293 = vmatpush.msra.mxu1 %v716_v49 }
 0x4b3   :  { %v848_v51 = vld [vmem:[#allocation5 + $0x16d8] sm:$0xff]  ;;  %3313 = vmatpush.msra.mxu2 %v780_v50 }
 0x4b4   :  { %v648_v52 = vld [vmem:[#allocation5 + $0x1098] sm:$0xff]  ;;  %3332 = vmatpush.msra.mxu3 %v848_v51  ;;  %v4084_v51 = vpop.f32.mrf.mxu2 }
 0x4b5   :  { %v712_v53 = vld [vmem:[#allocation5 + $0x1298] sm:$0xff]  ;;  %3274 = vmatpush.msra.mxu0 %v648_v52  ;;  %v4086_v52 = vpop.f32.mrf.mxu0 }
 0x4b6   :  { %v776_v54 = vld [vmem:[#allocation5 + $0x1498] sm:$0xff]  ;;  %3294 = vmatpush.msra.mxu1 %v712_v53 }
 0x4b7   :  { %v844_v55 = vld [vmem:[#allocation5 + $0x16b8] sm:$0xff]  ;;  %3314 = vmatpush.msra.mxu2 %v776_v54 }
 0x4b8   :  { %v644_v56 = vld [vmem:[#allocation5 + $0x1078] sm:$0xff]  ;;  %3333 = vmatpush.msra.mxu3 %v844_v55 }
 0x4b9   :  { %v708_v57 = vld [vmem:[#allocation5 + $0x1278] sm:$0xff]  ;;  %3275 = vmatpush.msra.mxu0 %v644_v56 }
 0x4ba   :  { %v772_v58 = vld [vmem:[#allocation5 + $0x1478] sm:$0xff]  ;;  %3295 = vmatpush.msra.mxu1 %v708_v57 }
 0x4bb   :  { %v840_v59 = vld [vmem:[#allocation5 + $0x1698] sm:$0xff]  ;;  %3315 = vmatpush.msra.mxu2 %v772_v58 }
 0x4bc   :  { %v640_v60 = vld [vmem:[#allocation5 + $0x1058] sm:$0xff]  ;;  %3334 = vmatpush.msra.mxu3 %v840_v59 }
 0x4bd   :  { %v704_v61 = vld [vmem:[#allocation5 + $0x1258] sm:$0xff]  ;;  %3276 = vmatpush.msra.mxu0 %v640_v60 }
 0x4be   :  { %v768_v62 = vld [vmem:[#allocation5 + $0x1458] sm:$0xff]  ;;  %3296 = vmatpush.msra.mxu1 %v704_v61  ;;  %v4088_v61 = vpop.f32.mrf.mxu3 }
 0x4bf   :  { %v836_v63 = vld [vmem:[#allocation5 + $0x1678] sm:$0xff]  ;;  %3316 = vmatpush.msra.mxu2 %v768_v62  ;;  %v4090_v62 = vpop.f32.mrf.mxu1 }
 0x4c0   :  { %v636_v0 = vld [vmem:[#allocation5 + $0x1038] sm:$0xff]  ;;  %3335 = vmatpush.msra.mxu3 %v836_v63 }
 0x4c1   :  { %v700_v1 = vld [vmem:[#allocation5 + $0x1238] sm:$0xff]  ;;  %3277 = vmatpush.msra.mxu0 %v636_v0 }
 0x4c2   :  { %v764_v2 = vld [vmem:[#allocation5 + $0x1438] sm:$0xff]  ;;  %3297 = vmatpush.msra.mxu1 %v700_v1 }
 0x4c3   :  { %v832_v3 = vld [vmem:[#allocation5 + $0x1658] sm:$0xff]  ;;  %3317 = vmatpush.msra.mxu2 %v764_v2 }
 0x4c4   :  { %v632_v4 = vld [vmem:[#allocation5 + $0x1018] sm:$0xff]  ;;  %3336 = vmatpush.msra.mxu3 %v832_v3 }
 0x4c5   :  { %v696_v5 = vld [vmem:[#allocation5 + $0x1218] sm:$0xff]  ;;  %3278 = vmatpush.msra.mxu0 %v632_v4 }
 0x4c6   :  { %v760_v8 = vld [vmem:[#allocation5 + $0x1418] sm:$0xff]  ;;  %3298 = vmatpush.msra.mxu1 %v696_v5  ;;  %3279 = vmatmul.f32.vlgmr.msra.gmra.mxu0 %v3830_v17 }
 0x4c7   :  { %v828_v9 = vld [vmem:[#allocation5 + $0x1638] sm:$0xff]  ;;  %3318 = vmatpush.msra.mxu2 %v760_v8  ;;  %3299 = vmatmul.f32.vlgmr.msra.gmra.mxu1 %v3832_v23  ;;  %v4098_v23 = vpop.f32.mrf.mxu1 }
 0x4c8   :  { %v948_v11 = vld [vmem:[#allocation5 + $0x19f8] sm:$0xff]  ;;  %3337 = vmatpush.msra.mxu3 %v828_v9  ;;  %3319 = vmatmul.f32.vlgmr.msra.gmra.mxu2 %v3831_v18  ;;  %v4092_v9 = vpop.f32.mrf.mxu2 }
 0x4c9   :  { %v1012_v13 = vld [vmem:[#allocation5 + $0x1bf8] sm:$0xff]  ;;  %3343 = vmatpush.msrb.mxu0 %v948_v11  ;;  %v4094_v11 = vpop.f32.mrf.mxu0 }
 0x4ca   :  { %v1076_v12 = vld [vmem:[#allocation5 + $0x1df8] sm:$0xff]  ;;  %3363 = vmatpush.msrb.mxu1 %v1012_v13 }
 0x4cb   :  { %v824_v14 = vld [vmem:[#allocation5 + $0x1618] sm:$0xff]  ;;  %3383 = vmatpush.msrb.mxu2 %v1076_v12 }
 0x4cc   :  { %v944_v19 = vld [vmem:[#allocation5 + $0x19d8] sm:$0xff]  ;;  %3338 = vmatpush.msra.mxu3 %v824_v14 }
 0x4cd   :  { %v1008_v20 = vld [vmem:[#allocation5 + $0x1bd8] sm:$0xff]  ;;  %3344 = vmatpush.msrb.mxu0 %v944_v19 }
 0x4ce   :  { %v1072_v21 = vld [vmem:[#allocation5 + $0x1dd8] sm:$0xff]  ;;  %3364 = vmatpush.msrb.mxu1 %v1008_v20 }
 0x4cf   :  { %v1140_v22 = vld [vmem:[#allocation5 + $0x1ff8] sm:$0xff]  ;;  %3384 = vmatpush.msrb.mxu2 %v1072_v21 }
 0x4d0   :  { %v3833_v24 = vld [vmem:[#allocation2 + $0x58] sm:$0xff]  ;;  %3403 = vmatpush.msrb.mxu3 %v1140_v22  ;;  %v4096_v22 = vpop.f32.mrf.mxu3 }
 0x4d1   :  { %3339 = vmatmul.f32.vlgmr.msra.gmra.mxu3 %v3833_v24  ;;  %v940_v25 = vld [vmem:[#allocation5 + $0x19b8] sm:$0xff] }
 0x4d2   :  { %v1004_v26 = vld [vmem:[#allocation5 + $0x1bb8] sm:$0xff]  ;;  %3345 = vmatpush.msrb.mxu0 %v940_v25 }
 0x4d3   :  { %v1068_v28 = vld [vmem:[#allocation5 + $0x1db8] sm:$0xff]  ;;  %3365 = vmatpush.msrb.mxu1 %v1004_v26 }
 0x4d4   :  { %v1136_v29 = vld [vmem:[#allocation5 + $0x1fd8] sm:$0xff]  ;;  %3385 = vmatpush.msrb.mxu2 %v1068_v28 }
 0x4d5   :  { %v936_v30 = vld [vmem:[#allocation5 + $0x1998] sm:$0xff]  ;;  %3404 = vmatpush.msrb.mxu3 %v1136_v29 }
 0x4d6   :  { %v1000_v31 = vld [vmem:[#allocation5 + $0x1b98] sm:$0xff]  ;;  %3346 = vmatpush.msrb.mxu0 %v936_v30 }
 0x4d7   :  { %v1064_v33 = vld [vmem:[#allocation5 + $0x1d98] sm:$0xff]  ;;  %3366 = vmatpush.msrb.mxu1 %v1000_v31 }
 0x4d8   :  { %v1132_v34 = vld [vmem:[#allocation5 + $0x1fb8] sm:$0xff]  ;;  %3386 = vmatpush.msrb.mxu2 %v1064_v33 }
 0x4d9   :  { %v932_v35 = vld [vmem:[#allocation5 + $0x1978] sm:$0xff]  ;;  %3405 = vmatpush.msrb.mxu3 %v1132_v34  ;;  %v4100_v34 = vpop.f32.mrf.mxu2 }
 0x4da   :  { %v996_v36 = vld [vmem:[#allocation5 + $0x1b78] sm:$0xff]  ;;  %3347 = vmatpush.msrb.mxu0 %v932_v35  ;;  %v4102_v35 = vpop.f32.mrf.mxu0 }
 0x4db   :  { %v1060_v38 = vld [vmem:[#allocation5 + $0x1d78] sm:$0xff]  ;;  %3367 = vmatpush.msrb.mxu1 %v996_v36 }
 0x4dc   :  { %v1128_v39 = vld [vmem:[#allocation5 + $0x1f98] sm:$0xff]  ;;  %3387 = vmatpush.msrb.mxu2 %v1060_v38 }
 0x4dd   :  { %v928_v40 = vld [vmem:[#allocation5 + $0x1958] sm:$0xff]  ;;  %3406 = vmatpush.msrb.mxu3 %v1128_v39 }
 0x4de   :  { %v992_v41 = vld [vmem:[#allocation5 + $0x1b58] sm:$0xff]  ;;  %3348 = vmatpush.msrb.mxu0 %v928_v40 }
 0x4df   :  { %v1056_v43 = vld [vmem:[#allocation5 + $0x1d58] sm:$0xff]  ;;  %3368 = vmatpush.msrb.mxu1 %v992_v41 }
 0x4e0   :  { %v1124_v44 = vld [vmem:[#allocation5 + $0x1f78] sm:$0xff]  ;;  %3388 = vmatpush.msrb.mxu2 %v1056_v43 }
 0x4e1   :  { %v924_v45 = vld [vmem:[#allocation5 + $0x1938] sm:$0xff]  ;;  %3407 = vmatpush.msrb.mxu3 %v1124_v44  ;;  %v4104_v44 = vpop.f32.mrf.mxu3 }
 0x4e2   :  { %v988_v46 = vld [vmem:[#allocation5 + $0x1b38] sm:$0xff]  ;;  %3349 = vmatpush.msrb.mxu0 %v924_v45  ;;  %v4106_v45 = vpop.f32.mrf.mxu1 }
 0x4e3   :  { %v1052_v47 = vld [vmem:[#allocation5 + $0x1d38] sm:$0xff]  ;;  %3369 = vmatpush.msrb.mxu1 %v988_v46  ;;  %v3834_v46 = vld [vmem:[#allocation2 + $0x60] sm:$0xff] }
 0x4e4   :  { %v1120_v48 = vld [vmem:[#allocation5 + $0x1f58] sm:$0xff]  ;;  %3389 = vmatpush.msrb.mxu2 %v1052_v47  ;;  %v3835_v47 = vld [vmem:[#allocation2 + $0x70] sm:$0xff] }
 0x4e5   :  { %v920_v49 = vld [vmem:[#allocation5 + $0x1918] sm:$0xff]  ;;  %3408 = vmatpush.msrb.mxu3 %v1120_v48 }
 0x4e6   :  { %v984_v50 = vld [vmem:[#allocation5 + $0x1b18] sm:$0xff]  ;;  %3350 = vmatpush.msrb.mxu0 %v920_v49 }
 0x4e7   :  { %v1048_v53 = vld [vmem:[#allocation5 + $0x1d18] sm:$0xff]  ;;  %3370 = vmatpush.msrb.mxu1 %v984_v50 }
 0x4e8   :  { %v1116_v54 = vld [vmem:[#allocation5 + $0x1f38] sm:$0xff]  ;;  %3390 = vmatpush.msrb.mxu2 %v1048_v53 }
 0x4e9   :  { %v916_v55 = vld [vmem:[#allocation5 + $0x18f8] sm:$0xff]  ;;  %3409 = vmatpush.msrb.mxu3 %v1116_v54  ;;  %v3836_v54 = vld [vmem:[#allocation2 + $0x68] sm:$0xff] }
 0x4ea   :  { %v980_v56 = vld [vmem:[#allocation5 + $0x1af8] sm:$0xff]  ;;  %3351 = vmatpush.msrb.mxu0 %v916_v55 }
 0x4eb   :  { %v1044_v57 = vld [vmem:[#allocation5 + $0x1cf8] sm:$0xff]  ;;  %3371 = vmatpush.msrb.mxu1 %v980_v56 }
 0x4ec   :  { %v1112_v58 = vld [vmem:[#allocation5 + $0x1f18] sm:$0xff]  ;;  %3391 = vmatpush.msrb.mxu2 %v1044_v57 }
 0x4ed   :  { %v912_v59 = vld [vmem:[#allocation5 + $0x18d8] sm:$0xff]  ;;  %3410 = vmatpush.msrb.mxu3 %v1112_v58  ;;  %v4108_v58 = vpop.f32.mrf.mxu2 }
 0x4ee   :  { %v976_v60 = vld [vmem:[#allocation5 + $0x1ad8] sm:$0xff]  ;;  %3352 = vmatpush.msrb.mxu0 %v912_v59  ;;  %v4110_v59 = vpop.f32.mrf.mxu0 }
 0x4ef   :  { %v1040_v63 = vld [vmem:[#allocation5 + $0x1cd8] sm:$0xff]  ;;  %3372 = vmatpush.msrb.mxu1 %v976_v60 }
 0x4f0   :  { %v1108_v0 = vld [vmem:[#allocation5 + $0x1ef8] sm:$0xff]  ;;  %3392 = vmatpush.msrb.mxu2 %v1040_v63 }
 0x4f1   :  { %v908_v1 = vld [vmem:[#allocation5 + $0x18b8] sm:$0xff]  ;;  %3411 = vmatpush.msrb.mxu3 %v1108_v0 }
 0x4f2   :  { %v972_v2 = vld [vmem:[#allocation5 + $0x1ab8] sm:$0xff]  ;;  %3353 = vmatpush.msrb.mxu0 %v908_v1 }
 0x4f3   :  { %v1036_v3 = vld [vmem:[#allocation5 + $0x1cb8] sm:$0xff]  ;;  %3373 = vmatpush.msrb.mxu1 %v972_v2 }
 0x4f4   :  { %v1104_v4 = vld [vmem:[#allocation5 + $0x1ed8] sm:$0xff]  ;;  %3393 = vmatpush.msrb.mxu2 %v1036_v3 }
 0x4f5   :  { %v904_v5 = vld [vmem:[#allocation5 + $0x1898] sm:$0xff]  ;;  %3412 = vmatpush.msrb.mxu3 %v1104_v4 }
 0x4f6   :  { %v968_v8 = vld [vmem:[#allocation5 + $0x1a98] sm:$0xff]  ;;  %3354 = vmatpush.msrb.mxu0 %v904_v5 }
 0x4f7   :  { %v1032_v13 = vld [vmem:[#allocation5 + $0x1c98] sm:$0xff]  ;;  %3374 = vmatpush.msrb.mxu1 %v968_v8  ;;  %v4112_v8 = vpop.f32.mrf.mxu3 }
 0x4f8   :  { %v1100_v12 = vld [vmem:[#allocation5 + $0x1eb8] sm:$0xff]  ;;  %3394 = vmatpush.msrb.mxu2 %v1032_v13  ;;  %v4114_v13 = vpop.f32.mrf.mxu1 }
 0x4f9   :  { %v900_v14 = vld [vmem:[#allocation5 + $0x1878] sm:$0xff]  ;;  %3413 = vmatpush.msrb.mxu3 %v1100_v12 }
 0x4fa   :  { %v964_v17 = vld [vmem:[#allocation5 + $0x1a78] sm:$0xff]  ;;  %3355 = vmatpush.msrb.mxu0 %v900_v14 }
 0x4fb   :  { %v1028_v18 = vld [vmem:[#allocation5 + $0x1c78] sm:$0xff]  ;;  %3375 = vmatpush.msrb.mxu1 %v964_v17 }
 0x4fc   :  { %v1096_v19 = vld [vmem:[#allocation5 + $0x1e98] sm:$0xff]  ;;  %3395 = vmatpush.msrb.mxu2 %v1028_v18 }
 0x4fd   :  { %v896_v20 = vld [vmem:[#allocation5 + $0x1858] sm:$0xff]  ;;  %3414 = vmatpush.msrb.mxu3 %v1096_v19  ;;  %v4116_v19 = vld [vmem:[#allocation7] sm:$0xf] }
 0x4fe   :  { %v960_v21 = vld [vmem:[#allocation5 + $0x1a58] sm:$0xff]  ;;  %3356 = vmatpush.msrb.mxu0 %v896_v20  ;;  %v1656_v20 = vperm.slane %v4116_v19, 1 }
 0x4ff   :  { %v1024_v24 = vld [vmem:[#allocation5 + $0x1c58] sm:$0xff]  ;;  %3376 = vmatpush.msrb.mxu1 %v960_v21 }
 0x500   :  { %v1092_v25 = vld [vmem:[#allocation5 + $0x1e78] sm:$0xff]  ;;  %3396 = vmatpush.msrb.mxu2 %v1024_v24 }
 0x501   :  { %v892_v26 = vld [vmem:[#allocation5 + $0x1838] sm:$0xff]  ;;  %3415 = vmatpush.msrb.mxu3 %v1092_v25  ;;  %v1657_v25 = vperm.slane %v4116_v19, 2 }
 0x502   :  { %v956_v28 = vld [vmem:[#allocation5 + $0x1a38] sm:$0xff]  ;;  %3357 = vmatpush.msrb.mxu0 %v892_v26 }
 0x503   :  { %v1020_v29 = vld [vmem:[#allocation5 + $0x1c38] sm:$0xff]  ;;  %3377 = vmatpush.msrb.mxu1 %v956_v28 }
 0x504   :  { %v1088_v30 = vld [vmem:[#allocation5 + $0x1e58] sm:$0xff]  ;;  %3397 = vmatpush.msrb.mxu2 %v1020_v29  ;;  %v4120_v29 = vpop.f32.mrf.mxu2 }
 0x505   :  { %v888_v31 = vld [vmem:[#allocation5 + $0x1818] sm:$0xff]  ;;  %3416 = vmatpush.msrb.mxu3 %v1088_v30  ;;  %v2640_v30 = vpop.f32.mrf.mxu0 }
 0x506   :  { %v952_v33 = vld [vmem:[#allocation5 + $0x1a18] sm:$0xff]  ;;  %3358 = vmatpush.msrb.mxu0 %v888_v31 }
 0x507   :  { %v1016_v36 = vld [vmem:[#allocation5 + $0x1c18] sm:$0xff]  ;;  %3378 = vmatpush.msrb.mxu1 %v952_v33  ;;  %3359 = vmatmul.f32.vlgmr.msrb.gmra.mxu0 %v3834_v46 }
 0x508   :  { %v1084_v38 = vld [vmem:[#allocation5 + $0x1e38] sm:$0xff]  ;;  %3398 = vmatpush.msrb.mxu2 %v1016_v36  ;;  %3379 = vmatmul.f32.vlgmr.msrb.gmra.mxu1 %v3836_v54 }
 0x509   :  { %v1204_v39 = vld [vmem:[#allocation5 + $0x21f8] sm:$0xff]  ;;  %3417 = vmatpush.msrb.mxu3 %v1084_v38  ;;  %3399 = vmatmul.f32.vlgmr.msrb.gmra.mxu2 %v3835_v47 }
 0x50a   :  { %v1268_v40 = vld [vmem:[#allocation5 + $0x23f8] sm:$0xff]  ;;  %3423 = vmatpush.msra.mxu0 %v1204_v39  ;;  %v2161_v39 = vadd.f32 %v4070_v7, %v1656_v20 }
 0x50b   :  { %v1332_v41 = vld [vmem:[#allocation5 + $0x25f8] sm:$0xff]  ;;  %3443 = vmatpush.msra.mxu1 %v1268_v40 }
 0x50c   :  { %v1080_v43 = vld [vmem:[#allocation5 + $0x1e18] sm:$0xff]  ;;  %3463 = vmatpush.msra.mxu2 %v1332_v41 }
 0x50d   :  { %v1200_v48 = vld [vmem:[#allocation5 + $0x21d8] sm:$0xff]  ;;  %3418 = vmatpush.msrb.mxu3 %v1080_v43  ;;  %v2641_v43 = vadd.f32 %v2640_v30, %v1657_v25 }
 0x50e   :  { %v1264_v49 = vld [vmem:[#allocation5 + $0x23d8] sm:$0xff]  ;;  %3424 = vmatpush.msra.mxu0 %v1200_v48  ;;  %v4123_v48 = vpop.f32.mrf.mxu3 }
 0x50f   :  { %v1328_v50 = vld [vmem:[#allocation5 + $0x25d8] sm:$0xff]  ;;  %3444 = vmatpush.msra.mxu1 %v1264_v49  ;;  %v2660_v49 = vpop.f32.mrf.mxu1 }
 0x510   :  { %v1396_v53 = vld [vmem:[#allocation5 + $0x27f8] sm:$0xff]  ;;  %3464 = vmatpush.msra.mxu2 %v1328_v50 }
 0x511   :  { %v3837_v55 = vld [vmem:[#allocation2 + $0x78] sm:$0xff]  ;;  %3483 = vmatpush.msra.mxu3 %v1396_v53 }
 0x512   :  { %3419 = vmatmul.f32.vlgmr.msrb.gmra.mxu3 %v3837_v55  ;;  %v1196_v56 = vld [vmem:[#allocation5 + $0x21b8] sm:$0xff]  ;;  %v2181_v55 = vadd.f32 %v4074_v16, %v2161_v39  ;;  %v2720_v39 = vpop.f32.mrf.mxu0 }
 0x513   :  { %v1260_v57 = vld [vmem:[#allocation5 + $0x23b8] sm:$0xff]  ;;  %3425 = vmatpush.msra.mxu0 %v1196_v56 }
 0x514   :  { %v1324_v60 = vld [vmem:[#allocation5 + $0x25b8] sm:$0xff]  ;;  %3445 = vmatpush.msra.mxu1 %v1260_v57  ;;  %v2201_v16 = vadd.f32 %v4076_v27, %v2181_v55 }
 0x515   :  { %v1392_v63 = vld [vmem:[#allocation5 + $0x27d8] sm:$0xff]  ;;  %3465 = vmatpush.msra.mxu2 %v1324_v60  ;;  %v2661_v60 = vadd.f32 %v2660_v49, %v2641_v43 }
 0x516   :  { %v1192_v0 = vld [vmem:[#allocation5 + $0x2198] sm:$0xff]  ;;  %3484 = vmatpush.msra.mxu3 %v1392_v63  ;;  %v2221_v27 = vadd.f32 %v4080_v37, %v2201_v16 }
 0x517   :  { %v1256_v1 = vld [vmem:[#allocation5 + $0x2398] sm:$0xff]  ;;  %3426 = vmatpush.msra.mxu0 %v1192_v0 }
 0x518   :  { %v1320_v2 = vld [vmem:[#allocation5 + $0x2598] sm:$0xff]  ;;  %3446 = vmatpush.msra.mxu1 %v1256_v1  ;;  %v2680_v1 = vpop.f32.mrf.mxu2  ;;  %v2241_v37 = vadd.f32 %v4078_v32, %v2221_v27  ;;  %v3840_v32 = vld [vmem:[#allocation2 + $0x90] sm:$0xff] }
 0x519   :  { %v1388_v3 = vld [vmem:[#allocation5 + $0x27b8] sm:$0xff]  ;;  %3466 = vmatpush.msra.mxu2 %v1320_v2 }
 0x51a   :  { %v1188_v4 = vld [vmem:[#allocation5 + $0x2178] sm:$0xff]  ;;  %3485 = vmatpush.msra.mxu3 %v1388_v3 }
 0x51b   :  { %v1252_v5 = vld [vmem:[#allocation5 + $0x2378] sm:$0xff]  ;;  %3427 = vmatpush.msra.mxu0 %v1188_v4 }
 0x51c   :  { %v1316_v12 = vld [vmem:[#allocation5 + $0x2578] sm:$0xff]  ;;  %3447 = vmatpush.msra.mxu1 %v1252_v5 }
 0x51d   :  { %v1384_v14 = vld [vmem:[#allocation5 + $0x2798] sm:$0xff]  ;;  %3467 = vmatpush.msra.mxu2 %v1316_v12 }
 0x51e   :  { %v1184_v17 = vld [vmem:[#allocation5 + $0x2158] sm:$0xff]  ;;  %3486 = vmatpush.msra.mxu3 %v1384_v14 }
 0x51f   :  { %v1248_v18 = vld [vmem:[#allocation5 + $0x2358] sm:$0xff]  ;;  %3428 = vmatpush.msra.mxu0 %v1184_v17  ;;  %v2681_v17 = vadd.f32 %v2680_v1, %v2661_v60  ;;  %v3839_v60 = vld [vmem:[#allocation2 + $0x80] sm:$0xff] }
 0x520   :  { %v1312_v21 = vld [vmem:[#allocation5 + $0x2558] sm:$0xff]  ;;  %3448 = vmatpush.msra.mxu1 %v1248_v18 }
 0x521   :  { %v1380_v24 = vld [vmem:[#allocation5 + $0x2778] sm:$0xff]  ;;  %3468 = vmatpush.msra.mxu2 %v1312_v21  ;;  %v2700_v21 = vpop.f32.mrf.mxu3 }
 0x522   :  { %v1180_v26 = vld [vmem:[#allocation5 + $0x2138] sm:$0xff]  ;;  %3487 = vmatpush.msra.mxu3 %v1380_v24 }
 0x523   :  { %v1244_v28 = vld [vmem:[#allocation5 + $0x2338] sm:$0xff]  ;;  %3429 = vmatpush.msra.mxu0 %v1180_v26 }
 0x524   :  { %v1308_v31 = vld [vmem:[#allocation5 + $0x2538] sm:$0xff]  ;;  %3449 = vmatpush.msra.mxu1 %v1244_v28 }
 0x525   :  { %v1376_v33 = vld [vmem:[#allocation5 + $0x2758] sm:$0xff]  ;;  %3469 = vmatpush.msra.mxu2 %v1308_v31 }
 0x526   :  { %v1176_v36 = vld [vmem:[#allocation5 + $0x2118] sm:$0xff]  ;;  %3488 = vmatpush.msra.mxu3 %v1376_v33  ;;  %v2701_v33 = vadd.f32 %v2700_v21, %v2681_v17 }
 0x527   :  { %v1240_v38 = vld [vmem:[#allocation5 + $0x2318] sm:$0xff]  ;;  %3430 = vmatpush.msra.mxu0 %v1176_v36 }
 0x528   :  { %v1304_v40 = vld [vmem:[#allocation5 + $0x2518] sm:$0xff]  ;;  %3450 = vmatpush.msra.mxu1 %v1240_v38 }
 0x529   :  { %v1372_v41 = vld [vmem:[#allocation5 + $0x2738] sm:$0xff]  ;;  %3470 = vmatpush.msra.mxu2 %v1304_v40 }
 0x52a   :  { %v1172_v46 = vld [vmem:[#allocation5 + $0x20f8] sm:$0xff]  ;;  %3489 = vmatpush.msra.mxu3 %v1372_v41 }
 0x52b   :  { %v1236_v47 = vld [vmem:[#allocation5 + $0x22f8] sm:$0xff]  ;;  %3431 = vmatpush.msra.mxu0 %v1172_v46 }
 0x52c   :  { %v1300_v50 = vld [vmem:[#allocation5 + $0x24f8] sm:$0xff]  ;;  %3451 = vmatpush.msra.mxu1 %v1236_v47 }
 0x52d   :  { %v1368_v53 = vld [vmem:[#allocation5 + $0x2718] sm:$0xff]  ;;  %3471 = vmatpush.msra.mxu2 %v1300_v50  ;;  %v2721_v50 = vadd.f32 %v2720_v39, %v2701_v33 }
 0x52e   :  { %v1168_v54 = vld [vmem:[#allocation5 + $0x20d8] sm:$0xff]  ;;  %3490 = vmatpush.msra.mxu3 %v1368_v53  ;;  %v2740_v53 = vpop.f32.mrf.mxu1 }
 0x52f   :  { %v1232_v7 = vld [vmem:[#allocation5 + $0x22d8] sm:$0xff]  ;;  %3432 = vmatpush.msra.mxu0 %v1168_v54 }
 0x530   :  { %v1296_v56 = vld [vmem:[#allocation5 + $0x24d8] sm:$0xff]  ;;  %3452 = vmatpush.msra.mxu1 %v1232_v7 }
 0x531   :  { %v1364_v57 = vld [vmem:[#allocation5 + $0x26f8] sm:$0xff]  ;;  %3472 = vmatpush.msra.mxu2 %v1296_v56 }
 0x532   :  { %v1164_v63 = vld [vmem:[#allocation5 + $0x20b8] sm:$0xff]  ;;  %3491 = vmatpush.msra.mxu3 %v1364_v57  ;;  %v2261_v57 = vadd.f32 %v4082_v42, %v2241_v37 }
 0x533   :  { %v1228_v0 = vld [vmem:[#allocation5 + $0x22b8] sm:$0xff]  ;;  %3433 = vmatpush.msra.mxu0 %v1164_v63  ;;  %v2741_v63 = vadd.f32 %v2740_v53, %v2721_v50 }
 0x534   :  { %v1292_v2 = vld [vmem:[#allocation5 + $0x24b8] sm:$0xff]  ;;  %3453 = vmatpush.msra.mxu1 %v1228_v0 }
 0x535   :  { %v1360_v3 = vld [vmem:[#allocation5 + $0x26d8] sm:$0xff]  ;;  %3473 = vmatpush.msra.mxu2 %v1292_v2  ;;  %v2760_v2 = vpop.f32.mrf.mxu2 }
 0x536   :  { %v1160_v4 = vld [vmem:[#allocation5 + $0x2098] sm:$0xff]  ;;  %3492 = vmatpush.msra.mxu3 %v1360_v3 }
 0x537   :  { %v1224_v5 = vld [vmem:[#allocation5 + $0x2298] sm:$0xff]  ;;  %3434 = vmatpush.msra.mxu0 %v1160_v4 }
 0x538   :  { %v1288_v12 = vld [vmem:[#allocation5 + $0x2498] sm:$0xff]  ;;  %3454 = vmatpush.msra.mxu1 %v1224_v5  ;;  %v3841_v5 = vld [vmem:[#allocation2 + $0x88] sm:$0xff] }
 0x539   :  { %v1356_v14 = vld [vmem:[#allocation5 + $0x26b8] sm:$0xff]  ;;  %3474 = vmatpush.msra.mxu2 %v1288_v12 }
 0x53a   :  { %v1156_v18 = vld [vmem:[#allocation5 + $0x2078] sm:$0xff]  ;;  %3493 = vmatpush.msra.mxu3 %v1356_v14  ;;  %v2281_v14 = vadd.f32 %v4084_v51, %v2261_v57 }
 0x53b   :  { %v1220_v20 = vld [vmem:[#allocation5 + $0x2278] sm:$0xff]  ;;  %3435 = vmatpush.msra.mxu0 %v1156_v18 }
 0x53c   :  { %v1284_v24 = vld [vmem:[#allocation5 + $0x2478] sm:$0xff]  ;;  %3455 = vmatpush.msra.mxu1 %v1220_v20  ;;  %v2761_v20 = vadd.f32 %v2760_v2, %v2741_v63  ;;  %v2301_v51 = vadd.f32 %v4088_v61, %v2281_v14 }
 0x53d   :  { %v1352_v25 = vld [vmem:[#allocation5 + $0x2698] sm:$0xff]  ;;  %3475 = vmatpush.msra.mxu2 %v1284_v24 }
 0x53e   :  { %v1152_v26 = vld [vmem:[#allocation5 + $0x2058] sm:$0xff]  ;;  %3494 = vmatpush.msra.mxu3 %v1352_v25  ;;  %v2780_v25 = vpop.f32.mrf.mxu3 }
 0x53f   :  { %v1216_v28 = vld [vmem:[#allocation5 + $0x2258] sm:$0xff]  ;;  %3436 = vmatpush.msra.mxu0 %v1152_v26 }
 0x540   :  { %v1280_v30 = vld [vmem:[#allocation5 + $0x2458] sm:$0xff]  ;;  %3456 = vmatpush.msra.mxu1 %v1216_v28 }
 0x541   :  { %v1348_v31 = vld [vmem:[#allocation5 + $0x2678] sm:$0xff]  ;;  %3476 = vmatpush.msra.mxu2 %v1280_v30 }
 0x542   :  { %v1148_v36 = vld [vmem:[#allocation5 + $0x2038] sm:$0xff]  ;;  %3495 = vmatpush.msra.mxu3 %v1348_v31  ;;  %v2800_v31 = vpop.f32.mrf.mxu0 }
 0x543   :  { %v1212_v38 = vld [vmem:[#allocation5 + $0x2238] sm:$0xff]  ;;  %3437 = vmatpush.msra.mxu0 %v1148_v36 }
 0x544   :  { %v1276_v40 = vld [vmem:[#allocation5 + $0x2438] sm:$0xff]  ;;  %3457 = vmatpush.msra.mxu1 %v1212_v38  ;;  %v2781_v38 = vadd.f32 %v2780_v25, %v2761_v20 }
 0x545   :  { %v1344_v41 = vld [vmem:[#allocation5 + $0x2658] sm:$0xff]  ;;  %3477 = vmatpush.msra.mxu2 %v1276_v40 }
 0x546   :  { %v1144_v43 = vld [vmem:[#allocation5 + $0x2018] sm:$0xff]  ;;  %3496 = vmatpush.msra.mxu3 %v1344_v41  ;;  %v2321_v41 = vadd.f32 %v4086_v52, %v2301_v51  ;;  %v2801_v37 = vadd.f32 %v2800_v31, %v2781_v38 }
 0x547   :  { %v1208_v46 = vld [vmem:[#allocation5 + $0x2218] sm:$0xff]  ;;  %3438 = vmatpush.msra.mxu0 %v1144_v43 }
 0x548   :  { %v1272_v47 = vld [vmem:[#allocation5 + $0x2418] sm:$0xff]  ;;  %3458 = vmatpush.msra.mxu1 %v1208_v46  ;;  %3439 = vmatmul.f32.vlgmr.msra.gmra.mxu0 %v3839_v60  ;;  %v2341_v52 = vadd.f32 %v4090_v62, %v2321_v41 }
 0x549   :  { %v1340_v49 = vld [vmem:[#allocation5 + $0x2638] sm:$0xff]  ;;  %3478 = vmatpush.msra.mxu2 %v1272_v47  ;;  %3459 = vmatmul.f32.vlgmr.msra.gmra.mxu1 %v3841_v5  ;;  %v2860_v5 = vpop.f32.mrf.mxu3 }
 0x54a   :  { %v1460_v54 = vld [vmem:[#allocation5 + $0x29f8] sm:$0xff]  ;;  %3497 = vmatpush.msra.mxu3 %v1340_v49  ;;  %3479 = vmatmul.f32.vlgmr.msra.gmra.mxu2 %v3840_v32  ;;  %v2820_v49 = vpop.f32.mrf.mxu1 }
 0x54b   :  { %v1524_v7 = vld [vmem:[#allocation5 + $0x2bf8] sm:$0xff]  ;;  %3503 = vmatpush.msrb.mxu0 %v1460_v54  ;;  %v2821_v60 = vadd.f32 %v2820_v49, %v2801_v37 }
 0x54c   :  { %v1588_v55 = vld [vmem:[#allocation5 + $0x2df8] sm:$0xff]  ;;  %3523 = vmatpush.msrb.mxu1 %v1524_v7 }
 0x54d   :  { %v1336_v56 = vld [vmem:[#allocation5 + $0x2618] sm:$0xff]  ;;  %3543 = vmatpush.msrb.mxu2 %v1588_v55  ;;  %v2840_v55 = vpop.f32.mrf.mxu2 }
 0x54e   :  { %v1456_v0 = vld [vmem:[#allocation5 + $0x29d8] sm:$0xff]  ;;  %3498 = vmatpush.msra.mxu3 %v1336_v56 }
 0x54f   :  { %v1520_v1 = vld [vmem:[#allocation5 + $0x2bd8] sm:$0xff]  ;;  %3504 = vmatpush.msrb.mxu0 %v1456_v0  ;;  %v2361_v0 = vadd.f32 %v4092_v9, %v2341_v52 }
 0x550   :  { %v1584_v3 = vld [vmem:[#allocation5 + $0x2dd8] sm:$0xff]  ;;  %3524 = vmatpush.msrb.mxu1 %v1520_v1 }
 0x551   :  { %v1652_v4 = vld [vmem:[#allocation5 + $0x2ff8] sm:$0xff]  ;;  %3544 = vmatpush.msrb.mxu2 %v1584_v3  ;;  %v2841_v3 = vadd.f32 %v2840_v55, %v2821_v60  ;;  %v2381_v9 = vadd.f32 %v4096_v22, %v2361_v0 }
 0x552   :  { %v3842_v16 = vld [vmem:[#allocation2 + $0x98] sm:$0xff]  ;;  %3563 = vmatpush.msrb.mxu3 %v1652_v4  ;;  %v2900_v31 = vpop.f32.mrf.mxu1 }
 0x553   :  { %3499 = vmatmul.f32.vlgmr.msra.gmra.mxu3 %v3842_v16  ;;  %v1452_v12 = vld [vmem:[#allocation5 + $0x29b8] sm:$0xff] }
 0x554   :  { %v1516_v42 = vld [vmem:[#allocation5 + $0x2bb8] sm:$0xff]  ;;  %3505 = vmatpush.msrb.mxu0 %v1452_v12 }
 0x555   :  { %v1580_v17 = vld [vmem:[#allocation5 + $0x2db8] sm:$0xff]  ;;  %3525 = vmatpush.msrb.mxu1 %v1516_v42 }
 0x556   :  { %v1648_v18 = vld [vmem:[#allocation5 + $0x2fd8] sm:$0xff]  ;;  %3545 = vmatpush.msrb.mxu2 %v1580_v17  ;;  %v2880_v17 = vpop.f32.mrf.mxu0 }
 0x557   :  { %v1448_v21 = vld [vmem:[#allocation5 + $0x2998] sm:$0xff]  ;;  %3564 = vmatpush.msrb.mxu3 %v1648_v18 }
 0x558   :  { %v1512_v24 = vld [vmem:[#allocation5 + $0x2b98] sm:$0xff]  ;;  %3506 = vmatpush.msrb.mxu0 %v1448_v21  ;;  %v2861_v21 = vadd.f32 %v2860_v5, %v2841_v3  ;;  %v3844_v3 = vld [vmem:[#allocation2 + $0xb0] sm:$0xff] }
 0x559   :  { %v1576_v26 = vld [vmem:[#allocation5 + $0x2d98] sm:$0xff]  ;;  %3526 = vmatpush.msrb.mxu1 %v1512_v24 }
 0x55a   :  { %v1644_v28 = vld [vmem:[#allocation5 + $0x2fb8] sm:$0xff]  ;;  %3546 = vmatpush.msrb.mxu2 %v1576_v26  ;;  %v2401_v26 = vadd.f32 %v4094_v11, %v2381_v9  ;;  %v2980_v5 = vpop.f32.mrf.mxu1  ;;  %v3616_v9 = vld [vmem:[#allocation8 + $0xe8] sm:$0xff] }
 0x55b   :  { %v1444_v27 = vld [vmem:[#allocation5 + $0x2978] sm:$0xff]  ;;  %3565 = vmatpush.msrb.mxu3 %v1644_v28 }
 0x55c   :  { %v1508_v30 = vld [vmem:[#allocation5 + $0x2b78] sm:$0xff]  ;;  %3507 = vmatpush.msrb.mxu0 %v1444_v27  ;;  %v2421_v11 = vadd.f32 %v4098_v23, %v2401_v26  ;;  %v3631_v26 = vld [vmem:[#allocation8 + $0x160] sm:$0xff] }
 0x55d   :  { %v1572_v33 = vld [vmem:[#allocation5 + $0x2d78] sm:$0xff]  ;;  %3527 = vmatpush.msrb.mxu1 %v1508_v30  ;;  %v2881_v30 = vadd.f32 %v2880_v17, %v2861_v21  ;;  %v3599_v21 = vld [vmem:[#allocation8 + $0x60] sm:$0xff] }
 0x55e   :  { %v1640_v36 = vld [vmem:[#allocation5 + $0x2f98] sm:$0xff]  ;;  %3547 = vmatpush.msrb.mxu2 %v1572_v33 }
 0x55f   :  { %v1440_v39 = vld [vmem:[#allocation5 + $0x2958] sm:$0xff]  ;;  %3566 = vmatpush.msrb.mxu3 %v1640_v36 }
 0x560   :  { %v1504_v40 = vld [vmem:[#allocation5 + $0x2b58] sm:$0xff]  ;;  %3508 = vmatpush.msrb.mxu0 %v1440_v39 }
 0x561   :  { %v1568_v43 = vld [vmem:[#allocation5 + $0x2d58] sm:$0xff]  ;;  %3528 = vmatpush.msrb.mxu1 %v1504_v40  ;;  %v2920_v40 = vpop.f32.mrf.mxu2 }
 0x562   :  { %v1636_v46 = vld [vmem:[#allocation5 + $0x2f78] sm:$0xff]  ;;  %3548 = vmatpush.msrb.mxu2 %v1568_v43 }
 0x563   :  { %v1436_v61 = vld [vmem:[#allocation5 + $0x2938] sm:$0xff]  ;;  %3567 = vmatpush.msrb.mxu3 %v1636_v46  ;;  %v2901_v46 = vadd.f32 %v2900_v31, %v2881_v30 }
 0x564   :  { %v1500_v47 = vld [vmem:[#allocation5 + $0x2b38] sm:$0xff]  ;;  %3509 = vmatpush.msrb.mxu0 %v1436_v61 }
 0x565   :  { %v1564_v50 = vld [vmem:[#allocation5 + $0x2d38] sm:$0xff]  ;;  %3529 = vmatpush.msrb.mxu1 %v1500_v47  ;;  %v2441_v47 = vadd.f32 %v4100_v34, %v2421_v11  ;;  %v3612_v11 = vld [vmem:[#allocation8 + $0xc8] sm:$0xff] }
 0x566   :  { %v1632_v53 = vld [vmem:[#allocation5 + $0x2f58] sm:$0xff]  ;;  %3549 = vmatpush.msrb.mxu2 %v1564_v50 }
 0x567   :  { %v1432_v54 = vld [vmem:[#allocation5 + $0x2918] sm:$0xff]  ;;  %3568 = vmatpush.msrb.mxu3 %v1632_v53  ;;  %v2921_v53 = vadd.f32 %v2920_v40, %v2901_v46  ;;  %v3595_v46 = vld [vmem:[#allocation8 + $0x40] sm:$0xff] }
 0x568   :  { %v1496_v7 = vld [vmem:[#allocation5 + $0x2b18] sm:$0xff]  ;;  %3510 = vmatpush.msrb.mxu0 %v1432_v54 }
 0x569   :  { %v1560_v56 = vld [vmem:[#allocation5 + $0x2d18] sm:$0xff]  ;;  %3530 = vmatpush.msrb.mxu1 %v1496_v7  ;;  %v2940_v7 = vpop.f32.mrf.mxu3  ;;  %v3000_v17 = vpop.f32.mrf.mxu2 }
 0x56a   :  { %v1628_v57 = vld [vmem:[#allocation5 + $0x2f38] sm:$0xff]  ;;  %3550 = vmatpush.msrb.mxu2 %v1560_v56  ;;  %v2461_v56 = vadd.f32 %v4104_v44, %v2441_v47 }
 0x56b   :  { %v1428_v32 = vld [vmem:[#allocation5 + $0x28f8] sm:$0xff]  ;;  %3569 = vmatpush.msrb.mxu3 %v1628_v57  ;;  %v2960_v57 = vpop.f32.mrf.mxu0 }
 0x56c   :  { %v1492_v63 = vld [vmem:[#allocation5 + $0x2af8] sm:$0xff]  ;;  %3511 = vmatpush.msrb.mxu0 %v1428_v32  ;;  %v2941_v32 = vadd.f32 %v2940_v7, %v2921_v53 }
 0x56d   :  { %v1556_v1 = vld [vmem:[#allocation5 + $0x2cf8] sm:$0xff]  ;;  %3531 = vmatpush.msrb.mxu1 %v1492_v63 }
 0x56e   :  { %v1624_v2 = vld [vmem:[#allocation5 + $0x2f18] sm:$0xff]  ;;  %3551 = vmatpush.msrb.mxu2 %v1556_v1  ;;  %v2481_v1 = vadd.f32 %v4102_v35, %v2461_v56 }
 0x56f   :  { %v1424_v62 = vld [vmem:[#allocation5 + $0x28d8] sm:$0xff]  ;;  %3570 = vmatpush.msrb.mxu3 %v1624_v2  ;;  %v3843_v2 = vld [vmem:[#allocation2 + $0xa0] sm:$0xff] }
 0x570   :  { %v1488_v4 = vld [vmem:[#allocation5 + $0x2ad8] sm:$0xff]  ;;  %3512 = vmatpush.msrb.mxu0 %v1424_v62  ;;  %v2961_v62 = vadd.f32 %v2960_v57, %v2941_v32  ;;  %v2501_v35 = vadd.f32 %v4106_v45, %v2481_v1  ;;  %v3624_v32 = vld [vmem:[#allocation8 + $0x128] sm:$0xff] }
 0x571   :  { %v1552_v16 = vld [vmem:[#allocation5 + $0x2cd8] sm:$0xff]  ;;  %3532 = vmatpush.msrb.mxu1 %v1488_v4  ;;  %v3080_v53 = vpop.f32.mrf.mxu2 }
 0x572   :  { %v1620_v12 = vld [vmem:[#allocation5 + $0x2ef8] sm:$0xff]  ;;  %3552 = vmatpush.msrb.mxu2 %v1552_v16 }
 0x573   :  { %v1420_v42 = vld [vmem:[#allocation5 + $0x28b8] sm:$0xff]  ;;  %3571 = vmatpush.msrb.mxu3 %v1620_v12  ;;  %v3845_v12 = vld [vmem:[#allocation2 + $0xa8] sm:$0xff] }
 0x574   :  { %v1484_v14 = vld [vmem:[#allocation5 + $0x2ab8] sm:$0xff]  ;;  %3513 = vmatpush.msrb.mxu0 %v1420_v42 }
 0x575   :  { %v1548_v18 = vld [vmem:[#allocation5 + $0x2cb8] sm:$0xff]  ;;  %3533 = vmatpush.msrb.mxu1 %v1484_v14  ;;  %v3600_v14 = vld [vmem:[#allocation8 + $0x68] sm:$0xff] }
 0x576   :  { %v1616_v20 = vld [vmem:[#allocation5 + $0x2ed8] sm:$0xff]  ;;  %3553 = vmatpush.msrb.mxu2 %v1548_v18  ;;  %v3632_v18 = vld [vmem:[#allocation8 + $0x168] sm:$0xff] }
 0x577   :  { %v1416_v24 = vld [vmem:[#allocation5 + $0x2898] sm:$0xff]  ;;  %3572 = vmatpush.msrb.mxu3 %v1616_v20  ;;  %v2981_v20 = vadd.f32 %v2980_v5, %v2961_v62  ;;  %v3604_v5 = vld [vmem:[#allocation8 + $0x88] sm:$0xff] }
 0x578   :  { %v1480_v25 = vld [vmem:[#allocation5 + $0x2a98] sm:$0xff]  ;;  %3514 = vmatpush.msrb.mxu0 %v1416_v24  ;;  %v3615_v24 = vld [vmem:[#allocation8 + $0xe0] sm:$0xff] }
 0x579   :  { %v1544_v28 = vld [vmem:[#allocation5 + $0x2c98] sm:$0xff]  ;;  %3534 = vmatpush.msrb.mxu1 %v1480_v25  ;;  %v2521_v25 = vadd.f32 %v4108_v58, %v2501_v35 }
 0x57a   :  { %v1612_v27 = vld [vmem:[#allocation5 + $0x2eb8] sm:$0xff]  ;;  %3554 = vmatpush.msrb.mxu2 %v1544_v28  ;;  %v3001_v28 = vadd.f32 %v3000_v17, %v2981_v20 }
 0x57b   :  { %v1412_v22 = vld [vmem:[#allocation5 + $0x2878] sm:$0xff]  ;;  %3573 = vmatpush.msrb.mxu3 %v1612_v27 }
 0x57c   :  { %v1476_v51 = vld [vmem:[#allocation5 + $0x2a78] sm:$0xff]  ;;  %3515 = vmatpush.msrb.mxu0 %v1412_v22  ;;  %v3020_v22 = vpop.f32.mrf.mxu3 }
 0x57d   :  { %v1540_v33 = vld [vmem:[#allocation5 + $0x2c78] sm:$0xff]  ;;  %3535 = vmatpush.msrb.mxu1 %v1476_v51 }
 0x57e   :  { %v1608_v36 = vld [vmem:[#allocation5 + $0x2e98] sm:$0xff]  ;;  %3555 = vmatpush.msrb.mxu2 %v1540_v33  ;;  %v2541_v33 = vadd.f32 %v4112_v8, %v2521_v25  ;;  %v3627_v8 = vld [vmem:[#allocation8 + $0x140] sm:$0xff] }
 0x57f   :  { %v1408_v38 = vld [vmem:[#allocation5 + $0x2858] sm:$0xff]  ;;  %3574 = vmatpush.msrb.mxu3 %v1608_v36  ;;  %v3040_v36 = vpop.f32.mrf.mxu0 }
 0x580   :  { %v1472_v39 = vld [vmem:[#allocation5 + $0x2a58] sm:$0xff]  ;;  %3516 = vmatpush.msrb.mxu0 %v1408_v38  ;;  %v3021_v38 = vadd.f32 %v3020_v22, %v3001_v28  ;;  %v2561_v40 = vadd.f32 %v4110_v59, %v2541_v33  ;;  %v3647_v33 = vld [vmem:[#allocation8 + $0x1e0] sm:$0xff] }
 0x581   :  { %v1536_v41 = vld [vmem:[#allocation5 + $0x2c58] sm:$0xff]  ;;  %3536 = vmatpush.msrb.mxu1 %v1472_v39  ;;  %v3596_v39 = vld [vmem:[#allocation8 + $0x48] sm:$0xff] }
 0x582   :  { %v1604_v43 = vld [vmem:[#allocation5 + $0x2e78] sm:$0xff]  ;;  %3556 = vmatpush.msrb.mxu2 %v1536_v41  ;;  %v3628_v41 = vld [vmem:[#allocation8 + $0x148] sm:$0xff] }
 0x583   :  { %v1404_v37 = vld [vmem:[#allocation5 + $0x2838] sm:$0xff]  ;;  %3575 = vmatpush.msrb.mxu3 %v1604_v43  ;;  %v3041_v43 = vadd.f32 %v3040_v36, %v3021_v38 }
 0x584   :  { %v1468_v61 = vld [vmem:[#allocation5 + $0x2a38] sm:$0xff]  ;;  %3517 = vmatpush.msrb.mxu0 %v1404_v37  ;;  %v3611_v37 = vld [vmem:[#allocation8 + $0xc0] sm:$0xff] }
 0x585   :  { %v1532_v49 = vld [vmem:[#allocation5 + $0x2c38] sm:$0xff]  ;;  %3537 = vmatpush.msrb.mxu1 %v1468_v61  ;;  %v3060_v61 = vpop.f32.mrf.mxu1 }
 0x586   :  { %v1600_v50 = vld [vmem:[#allocation5 + $0x2e58] sm:$0xff]  ;;  %3557 = vmatpush.msrb.mxu2 %v1532_v49 }
 0x587   :  { %v1400_v23 = vld [vmem:[#allocation5 + $0x2818] sm:$0xff]  ;;  %3576 = vmatpush.msrb.mxu3 %v1600_v50  ;;  %v2581_v50 = vadd.f32 %v4114_v13, %v2561_v40  ;;  %v3608_v13 = vld [vmem:[#allocation8 + $0xa8] sm:$0xff]  ;;  %v3120_v20 = vpop.f32.mrf.mxu0 }
 0x588   :  { %v1464_v54 = vld [vmem:[#allocation5 + $0x2a18] sm:$0xff]  ;;  %3518 = vmatpush.msrb.mxu0 %v1400_v23  ;;  %v2121_v23 = vadd.f32 %v4068_v6, %v4066_v10  ;;  %v3591_v10 = vld [vmem:[#allocation8 + $0x20] sm:$0xff] }
 0x589   :  { %v1528_v52 = vld [vmem:[#allocation5 + $0x2c18] sm:$0xff]  ;;  %3538 = vmatpush.msrb.mxu1 %v1464_v54  ;;  %3519 = vmatmul.f32.vlgmr.msrb.gmra.mxu0 %v3843_v2  ;;  %v3061_v54 = vadd.f32 %v3060_v61, %v3041_v43  ;;  %v3607_v6 = vld [vmem:[#allocation8 + $0xa0] sm:$0xff] }
 0x58a   :  { %v1596_v55 = vld [vmem:[#allocation5 + $0x2e38] sm:$0xff]  ;;  %3558 = vmatpush.msrb.mxu2 %v1528_v52  ;;  %3539 = vmatmul.f32.vlgmr.msrb.gmra.mxu1 %v3845_v12  ;;  %v3587_v12 = vld [vmem:[#allocation8] sm:$0xff] }
 0x58b   :  { %v3602_v34 = vld [vmem:[#allocation8 + $0x78] sm:$0xff]  ;;  %3577 = vmatpush.msrb.mxu3 %v1596_v55  ;;  %3559 = vmatmul.f32.vlgmr.msrb.gmra.mxu2 %v3844_v3  ;;  %v3601_v44 = vld [vmem:[#allocation8 + $0x70] sm:$0xff]  ;;  %v2601_v55 = vadd.f32 %v4120_v29, %v2581_v50  ;;  %v3081_v57 = vadd.f32 %v3080_v53, %v3061_v54  ;;  %v3623_v29 = vld [vmem:[#allocation8 + $0x120] sm:$0xff] }
 0x58c   :  { %v3618_v60 = vld [vmem:[#allocation8 + $0xf8] sm:$0xff]  ;;  %3655 = vmatpush.msra.mxu0 %v3602_v34  ;;  %v3617_v4 = vld [vmem:[#allocation8 + $0xf0] sm:$0xff]  ;;  %v3592_v34 = vld [vmem:[#allocation8 + $0x28] sm:$0xff] }
 0x58d   :  { %v3634_v63 = vld [vmem:[#allocation8 + $0x178] sm:$0xff]  ;;  %3675 = vmatpush.msra.mxu1 %v3618_v60  ;;  %v3633_v16 = vld [vmem:[#allocation8 + $0x170] sm:$0xff]  ;;  %v3100_v60 = vpop.f32.mrf.mxu3  ;;  %v3643_v50 = vld [vmem:[#allocation8 + $0x1c0] sm:$0xff] }
 0x58e   :  { %v1592_v0 = vld [vmem:[#allocation5 + $0x2e18] sm:$0xff]  ;;  %3695 = vmatpush.msra.mxu2 %v3634_v63  ;;  %3656 = vmatpush.msra.mxu0 %v3601_v44  ;;  %v2141_v63 = vadd.f32 %v4072_v15, %v2121_v23  ;;  %v3101_v1 = vadd.f32 %v3100_v60, %v3081_v57 }
 0x58f   :  { %3578 = vmatpush.msrb.mxu3 %v1592_v0  ;;  %v3846_v42 = vld [vmem:[#allocation2 + $0xb8] sm:$0xff]  ;;  %3676 = vmatpush.msra.mxu1 %v3617_v4  ;;  %v2621_v0 = vadd.f32 %v4123_v48, %v2601_v55  ;;  %v3588_v48 = vld [vmem:[#allocation8 + $0x8] sm:$0xff] }
 0x590   :  { %3579 = vmatmul.f32.vlgmr.msrb.gmra.mxu3 %v3846_v42  ;;  %3696 = vmatpush.msra.mxu2 %v3633_v16  ;;  %v3598_v27 = vld [vmem:[#allocation8 + $0x58] sm:$0xff]  ;;  %v3597_v51 = vld [vmem:[#allocation8 + $0x50] sm:$0xff]  ;;  %3766 = vtanh.f32 %v2141_v63  ;;  %v3620_v16 = vld [vmem:[#allocation8 + $0x108] sm:$0xff] }
 0x591   :  { %3657 = vmatpush.msra.mxu0 %v3600_v14  ;;  %3677 = vmatpush.msra.mxu1 %v3616_v9  ;;  %v3614_v30 = vld [vmem:[#allocation8 + $0xd8] sm:$0xff]  ;;  %v3613_v31 = vld [vmem:[#allocation8 + $0xd0] sm:$0xff]  ;;  %3768 = vtanh.f32 %v2621_v0  ;;  %v3603_v42 = vld [vmem:[#allocation8 + $0x80] sm:$0xff] }
 0x592   :  { %3697 = vmatpush.msra.mxu2 %v3632_v18  ;;  %v3630_v45 = vld [vmem:[#allocation8 + $0x158] sm:$0xff]  ;;  %v3629_v58 = vld [vmem:[#allocation8 + $0x150] sm:$0xff]  ;;  %3770 = vtanh.f32 %v3101_v1  ;;  %v3619_v14 = vld [vmem:[#allocation8 + $0x100] sm:$0xff]  ;;  %v1658_v18 = vperm.slane %v4116_v19, 3 }
 0x593   :  { %3658 = vmatpush.msra.mxu0 %v3599_v21  ;;  %3678 = vmatpush.msra.mxu1 %v3615_v24  ;;  %v3594_v47 = vld [vmem:[#allocation8 + $0x38] sm:$0xff]  ;;  %v3593_v7 = vld [vmem:[#allocation8 + $0x30] sm:$0xff]  ;;  %v3140_v24 = vpop.f32.mrf.mxu1  ;;  %v3640_v55 = vld [vmem:[#allocation8 + $0x1a8] sm:$0xff] }
 0x594   :  { %3698 = vmatpush.msra.mxu2 %v3631_v26  ;;  %v3610_v49 = vld [vmem:[#allocation8 + $0xb8] sm:$0xff]  ;;  %v3609_v52 = vld [vmem:[#allocation8 + $0xb0] sm:$0xff]  ;;  %v3121_v21 = vadd.f32 %v3120_v20, %v1658_v18  ;;  %v3160_v26 = vpop.f32.mrf.mxu2 }
 0x595   :  { %3659 = vmatpush.msra.mxu0 %v3598_v27  ;;  %3679 = vmatpush.msra.mxu1 %v3614_v30  ;;  %v3626_v59 = vld [vmem:[#allocation8 + $0x138] sm:$0xff]  ;;  %v3625_v56 = vld [vmem:[#allocation8 + $0x130] sm:$0xff]  ;;  %v3180_v27 = vpop.f32.mrf.mxu3 }
 0x596   :  { %3699 = vmatpush.msra.mxu2 %v3630_v45  ;;  %v3590_v2 = vld [vmem:[#allocation8 + $0x18] sm:$0xff]  ;;  %v3589_v44 = vld [vmem:[#allocation8 + $0x10] sm:$0xff]  ;;  %v3767_v9 = vpop.eup %3766  ;;  %v3141_v25 = vadd.f32 %v3140_v24, %v3121_v21  ;;  %v3648_v45 = vld [vmem:[#allocation8 + $0x1e8] sm:$0xff] }
 0x597   :  { %3660 = vmatpush.msra.mxu0 %v3597_v51  ;;  %3680 = vmatpush.msra.mxu1 %v3613_v31  ;;  %v3606_v3 = vld [vmem:[#allocation8 + $0x98] sm:$0xff]  ;;  %v3605_v4 = vld [vmem:[#allocation8 + $0x90] sm:$0xff]  ;;  %v3769_v35 = vpop.eup %3768  ;;  %v3200_v31 = vpop.f32.mrf.mxu0  ;;  %v3765_v21 = vld [vmem:[#allocation10] ss:$0 sm:$0xff] }
 0x598   :  { %3700 = vmatpush.msra.mxu2 %v3629_v58  ;;  %v3622_v62 = vld [vmem:[#allocation8 + $0x118] sm:$0xff]  ;;  %v3621_v15 = vld [vmem:[#allocation8 + $0x110] sm:$0xff]  ;;  %v3771_v17 = vpop.eup %3770  ;;  %v3161_v28 = vadd.f32 %v3160_v26, %v3141_v25 }
 0x599   :  { %3661 = vmatpush.msra.mxu0 %v3596_v39  ;;  %3681 = vmatpush.msra.mxu1 %v3612_v11  ;;  %v3650_v30 = vld [vmem:[#allocation8 + $0x1f8] sm:$0xff]  ;;  %v3649_v22 = vld [vmem:[#allocation8 + $0x1f0] sm:$0xff]  ;;  %v3644_v39 = vld [vmem:[#allocation8 + $0x1c8] sm:$0xff] }
 0x59a   :  { %3701 = vmatpush.msra.mxu2 %v3628_v41  ;;  %3715 = vmatpush.msra.mxu3 %v3650_v30  ;;  %v3181_v51 = vadd.f32 %v3180_v27, %v3161_v28  ;;  %v3646_v36 = vld [vmem:[#allocation8 + $0x1d8] sm:$0xff]  ;;  %v3645_v38 = vld [vmem:[#allocation8 + $0x1d0] sm:$0xff] }
 0x59b   :  { %3662 = vmatpush.msra.mxu0 %v3595_v46  ;;  %3682 = vmatpush.msra.mxu1 %v3611_v37  ;;  %v3220_v19 = vpop.f32.mrf.mxu1  ;;  %v3642_v23 = vld [vmem:[#allocation8 + $0x1b8] sm:$0xff]  ;;  %v3641_v54 = vld [vmem:[#allocation8 + $0x1b0] sm:$0xff] }
 0x59c   :  { %3702 = vmatpush.msra.mxu2 %v3627_v8  ;;  %3716 = vmatpush.msra.mxu3 %v3649_v22  ;;  %v3201_v58 = vadd.f32 %v3200_v31, %v3181_v51  ;;  %v3240_v40 = vpop.f32.mrf.mxu2  ;;  %v3638_v60 = vld [vmem:[#allocation8 + $0x198] sm:$0xff]  ;;  %v3637_v63 = vld [vmem:[#allocation8 + $0x190] sm:$0xff] }
 0x59d   :  { %3663 = vmatpush.msra.mxu0 %v3594_v47  ;;  %3683 = vmatpush.msra.mxu1 %v3610_v49  ;;  %v3260_v43 = vpop.f32.mrf.mxu3 }
 0x59e   :  { %3703 = vmatpush.msra.mxu2 %v3626_v59  ;;  %3717 = vmatpush.msra.mxu3 %v3648_v45  ;;  %v3221_v11 = vadd.f32 %v3220_v19, %v3201_v58 }
 0x59f   :  { %3664 = vmatpush.msra.mxu0 %v3593_v7  ;;  %3684 = vmatpush.msra.mxu1 %v3609_v52  ;;  %v3280_v46 = vpop.f32.mrf.mxu0 }
 0x5a0   :  { %3704 = vmatpush.msra.mxu2 %v3625_v56  ;;  %3718 = vmatpush.msra.mxu3 %v3647_v33  ;;  %v3241_v41 = vadd.f32 %v3240_v40, %v3221_v11 }
 0x5a1   :  { %3665 = vmatpush.msra.mxu0 %v3592_v34  ;;  %3685 = vmatpush.msra.mxu1 %v3608_v13  ;;  %v3639_v34 = vld [vmem:[#allocation8 + $0x1a0] sm:$0xff] }
 0x5a2   :  { %3705 = vmatpush.msra.mxu2 %v3624_v32  ;;  %3719 = vmatpush.msra.mxu3 %v3646_v36  ;;  %v3261_v37 = vadd.f32 %v3260_v43, %v3241_v41 }
 0x5a3   :  { %3666 = vmatpush.msra.mxu0 %v3591_v10  ;;  %3686 = vmatpush.msra.mxu1 %v3607_v6  ;;  %v3300_v8 = vpop.f32.mrf.mxu1  ;;  %v3636_v6 = vld [vmem:[#allocation8 + $0x188] sm:$0xff] }
 0x5a4   :  { %3706 = vmatpush.msra.mxu2 %v3623_v29  ;;  %3720 = vmatpush.msra.mxu3 %v3645_v38  ;;  %v3281_v61 = vadd.f32 %v3280_v46, %v3261_v37  ;;  %v3320_v47 = vpop.f32.mrf.mxu2  ;;  %v3635_v29 = vld [vmem:[#allocation8 + $0x180] sm:$0xff] }
 0x5a5   :  { %3667 = vmatpush.msra.mxu0 %v3590_v2  ;;  %3687 = vmatpush.msra.mxu1 %v3606_v3  ;;  %v3340_v59 = vpop.f32.mrf.mxu3 }
 0x5a6   :  { %3707 = vmatpush.msra.mxu2 %v3622_v62  ;;  %3721 = vmatpush.msra.mxu3 %v3644_v39  ;;  %v3301_v49 = vadd.f32 %v3300_v8, %v3281_v61 }
 0x5a7   :  { %3668 = vmatpush.msra.mxu0 %v3589_v44  ;;  %3688 = vmatpush.msra.mxu1 %v3605_v4  ;;  %v3360_v7 = vpop.f32.mrf.mxu0 }
 0x5a8   :  { %3708 = vmatpush.msra.mxu2 %v3621_v15  ;;  %3722 = vmatpush.msra.mxu3 %v3643_v50  ;;  %v3321_v53 = vadd.f32 %v3320_v47, %v3301_v49 }
 0x5a9   :  { %3669 = vmatpush.msra.mxu0 %v3588_v48  ;;  %3689 = vmatpush.msra.mxu1 %v3604_v5 }
 0x5aa   :  { %3709 = vmatpush.msra.mxu2 %v3620_v16  ;;  %3723 = vmatpush.msra.mxu3 %v3642_v23  ;;  %v3341_v52 = vadd.f32 %v3340_v59, %v3321_v53 }
 0x5ab   :  { %3670 = vmatpush.msra.mxu0 %v3587_v12  ;;  %3690 = vmatpush.msra.mxu1 %v3603_v42  ;;  %v3380_v57 = vpop.f32.mrf.mxu1 }
 0x5ac   :  { %3710 = vmatpush.msra.mxu2 %v3619_v14  ;;  %3671 = vmatmul.f32.vlgmr.msra.gmra.mxu0 %v3767_v9  ;;  %v3361_v56 = vadd.f32 %v3360_v7, %v3341_v52  ;;  %v3400_v13 = vpop.f32.mrf.mxu2 }
 0x5ad   :  { %3691 = vmatmul.f32.vlgmr.msra.gmra.mxu1 %v3769_v35  ;;  %3711 = vmatmul.f32.vlgmr.msra.gmra.mxu2 %v3771_v17  ;;  %v3420_v0 = vpop.f32.mrf.mxu3 }
 0x5ae   :  { %3724 = vmatpush.msra.mxu3 %v3641_v54  ;;  %v3381_v32 = vadd.f32 %v3380_v57, %v3361_v56 }
 0x5b0   :  { %3725 = vmatpush.msra.mxu3 %v3640_v55  ;;  %v3401_v10 = vadd.f32 %v3400_v13, %v3381_v32 }
 0x5b2   :  { %3726 = vmatpush.msra.mxu3 %v3639_v34  ;;  %v3421_v2 = vadd.f32 %v3420_v0, %v3401_v10 }
 0x5b4   :  { %3727 = vmatpush.msra.mxu3 %v3638_v60 }
 0x5b6   :  { %3728 = vmatpush.msra.mxu3 %v3637_v63 }
 0x5b8   :  { %3729 = vmatpush.msra.mxu3 %v3636_v6 }
 0x5ba   :  { %3730 = vmatpush.msra.mxu3 %v3635_v29 }
 0x5c5   :  { %v3440_v1 = vpop.f32.mrf.mxu0 }
 0x5c6   :  { %v3441_v3 = vadd.f32 %v3440_v1, %v3421_v2  ;;  %v3460_v62 = vpop.f32.mrf.mxu1 }
 0x5c8   :  { %v3461_v4 = vadd.f32 %v3460_v62, %v3441_v3 }
 0x5cd   :  { %v3480_v44 = vpop.f32.mrf.mxu2 }
 0x5ce   :  { %v3481_v15 = vadd.f32 %v3480_v44, %v3461_v4 }
 0x5d6   :  { %v3500_v48 = vpop.f32.mrf.mxu3 }
 0x5d7   :  { %v3501_v5 = vadd.f32 %v3500_v48, %v3481_v15 }
 0x606   :  { %v3520_v16 = vpop.f32.mrf.mxu0 }
 0x607   :  { %v3521_v12 = vadd.f32 %v3520_v16, %v3501_v5  ;;  %v3540_v42 = vpop.f32.mrf.mxu1 }
 0x609   :  { %v3541_v14 = vadd.f32 %v3540_v42, %v3521_v12 }
 0x60e   :  { %v3560_v9 = vpop.f32.mrf.mxu2 }
 0x60f   :  { %v3561_v35 = vadd.f32 %v3560_v9, %v3541_v14 }
 0x613   :  { %v3580_v17 = vpop.f32.mrf.mxu3 }
 0x614   :  { %v3581_v18 = vadd.f32 %v3580_v17, %v3561_v35 }
 0x616   :  { %3772 = vtanh.f32 %v3581_v18 }
 0x61c   :  { %v3773_v20 = vpop.eup %3772 }
 0x61d   :  { %3731 = vmatmul.f32.vlgmr.msra.gmra.mxu3 %v3773_v20 }
 0x629   :  { %v3672_v24 = vpop.f32.mrf.mxu0 }
 0x62a   :  { %v3673_v25 = vadd.f32 %v3765_v21, %v3672_v24  ;;  %v3692_v26 = vpop.f32.mrf.mxu1 }
 0x62c   :  { %v3693_v27 = vadd.f32 %v3692_v26, %v3673_v25 }
 0x630   :  { %v3712_v28 = vpop.f32.mrf.mxu2 }
 0x631   :  { %v3713_v30 = vadd.f32 %v3712_v28, %v3693_v27 }
 0x6a0   :  { %v3732_v22 = vpop.f32.mrf.mxu3 }
 0x6a1   :  { %v3733_v45 = vadd.f32 %v3732_v22, %v3713_v30 }
 0x6a3   :  { %3735 = vst [vmem:[#allocation11] sm:$0xff] %v3733_v45 }
 0x6a4   :  { %3746 = dma.vmem_to_hbm [thread:$0]  %s3742_s4, 128, %s3744_s21, [#allocation4]  }
 0x6a5   :  { %3997 = dma.done.wait [#allocation4], 128  }
 0x6a6   :  { %3998 = vsyncadd [#allocation4], 4294967168 }
 0x6a7   :  { %3751 = vsyncpa [#allocation3], 1 }
 0x6a8   :  { %3752 = vsyncpa [#allocation6], 1 }
 0x6a9   :  { %3753 = vsyncpa [#allocation9], 1 }
 0x6aa   :  { %3754 = vsyncpa [#allocation4], 1 }

</bundles_post_ra>
